<compile_context>
chip_gen: v6e
topology: v6e:2x2x1
jax: 0.10.0
libtpu: 0.0.40
codegen_flags: <defaults>
</compile_context>

<pallas_src>
import functools

import jax
import jax.numpy as jnp
from jax import lax
from jax.experimental import pallas as pl
from jax.experimental.pallas import tpu as pltpu

LANE = 128
SUBLANE = 8


def _round_up(x, m):
    return ((x + m - 1) // m) * m


def _mpnn_kernel(col_ref,                      # scalar-prefetch: [E_pad] int32 (SMEM)
                 x_ref, ea_ref, row_ref,       # node feats, edge-attr tile, row-id tile
                 we1_ref, be1_ref, we2_ref, be2_ref,
                 wn1_ref, bn1_ref, wn2_ref, bn2_ref,
                 wm_ref, bm_ref, wu_ref, bu_ref,
                 node_out_ref, edge_out_ref,
                 x_enc_sc, acc_sc, x_col_sc,
                 *, mxu_dtype):
    f32 = jnp.float32
    k = pl.program_id(0)
    n_tiles = pl.num_programs(0)
    tE, H_p = x_col_sc.shape
    N_p = x_enc_sc.shape[0]

    def mm(a, w_ref):
        # MXU matmul; operands in mxu_dtype (f32 or bf16), accumulate in f32.
        return jnp.dot(a.astype(mxu_dtype), w_ref[...], preferred_element_type=f32)

    # ---- once per call: node encoder + accumulator init --------------------
    @pl.when(k == 0)
    def _init():
        h = jnp.maximum(mm(x_ref[...], wn1_ref) + bn1_ref[...], 0.0)
        x_enc_sc[...] = mm(h, wn2_ref) + bn2_ref[...]
        acc_sc[...] = jnp.zeros_like(acc_sc)

    # ---- edge encoder for this edge tile ------------------------------------
    he = jnp.maximum(mm(ea_ref[...], we1_ref) + be1_ref[...], 0.0)
    edge_enc = mm(he, we2_ref) + be2_ref[...]           # [tE, H_p] f32
    edge_out_ref[...] = edge_enc                        # lane-dense (H_p = 128k)

    # ---- gather x_enc[col] for this tile: O(tE*H) row copies ----------------
    # (col indices come from SMEM via scalar prefetch; destination rows are
    #  static, only the source row offset is dynamic.)
    base = k * tE
    for e in range(tE):
        idx = col_ref[base + e]
        x_col_sc[pl.ds(e, 1), :] = x_enc_sc[pl.ds(idx, 1), :]

    # ---- message: Linear(x[col] + edge_attr) --------------------------------
    msg = mm(x_col_sc[...] + edge_enc, wm_ref) + bm_ref[...]   # [tE, H_p] f32

    # ---- scatter-sum (+ fused count) via one-hot matmul, VMEM accumulate ----
    row_ids = row_ref[...]                                        # [1, tE] int32
    scat_oh = (lax.broadcasted_iota(jnp.int32, (N_p, tE), 0)
               == row_ids).astype(mxu_dtype)                      # [N_p, tE]
    msg_aug = jnp.concatenate(
        [msg, jnp.ones((tE, LANE), f32)], axis=1).astype(mxu_dtype)  # [tE, H_p+128]
    acc_sc[...] += jnp.dot(scat_oh, msg_aug, preferred_element_type=f32)

    # ---- finalize: mean + update Linear -------------------------------------
    @pl.when(k == n_tiles - 1)
    def _finalize():
        acc = acc_sc[...]
        summed = acc[:, :H_p]
        count = acc[:, H_p:H_p + 1]
        mean = summed * pl.reciprocal(jnp.maximum(count, 1.0), approx=True)
        node_out_ref[...] = mm(mean, wu_ref) + bu_ref[...]


def mpnn_block(x, edge_index, edge_attr, params, *,
               edge_tile=128, mxu_dtype=jnp.float32):
    """x: [N, C] f32; edge_index: [2, E] int; edge_attr: [E, edge_dim] f32."""
    N, C = x.shape
    E, D = edge_attr.shape
    H = params["wn2"].shape[1]
    O = params["wu"].shape[1]

    C_p = _round_up(C, LANE)
    D_p = _round_up(D, LANE)
    H_p = _round_up(H, LANE)
    O_p = _round_up(O, LANE)
    N_p = _round_up(N, SUBLANE)
    tE = max(LANE, _round_up(edge_tile, LANE))   # edge tile (lane-aligned)
    E_p = _round_up(max(E, 1), tE)
    n_tiles = E_p // tE

    def pad2(a, r, c, dtype=jnp.float32):
        a = a.astype(dtype)
        return jnp.pad(a, ((0, r - a.shape[0]), (0, c - a.shape[1])))

    x_pad = pad2(x, N_p, C_p)
    ea_pad = pad2(edge_attr, E_p, D_p)

    row = edge_index[0].astype(jnp.int32)
    col = edge_index[1].astype(jnp.int32)
    # Padded edges: row -> N_p (out of iota range => zero one-hot column, so they
    # never corrupt the scatter/count); col -> 0 (harmless gather).
    row_pad = jnp.full((1, E_p), N_p, jnp.int32).at[0, :E].set(row)
    col_pad = jnp.zeros((E_p,), jnp.int32).at[:E].set(col)

    wdt = mxu_dtype
    weights = [
        pad2(params["we1"], D_p, H_p, wdt), pad2(params["be1"], 1, H_p),
        pad2(params["we2"], H_p, H_p, wdt), pad2(params["be2"], 1, H_p),
        pad2(params["wn1"], C_p, H_p, wdt), pad2(params["bn1"], 1, H_p),
        pad2(params["wn2"], H_p, H_p, wdt), pad2(params["bn2"], 1, H_p),
        pad2(params["wm"],  H_p, H_p, wdt), pad2(params["bm"],  1, H_p),
        pad2(params["wu"],  H_p, O_p, wdt), pad2(params["bu"],  1, O_p),
    ]

    def resident(shape):
        return pl.BlockSpec(shape, lambda k, col_r: (0, 0))

    in_specs = [
        resident((N_p, C_p)),                              # x (DMA'd once)
        pl.BlockSpec((tE, D_p), lambda k, col_r: (k, 0)),  # edge_attr tile (pipelined)
        pl.BlockSpec((1, tE),   lambda k, col_r: (0, k)),  # row ids tile (lane-major)
    ] + [resident(tuple(w.shape)) for w in weights]

    out_specs = [
        resident((N_p, O_p)),                              # node_out (accumulator)
        pl.BlockSpec((tE, H_p), lambda k, col_r: (k, 0)),  # edge_out tile
    ]

    scratch_shapes = [
        pltpu.VMEM((N_p, H_p), jnp.float32),         # x_enc (resident)
        pltpu.VMEM((N_p, H_p + LANE), jnp.float32),  # scatter sum + count lanes
        pltpu.VMEM((tE, H_p), jnp.float32),          # gathered x_enc[col] tile
    ]

    grid_spec = pltpu.PrefetchScalarGridSpec(
        num_scalar_prefetch=1,
        grid=(n_tiles,),
        in_specs=in_specs,
        out_specs=out_specs,
        scratch_shapes=scratch_shapes,
    )

    flops = 2 * (
        E_p * D_p * H_p + E_p * H_p * H_p        # edge encoder
        + N_p * C_p * H_p + N_p * H_p * H_p      # node encoder
        + E_p * H_p * H_p                        # message
        + E_p * N_p * (H_p + LANE)               # scatter matmul (+count)
        + N_p * H_p * O_p                        # update
    )
    bytes_accessed = 4 * (
        N_p * C_p + E_p * D_p + 2 * E_p          # x, edge_attr, row, col
        + N_p * O_p + E_p * H_p                  # outputs
        + (D_p + C_p + 3 * H_p) * H_p + H_p * O_p + 5 * H_p + O_p  # params
    )
    cost = pl.CostEstimate(flops=int(flops), transcendentals=int(N_p),
                           bytes_accessed=int(bytes_accessed))

    node_out_p, edge_out_p = pl.pallas_call(
        functools.partial(_mpnn_kernel, mxu_dtype=mxu_dtype),
        out_shape=(
            jax.ShapeDtypeStruct((N_p, O_p), jnp.float32),
            jax.ShapeDtypeStruct((E_p, H_p), jnp.float32),
        ),
        grid_spec=grid_spec,
        compiler_params=pltpu.CompilerParams(
            dimension_semantics=("arbitrary",),   # edge axis is a reduction
            vmem_limit_bytes=64 * 1024 * 1024,
        ),
        cost_estimate=cost,
    )(col_pad, x_pad, ea_pad, row_pad, *weights)

    return node_out_p[:N, :O], edge_out_p[:E, :H]


def init_params(key, in_channels, hidden, out_channels, edge_dim):
    """Deterministic synthetic params. Weights stored as [in, out]."""
    ks = jax.random.split(key, 6)

    def lin(k, fan_in, fan_out):
        w = jax.random.normal(k, (fan_in, fan_out), jnp.float32) / jnp.sqrt(
            jnp.float32(fan_in))
        b = jnp.full((1, fan_out), 0.01, jnp.float32)
        return w, b

    we1, be1 = lin(ks[0], edge_dim, hidden)
    we2, be2 = lin(ks[1], hidden, hidden)
    wn1, bn1 = lin(ks[2], in_channels, hidden)
    wn2, bn2 = lin(ks[3], hidden, hidden)
    wm, bm = lin(ks[4], hidden, hidden)
    wu, bu = lin(ks[5], hidden, out_channels)
    return dict(we1=we1, be1=be1, we2=we2, be2=be2,
                wn1=wn1, bn1=bn1, wn2=wn2, bn2=bn2,
                wm=wm, bm=bm, wu=wu, bu=bu)


def mpnn_block_ref(x, edge_index, edge_attr, params):
    """Pure-JAX reference matching the PyTorch forward."""
    row, col = edge_index[0], edge_index[1]
    e = jnp.maximum(edge_attr @ params["we1"] + params["be1"], 0.0)
    edge_enc = e @ params["we2"] + params["be2"]
    h = jnp.maximum(x @ params["wn1"] + params["bn1"], 0.0)
    x_enc = h @ params["wn2"] + params["bn2"]
    msg = (x_enc[col] + edge_enc) @ params["wm"] + params["bm"]
    N = x.shape[0]
    summed = jnp.zeros((N, msg.shape[1]), jnp.float32).at[row].add(msg)
    count = jnp.zeros((N, 1), jnp.float32).at[row].add(1.0)
    mean = summed / jnp.maximum(count, 1.0)
    return mean @ params["wu"] + params["bu"], edge_enc


if __name__ == "__main__":
    # Small graph sized to exercise multiple edge tiles + padding (E_p=384 -> 3 tiles,
    # N=50 -> N_pad=56).
    N, E = 50, 300
    in_channels, hidden, out_channels, edge_dim = 4, 32, 8, 6

    key = jax.random.PRNGKey(0)
    k_x, k_ea, k_ei, k_p = jax.random.split(key, 4)

    x = jax.random.normal(k_x, (N, in_channels), jnp.float32)
    edge_attr = jax.random.normal(k_ea, (E, edge_dim), jnp.float32)
    edge_index = jax.random.randint(k_ei, (2, E), 0, N, jnp.int32)
    params = init_params(k_p, in_channels, hidden, out_channels, edge_dim)

    node_ref, edge_ref = mpnn_block_ref(x, edge_index, edge_attr, params)

    # f32 MXU path (only the EUP approximate reciprocal deviates from the ref).
    node_out, edge_out = mpnn_block(x, edge_index, edge_attr, params,
                                    edge_tile=128, mxu_dtype=jnp.float32)
    jax.block_until_ready((node_out, edge_out))
    assert jnp.allclose(edge_out, edge_ref, atol=1e-4, rtol=1e-4)
    assert jnp.allclose(node_out, node_ref, atol=5e-2, rtol=5e-2)

    # bf16 MXU operands (v6e/v7x MXU peak), f32 accumulation.
    node_bf, edge_bf = mpnn_block(x, edge_index, edge_attr, params,
                                  edge_tile=128, mxu_dtype=jnp.bfloat16)
    jax.block_until_ready((node_bf, edge_bf))
    assert jnp.allclose(edge_bf, edge_ref, atol=1e-1, rtol=1e-1)
    assert jnp.allclose(node_bf, node_ref, atol=1e-1, rtol=1e-1)

    print("KERNEL_OK")
</pallas_src>

<mosaic_0001>
module attributes {stable_mosaic.version = 11 : i64} {
  func.func @_mpnn_kernel(%arg0: i32, %arg1: memref<384xi32, #tpu.memory_space<smem>>, %arg2: memref<56x128xf32, #tpu.memory_space<vmem>>, %arg3: memref<128x128xf32, #tpu.memory_space<vmem>>, %arg4: memref<1x128xi32, #tpu.memory_space<vmem>>, %arg5: memref<128x128xf32, #tpu.memory_space<vmem>>, %arg6: memref<1x128xf32, #tpu.memory_space<vmem>>, %arg7: memref<128x128xf32, #tpu.memory_space<vmem>>, %arg8: memref<1x128xf32, #tpu.memory_space<vmem>>, %arg9: memref<128x128xf32, #tpu.memory_space<vmem>>, %arg10: memref<1x128xf32, #tpu.memory_space<vmem>>, %arg11: memref<128x128xf32, #tpu.memory_space<vmem>>, %arg12: memref<1x128xf32, #tpu.memory_space<vmem>>, %arg13: memref<128x128xf32, #tpu.memory_space<vmem>>, %arg14: memref<1x128xf32, #tpu.memory_space<vmem>>, %arg15: memref<128x128xf32, #tpu.memory_space<vmem>>, %arg16: memref<1x128xf32, #tpu.memory_space<vmem>>, %arg17: memref<56x128xf32, #tpu.memory_space<vmem>>, %arg18: memref<128x128xf32, #tpu.memory_space<vmem>>, %arg19: memref<56x128xf32, #tpu.memory_space<vmem>>, %arg20: memref<56x256xf32, #tpu.memory_space<vmem>>, %arg21: memref<128x128xf32, #tpu.memory_space<vmem>>) attributes {dimension_semantics = [#tpu.dimension_semantics<arbitrary>], iteration_bounds = array<i64: 3>, scalar_prefetch = 1 : i64, scratch_operands = 3 : i64, tpu.core_type = #tpu.core_type<tc>, window_params = [{pipeline_mode = #tpu.pipeline_mode<synchronous>, transform_indices = @transform_0, window_bounds = array<i64: 56, 128>}, {transform_indices = @transform_1, window_bounds = array<i64: 128, 128>}, {transform_indices = @transform_2, window_bounds = array<i64: 1, 128>}, {pipeline_mode = #tpu.pipeline_mode<synchronous>, transform_indices = @transform_3, window_bounds = array<i64: 128, 128>}, {pipeline_mode = #tpu.pipeline_mode<synchronous>, transform_indices = @transform_4, window_bounds = array<i64: 1, 128>}, {pipeline_mode = #tpu.pipeline_mode<synchronous>, transform_indices = @transform_5, window_bounds = array<i64: 128, 128>}, {pipeline_mode = #tpu.pipeline_mode<synchronous>, transform_indices = @transform_6, window_bounds = array<i64: 1, 128>}, {pipeline_mode = #tpu.pipeline_mode<synchronous>, transform_indices = @transform_7, window_bounds = array<i64: 128, 128>}, {pipeline_mode = #tpu.pipeline_mode<synchronous>, transform_indices = @transform_8, window_bounds = array<i64: 1, 128>}, {pipeline_mode = #tpu.pipeline_mode<synchronous>, transform_indices = @transform_9, window_bounds = array<i64: 128, 128>}, {pipeline_mode = #tpu.pipeline_mode<synchronous>, transform_indices = @transform_10, window_bounds = array<i64: 1, 128>}, {pipeline_mode = #tpu.pipeline_mode<synchronous>, transform_indices = @transform_11, window_bounds = array<i64: 128, 128>}, {pipeline_mode = #tpu.pipeline_mode<synchronous>, transform_indices = @transform_12, window_bounds = array<i64: 1, 128>}, {pipeline_mode = #tpu.pipeline_mode<synchronous>, transform_indices = @transform_13, window_bounds = array<i64: 128, 128>}, {pipeline_mode = #tpu.pipeline_mode<synchronous>, transform_indices = @transform_14, window_bounds = array<i64: 1, 128>}, {pipeline_mode = #tpu.pipeline_mode<synchronous>, transform_indices = @transform_15, window_bounds = array<i64: 56, 128>}, {transform_indices = @transform_16, window_bounds = array<i64: 128, 128>}]} {
    %c0_i32 = arith.constant 0 : i32
    %0 = arith.cmpi eq, %arg0, %c0_i32 : i32
    %1 = arith.extui %0 : i1 to i32
    %c0_i32_0 = arith.constant 0 : i32
    %2 = arith.cmpi ne, %1, %c0_i32_0 : i32
    scf.if %2 {
      %c0_289 = arith.constant 0 : index
      %c0_290 = arith.constant 0 : index
      %808 = vector.load %arg2[%c0_289, %c0_290] : memref<56x128xf32, #tpu.memory_space<vmem>>, vector<56x128xf32>
      %c0_291 = arith.constant 0 : index
      %c0_292 = arith.constant 0 : index
      %809 = vector.load %arg9[%c0_291, %c0_292] : memref<128x128xf32, #tpu.memory_space<vmem>>, vector<128x128xf32>
      %cst_293 = arith.constant dense<0.000000e+00> : vector<56x128xf32>
      %810 = tpu.matmul %808, %809, %cst_293 {dimension_numbers = #tpu.dot_dimension_numbers<[1], [0], [0], [1], [0, 0, 1, 1], [], []>} : vector<56x128xf32>, vector<128x128xf32>, vector<56x128xf32> -> vector<56x128xf32>
      %c0_294 = arith.constant 0 : index
      %c0_295 = arith.constant 0 : index
      %811 = vector.load %arg10[%c0_294, %c0_295] : memref<1x128xf32, #tpu.memory_space<vmem>>, vector<1x128xf32>
      %812 = vector.broadcast %811 : vector<1x128xf32> to vector<56x128xf32>
      %813 = arith.addf %810, %812 : vector<56x128xf32>
      %cst_296 = arith.constant 0.000000e+00 : f32
      %814 = vector.broadcast %cst_296 : f32 to vector<56x128xf32>
      %815 = arith.maximumf %813, %814 : vector<56x128xf32>
      %c0_297 = arith.constant 0 : index
      %c0_298 = arith.constant 0 : index
      %816 = vector.load %arg11[%c0_297, %c0_298] : memref<128x128xf32, #tpu.memory_space<vmem>>, vector<128x128xf32>
      %cst_299 = arith.constant dense<0.000000e+00> : vector<56x128xf32>
      %817 = tpu.matmul %815, %816, %cst_299 {dimension_numbers = #tpu.dot_dimension_numbers<[1], [0], [0], [1], [0, 0, 1, 1], [], []>} : vector<56x128xf32>, vector<128x128xf32>, vector<56x128xf32> -> vector<56x128xf32>
      %c0_300 = arith.constant 0 : index
      %c0_301 = arith.constant 0 : index
      %818 = vector.load %arg12[%c0_300, %c0_301] : memref<1x128xf32, #tpu.memory_space<vmem>>, vector<1x128xf32>
      %819 = vector.broadcast %818 : vector<1x128xf32> to vector<56x128xf32>
      %820 = arith.addf %817, %819 : vector<56x128xf32>
      %c0_302 = arith.constant 0 : index
      %c0_303 = arith.constant 0 : index
      %821 = vector.load %arg19[%c0_302, %c0_303] : memref<56x128xf32, #tpu.memory_space<vmem>>, vector<56x128xf32>
      tpu.vector_store %arg19[%c0_302, %c0_303], %820 {strides = array<i32>} : memref<56x128xf32, #tpu.memory_space<vmem>>, vector<56x128xf32>,
      %cst_304 = arith.constant 0.000000e+00 : f32
      %822 = vector.broadcast %cst_304 : f32 to vector<56x256xf32>
      %c0_305 = arith.constant 0 : index
      %c0_306 = arith.constant 0 : index
      %823 = vector.load %arg20[%c0_305, %c0_306] : memref<56x256xf32, #tpu.memory_space<vmem>>, vector<56x256xf32>
      tpu.vector_store %arg20[%c0_305, %c0_306], %822 {strides = array<i32>} : memref<56x256xf32, #tpu.memory_space<vmem>>, vector<56x256xf32>,
    } else {
    }
    %c0 = arith.constant 0 : index
    %c0_1 = arith.constant 0 : index
    %3 = vector.load %arg3[%c0, %c0_1] : memref<128x128xf32, #tpu.memory_space<vmem>>, vector<128x128xf32>
    %c0_2 = arith.constant 0 : index
    %c0_3 = arith.constant 0 : index
    %4 = vector.load %arg5[%c0_2, %c0_3] : memref<128x128xf32, #tpu.memory_space<vmem>>, vector<128x128xf32>
    %cst = arith.constant dense<0.000000e+00> : vector<128x128xf32>
    %5 = tpu.matmul %3, %4, %cst {dimension_numbers = #tpu.dot_dimension_numbers<[1], [0], [0], [1], [0, 0, 1, 1], [], []>} : vector<128x128xf32>, vector<128x128xf32>, vector<128x128xf32> -> vector<128x128xf32>
    %c0_4 = arith.constant 0 : index
    %c0_5 = arith.constant 0 : index
    %6 = vector.load %arg6[%c0_4, %c0_5] : memref<1x128xf32, #tpu.memory_space<vmem>>, vector<1x128xf32>
    %7 = vector.broadcast %6 : vector<1x128xf32> to vector<128x128xf32>
    %8 = arith.addf %5, %7 : vector<128x128xf32>
    %cst_6 = arith.constant 0.000000e+00 : f32
    %9 = vector.broadcast %cst_6 : f32 to vector<128x128xf32>
    %10 = arith.maximumf %8, %9 : vector<128x128xf32>
    %c0_7 = arith.constant 0 : index
    %c0_8 = arith.constant 0 : index
    %11 = vector.load %arg7[%c0_7, %c0_8] : memref<128x128xf32, #tpu.memory_space<vmem>>, vector<128x128xf32>
    %cst_9 = arith.constant dense<0.000000e+00> : vector<128x128xf32>
    %12 = tpu.matmul %10, %11, %cst_9 {dimension_numbers = #tpu.dot_dimension_numbers<[1], [0], [0], [1], [0, 0, 1, 1], [], []>} : vector<128x128xf32>, vector<128x128xf32>, vector<128x128xf32> -> vector<128x128xf32>
    %c0_10 = arith.constant 0 : index
    %c0_11 = arith.constant 0 : index
    %13 = vector.load %arg8[%c0_10, %c0_11] : memref<1x128xf32, #tpu.memory_space<vmem>>, vector<1x128xf32>
    %14 = vector.broadcast %13 : vector<1x128xf32> to vector<128x128xf32>
    %15 = arith.addf %12, %14 : vector<128x128xf32>
    %c0_12 = arith.constant 0 : index
    %c0_13 = arith.constant 0 : index
    %16 = vector.load %arg18[%c0_12, %c0_13] : memref<128x128xf32, #tpu.memory_space<vmem>>, vector<128x128xf32>
    tpu.vector_store %arg18[%c0_12, %c0_13], %15 {strides = array<i32>} : memref<128x128xf32, #tpu.memory_space<vmem>>, vector<128x128xf32>,
    %c128_i32 = arith.constant 128 : i32
    %17 = arith.muli %arg0, %c128_i32 : i32
    %c0_i32_14 = arith.constant 0 : i32
    %18 = arith.addi %17, %c0_i32_14 : i32
    %19 = arith.index_cast %18 : i32 to index
    %20 = memref.load %arg1[%19] : memref<384xi32, #tpu.memory_space<smem>>
    %21 = arith.index_cast %20 : i32 to index
    %c0_15 = arith.constant 0 : index
    %22 = vector.load %arg19[%21, %c0_15] : memref<56x128xf32, #tpu.memory_space<vmem>>, vector<1x128xf32>
    %c0_16 = arith.constant 0 : index
    %c0_17 = arith.constant 0 : index
    %23 = vector.load %arg21[%c0_16, %c0_17] : memref<128x128xf32, #tpu.memory_space<vmem>>, vector<1x128xf32>
    tpu.vector_store %arg21[%c0_16, %c0_17], %22 {strides = array<i32>} : memref<128x128xf32, #tpu.memory_space<vmem>>, vector<1x128xf32>,
    %c1_i32 = arith.constant 1 : i32
    %24 = arith.addi %17, %c1_i32 : i32
    %25 = arith.index_cast %24 : i32 to index
    %26 = memref.load %arg1[%25] : memref<384xi32, #tpu.memory_space<smem>>
    %27 = arith.index_cast %26 : i32 to index
    %c0_18 = arith.constant 0 : index
    %28 = vector.load %arg19[%27, %c0_18] : memref<56x128xf32, #tpu.memory_space<vmem>>, vector<1x128xf32>
    %c1 = arith.constant 1 : index
    %c0_19 = arith.constant 0 : index
    %29 = vector.load %arg21[%c1, %c0_19] : memref<128x128xf32, #tpu.memory_space<vmem>>, vector<1x128xf32>
    tpu.vector_store %arg21[%c1, %c0_19], %28 {strides = array<i32>} : memref<128x128xf32, #tpu.memory_space<vmem>>, vector<1x128xf32>,
    %c2_i32 = arith.constant 2 : i32
    %30 = arith.addi %17, %c2_i32 : i32
    %31 = arith.index_cast %30 : i32 to index
    %32 = memref.load %arg1[%31] : memref<384xi32, #tpu.memory_space<smem>>
    %33 = arith.index_cast %32 : i32 to index
    %c0_20 = arith.constant 0 : index
    %34 = vector.load %arg19[%33, %c0_20] : memref<56x128xf32, #tpu.memory_space<vmem>>, vector<1x128xf32>
    %c2 = arith.constant 2 : index
    %c0_21 = arith.constant 0 : index
    %35 = vector.load %arg21[%c2, %c0_21] : memref<128x128xf32, #tpu.memory_space<vmem>>, vector<1x128xf32>
    tpu.vector_store %arg21[%c2, %c0_21], %34 {strides = array<i32>} : memref<128x128xf32, #tpu.memory_space<vmem>>, vector<1x128xf32>,
    %c3_i32 = arith.constant 3 : i32
    %36 = arith.addi %17, %c3_i32 : i32
    %37 = arith.index_cast %36 : i32 to index
    %38 = memref.load %arg1[%37] : memref<384xi32, #tpu.memory_space<smem>>
    %39 = arith.index_cast %38 : i32 to index
    %c0_22 = arith.constant 0 : index
    %40 = vector.load %arg19[%39, %c0_22] : memref<56x128xf32, #tpu.memory_space<vmem>>, vector<1x128xf32>
    %c3 = arith.constant 3 : index
    %c0_23 = arith.constant 0 : index
    %41 = vector.load %arg21[%c3, %c0_23] : memref<128x128xf32, #tpu.memory_space<vmem>>, vector<1x128xf32>
    tpu.vector_store %arg21[%c3, %c0_23], %40 {strides = array<i32>} : memref<128x128xf32, #tpu.memory_space<vmem>>, vector<1x128xf32>,
    %c4_i32 = arith.constant 4 : i32
    %42 = arith.addi %17, %c4_i32 : i32
    %43 = arith.index_cast %42 : i32 to index
    %44 = memref.load %arg1[%43] : memref<384xi32, #tpu.memory_space<smem>>
    %45 = arith.index_cast %44 : i32 to index
    %c0_24 = arith.constant 0 : index
    %46 = vector.load %arg19[%45, %c0_24] : memref<56x128xf32, #tpu.memory_space<vmem>>, vector<1x128xf32>
    %c4 = arith.constant 4 : index
    %c0_25 = arith.constant 0 : index
    %47 = vector.load %arg21[%c4, %c0_25] : memref<128x128xf32, #tpu.memory_space<vmem>>, vector<1x128xf32>
    tpu.vector_store %arg21[%c4, %c0_25], %46 {strides = array<i32>} : memref<128x128xf32, #tpu.memory_space<vmem>>, vector<1x128xf32>,
    %c5_i32 = arith.constant 5 : i32
    %48 = arith.addi %17, %c5_i32 : i32
    %49 = arith.index_cast %48 : i32 to index
    %50 = memref.load %arg1[%49] : memref<384xi32, #tpu.memory_space<smem>>
    %51 = arith.index_cast %50 : i32 to index
    %c0_26 = arith.constant 0 : index
    %52 = vector.load %arg19[%51, %c0_26] : memref<56x128xf32, #tpu.memory_space<vmem>>, vector<1x128xf32>
    %c5 = arith.constant 5 : index
    %c0_27 = arith.constant 0 : index
    %53 = vector.load %arg21[%c5, %c0_27] : memref<128x128xf32, #tpu.memory_space<vmem>>, vector<1x128xf32>
    tpu.vector_store %arg21[%c5, %c0_27], %52 {strides = array<i32>} : memref<128x128xf32, #tpu.memory_space<vmem>>, vector<1x128xf32>,
    %c6_i32 = arith.constant 6 : i32
    %54 = arith.addi %17, %c6_i32 : i32
    %55 = arith.index_cast %54 : i32 to index
    %56 = memref.load %arg1[%55] : memref<384xi32, #tpu.memory_space<smem>>
    %57 = arith.index_cast %56 : i32 to index
    %c0_28 = arith.constant 0 : index
    %58 = vector.load %arg19[%57, %c0_28] : memref<56x128xf32, #tpu.memory_space<vmem>>, vector<1x128xf32>
    %c6 = arith.constant 6 : index
    %c0_29 = arith.constant 0 : index
    %59 = vector.load %arg21[%c6, %c0_29] : memref<128x128xf32, #tpu.memory_space<vmem>>, vector<1x128xf32>
    tpu.vector_store %arg21[%c6, %c0_29], %58 {strides = array<i32>} : memref<128x128xf32, #tpu.memory_space<vmem>>, vector<1x128xf32>,
    %c7_i32 = arith.constant 7 : i32
    %60 = arith.addi %17, %c7_i32 : i32
    %61 = arith.index_cast %60 : i32 to index
    %62 = memref.load %arg1[%61] : memref<384xi32, #tpu.memory_space<smem>>
    %63 = arith.index_cast %62 : i32 to index
    %c0_30 = arith.constant 0 : index
    %64 = vector.load %arg19[%63, %c0_30] : memref<56x128xf32, #tpu.memory_space<vmem>>, vector<1x128xf32>
    %c7 = arith.constant 7 : index
    %c0_31 = arith.constant 0 : index
    %65 = vector.load %arg21[%c7, %c0_31] : memref<128x128xf32, #tpu.memory_space<vmem>>, vector<1x128xf32>
    tpu.vector_store %arg21[%c7, %c0_31], %64 {strides = array<i32>} : memref<128x128xf32, #tpu.memory_space<vmem>>, vector<1x128xf32>,
    %c8_i32 = arith.constant 8 : i32
    %66 = arith.addi %17, %c8_i32 : i32
    %67 = arith.index_cast %66 : i32 to index
    %68 = memref.load %arg1[%67] : memref<384xi32, #tpu.memory_space<smem>>
    %69 = arith.index_cast %68 : i32 to index
    %c0_32 = arith.constant 0 : index
    %70 = vector.load %arg19[%69, %c0_32] : memref<56x128xf32, #tpu.memory_space<vmem>>, vector<1x128xf32>
    %c8 = arith.constant 8 : index
    %c0_33 = arith.constant 0 : index
    %71 = vector.load %arg21[%c8, %c0_33] : memref<128x128xf32, #tpu.memory_space<vmem>>, vector<1x128xf32>
    tpu.vector_store %arg21[%c8, %c0_33], %70 {strides = array<i32>} : memref<128x128xf32, #tpu.memory_space<vmem>>, vector<1x128xf32>,
    %c9_i32 = arith.constant 9 : i32
    %72 = arith.addi %17, %c9_i32 : i32
    %73 = arith.index_cast %72 : i32 to index
    %74 = memref.load %arg1[%73] : memref<384xi32, #tpu.memory_space<smem>>
    %75 = arith.index_cast %74 : i32 to index
    %c0_34 = arith.constant 0 : index
    %76 = vector.load %arg19[%75, %c0_34] : memref<56x128xf32, #tpu.memory_space<vmem>>, vector<1x128xf32>
    %c9 = arith.constant 9 : index
    %c0_35 = arith.constant 0 : index
    %77 = vector.load %arg21[%c9, %c0_35] : memref<128x128xf32, #tpu.memory_space<vmem>>, vector<1x128xf32>
    tpu.vector_store %arg21[%c9, %c0_35], %76 {strides = array<i32>} : memref<128x128xf32, #tpu.memory_space<vmem>>, vector<1x128xf32>,
    %c10_i32 = arith.constant 10 : i32
    %78 = arith.addi %17, %c10_i32 : i32
    %79 = arith.index_cast %78 : i32 to index
    %80 = memref.load %arg1[%79] : memref<384xi32, #tpu.memory_space<smem>>
    %81 = arith.index_cast %80 : i32 to index
    %c0_36 = arith.constant 0 : index
    %82 = vector.load %arg19[%81, %c0_36] : memref<56x128xf32, #tpu.memory_space<vmem>>, vector<1x128xf32>
    %c10 = arith.constant 10 : index
    %c0_37 = arith.constant 0 : index
    %83 = vector.load %arg21[%c10, %c0_37] : memref<128x128xf32, #tpu.memory_space<vmem>>, vector<1x128xf32>
    tpu.vector_store %arg21[%c10, %c0_37], %82 {strides = array<i32>} : memref<128x128xf32, #tpu.memory_space<vmem>>, vector<1x128xf32>,
    %c11_i32 = arith.constant 11 : i32
    %84 = arith.addi %17, %c11_i32 : i32
    %85 = arith.index_cast %84 : i32 to index
    %86 = memref.load %arg1[%85] : memref<384xi32, #tpu.memory_space<smem>>
    %87 = arith.index_cast %86 : i32 to index
    %c0_38 = arith.constant 0 : index
    %88 = vector.load %arg19[%87, %c0_38] : memref<56x128xf32, #tpu.memory_space<vmem>>, vector<1x128xf32>
    %c11 = arith.constant 11 : index
    %c0_39 = arith.constant 0 : index
    %89 = vector.load %arg21[%c11, %c0_39] : memref<128x128xf32, #tpu.memory_space<vmem>>, vector<1x128xf32>
    tpu.vector_store %arg21[%c11, %c0_39], %88 {strides = array<i32>} : memref<128x128xf32, #tpu.memory_space<vmem>>, vector<1x128xf32>,
    %c12_i32 = arith.constant 12 : i32
    %90 = arith.addi %17, %c12_i32 : i32
    %91 = arith.index_cast %90 : i32 to index
    %92 = memref.load %arg1[%91] : memref<384xi32, #tpu.memory_space<smem>>
    %93 = arith.index_cast %92 : i32 to index
    %c0_40 = arith.constant 0 : index
    %94 = vector.load %arg19[%93, %c0_40] : memref<56x128xf32, #tpu.memory_space<vmem>>, vector<1x128xf32>
    %c12 = arith.constant 12 : index
    %c0_41 = arith.constant 0 : index
    %95 = vector.load %arg21[%c12, %c0_41] : memref<128x128xf32, #tpu.memory_space<vmem>>, vector<1x128xf32>
    tpu.vector_store %arg21[%c12, %c0_41], %94 {strides = array<i32>} : memref<128x128xf32, #tpu.memory_space<vmem>>, vector<1x128xf32>,
    %c13_i32 = arith.constant 13 : i32
    %96 = arith.addi %17, %c13_i32 : i32
    %97 = arith.index_cast %96 : i32 to index
    %98 = memref.load %arg1[%97] : memref<384xi32, #tpu.memory_space<smem>>
    %99 = arith.index_cast %98 : i32 to index
    %c0_42 = arith.constant 0 : index
    %100 = vector.load %arg19[%99, %c0_42] : memref<56x128xf32, #tpu.memory_space<vmem>>, vector<1x128xf32>
    %c13 = arith.constant 13 : index
    %c0_43 = arith.constant 0 : index
    %101 = vector.load %arg21[%c13, %c0_43] : memref<128x128xf32, #tpu.memory_space<vmem>>, vector<1x128xf32>
    tpu.vector_store %arg21[%c13, %c0_43], %100 {strides = array<i32>} : memref<128x128xf32, #tpu.memory_space<vmem>>, vector<1x128xf32>,
    %c14_i32 = arith.constant 14 : i32
    %102 = arith.addi %17, %c14_i32 : i32
    %103 = arith.index_cast %102 : i32 to index
    %104 = memref.load %arg1[%103] : memref<384xi32, #tpu.memory_space<smem>>
    %105 = arith.index_cast %104 : i32 to index
    %c0_44 = arith.constant 0 : index
    %106 = vector.load %arg19[%105, %c0_44] : memref<56x128xf32, #tpu.memory_space<vmem>>, vector<1x128xf32>
    %c14 = arith.constant 14 : index
    %c0_45 = arith.constant 0 : index
    %107 = vector.load %arg21[%c14, %c0_45] : memref<128x128xf32, #tpu.memory_space<vmem>>, vector<1x128xf32>
    tpu.vector_store %arg21[%c14, %c0_45], %106 {strides = array<i32>} : memref<128x128xf32, #tpu.memory_space<vmem>>, vector<1x128xf32>,
    %c15_i32 = arith.constant 15 : i32
    %108 = arith.addi %17, %c15_i32 : i32
    %109 = arith.index_cast %108 : i32 to index
    %110 = memref.load %arg1[%109] : memref<384xi32, #tpu.memory_space<smem>>
    %111 = arith.index_cast %110 : i32 to index
    %c0_46 = arith.constant 0 : index
    %112 = vector.load %arg19[%111, %c0_46] : memref<56x128xf32, #tpu.memory_space<vmem>>, vector<1x128xf32>
    %c15 = arith.constant 15 : index
    %c0_47 = arith.constant 0 : index
    %113 = vector.load %arg21[%c15, %c0_47] : memref<128x128xf32, #tpu.memory_space<vmem>>, vector<1x128xf32>
    tpu.vector_store %arg21[%c15, %c0_47], %112 {strides = array<i32>} : memref<128x128xf32, #tpu.memory_space<vmem>>, vector<1x128xf32>,
    %c16_i32 = arith.constant 16 : i32
    %114 = arith.addi %17, %c16_i32 : i32
    %115 = arith.index_cast %114 : i32 to index
    %116 = memref.load %arg1[%115] : memref<384xi32, #tpu.memory_space<smem>>
    %117 = arith.index_cast %116 : i32 to index
    %c0_48 = arith.constant 0 : index
    %118 = vector.load %arg19[%117, %c0_48] : memref<56x128xf32, #tpu.memory_space<vmem>>, vector<1x128xf32>
    %c16 = arith.constant 16 : index
    %c0_49 = arith.constant 0 : index
    %119 = vector.load %arg21[%c16, %c0_49] : memref<128x128xf32, #tpu.memory_space<vmem>>, vector<1x128xf32>
    tpu.vector_store %arg21[%c16, %c0_49], %118 {strides = array<i32>} : memref<128x128xf32, #tpu.memory_space<vmem>>, vector<1x128xf32>,
    %c17_i32 = arith.constant 17 : i32
    %120 = arith.addi %17, %c17_i32 : i32
    %121 = arith.index_cast %120 : i32 to index
    %122 = memref.load %arg1[%121] : memref<384xi32, #tpu.memory_space<smem>>
    %123 = arith.index_cast %122 : i32 to index
    %c0_50 = arith.constant 0 : index
    %124 = vector.load %arg19[%123, %c0_50] : memref<56x128xf32, #tpu.memory_space<vmem>>, vector<1x128xf32>
    %c17 = arith.constant 17 : index
    %c0_51 = arith.constant 0 : index
    %125 = vector.load %arg21[%c17, %c0_51] : memref<128x128xf32, #tpu.memory_space<vmem>>, vector<1x128xf32>
    tpu.vector_store %arg21[%c17, %c0_51], %124 {strides = array<i32>} : memref<128x128xf32, #tpu.memory_space<vmem>>, vector<1x128xf32>,
    %c18_i32 = arith.constant 18 : i32
    %126 = arith.addi %17, %c18_i32 : i32
    %127 = arith.index_cast %126 : i32 to index
    %128 = memref.load %arg1[%127] : memref<384xi32, #tpu.memory_space<smem>>
    %129 = arith.index_cast %128 : i32 to index
    %c0_52 = arith.constant 0 : index
    %130 = vector.load %arg19[%129, %c0_52] : memref<56x128xf32, #tpu.memory_space<vmem>>, vector<1x128xf32>
    %c18 = arith.constant 18 : index
    %c0_53 = arith.constant 0 : index
    %131 = vector.load %arg21[%c18, %c0_53] : memref<128x128xf32, #tpu.memory_space<vmem>>, vector<1x128xf32>
    tpu.vector_store %arg21[%c18, %c0_53], %130 {strides = array<i32>} : memref<128x128xf32, #tpu.memory_space<vmem>>, vector<1x128xf32>,
    %c19_i32 = arith.constant 19 : i32
    %132 = arith.addi %17, %c19_i32 : i32
    %133 = arith.index_cast %132 : i32 to index
    %134 = memref.load %arg1[%133] : memref<384xi32, #tpu.memory_space<smem>>
    %135 = arith.index_cast %134 : i32 to index
    %c0_54 = arith.constant 0 : index
    %136 = vector.load %arg19[%135, %c0_54] : memref<56x128xf32, #tpu.memory_space<vmem>>, vector<1x128xf32>
    %c19 = arith.constant 19 : index
    %c0_55 = arith.constant 0 : index
    %137 = vector.load %arg21[%c19, %c0_55] : memref<128x128xf32, #tpu.memory_space<vmem>>, vector<1x128xf32>
    tpu.vector_store %arg21[%c19, %c0_55], %136 {strides = array<i32>} : memref<128x128xf32, #tpu.memory_space<vmem>>, vector<1x128xf32>,
    %c20_i32 = arith.constant 20 : i32
    %138 = arith.addi %17, %c20_i32 : i32
    %139 = arith.index_cast %138 : i32 to index
    %140 = memref.load %arg1[%139] : memref<384xi32, #tpu.memory_space<smem>>
    %141 = arith.index_cast %140 : i32 to index
    %c0_56 = arith.constant 0 : index
    %142 = vector.load %arg19[%141, %c0_56] : memref<56x128xf32, #tpu.memory_space<vmem>>, vector<1x128xf32>
    %c20 = arith.constant 20 : index
    %c0_57 = arith.constant 0 : index
    %143 = vector.load %arg21[%c20, %c0_57] : memref<128x128xf32, #tpu.memory_space<vmem>>, vector<1x128xf32>
    tpu.vector_store %arg21[%c20, %c0_57], %142 {strides = array<i32>} : memref<128x128xf32, #tpu.memory_space<vmem>>, vector<1x128xf32>,
    %c21_i32 = arith.constant 21 : i32
    %144 = arith.addi %17, %c21_i32 : i32
    %145 = arith.index_cast %144 : i32 to index
    %146 = memref.load %arg1[%145] : memref<384xi32, #tpu.memory_space<smem>>
    %147 = arith.index_cast %146 : i32 to index
    %c0_58 = arith.constant 0 : index
    %148 = vector.load %arg19[%147, %c0_58] : memref<56x128xf32, #tpu.memory_space<vmem>>, vector<1x128xf32>
    %c21 = arith.constant 21 : index
    %c0_59 = arith.constant 0 : index
    %149 = vector.load %arg21[%c21, %c0_59] : memref<128x128xf32, #tpu.memory_space<vmem>>, vector<1x128xf32>
    tpu.vector_store %arg21[%c21, %c0_59], %148 {strides = array<i32>} : memref<128x128xf32, #tpu.memory_space<vmem>>, vector<1x128xf32>,
    %c22_i32 = arith.constant 22 : i32
    %150 = arith.addi %17, %c22_i32 : i32
    %151 = arith.index_cast %150 : i32 to index
    %152 = memref.load %arg1[%151] : memref<384xi32, #tpu.memory_space<smem>>
    %153 = arith.index_cast %152 : i32 to index
    %c0_60 = arith.constant 0 : index
    %154 = vector.load %arg19[%153, %c0_60] : memref<56x128xf32, #tpu.memory_space<vmem>>, vector<1x128xf32>
    %c22 = arith.constant 22 : index
    %c0_61 = arith.constant 0 : index
    %155 = vector.load %arg21[%c22, %c0_61] : memref<128x128xf32, #tpu.memory_space<vmem>>, vector<1x128xf32>
    tpu.vector_store %arg21[%c22, %c0_61], %154 {strides = array<i32>} : memref<128x128xf32, #tpu.memory_space<vmem>>, vector<1x128xf32>,
    %c23_i32 = arith.constant 23 : i32
    %156 = arith.addi %17, %c23_i32 : i32
    %157 = arith.index_cast %156 : i32 to index
    %158 = memref.load %arg1[%157] : memref<384xi32, #tpu.memory_space<smem>>
    %159 = arith.index_cast %158 : i32 to index
    %c0_62 = arith.constant 0 : index
    %160 = vector.load %arg19[%159, %c0_62] : memref<56x128xf32, #tpu.memory_space<vmem>>, vector<1x128xf32>
    %c23 = arith.constant 23 : index
    %c0_63 = arith.constant 0 : index
    %161 = vector.load %arg21[%c23, %c0_63] : memref<128x128xf32, #tpu.memory_space<vmem>>, vector<1x128xf32>
    tpu.vector_store %arg21[%c23, %c0_63], %160 {strides = array<i32>} : memref<128x128xf32, #tpu.memory_space<vmem>>, vector<1x128xf32>,
    %c24_i32 = arith.constant 24 : i32
    %162 = arith.addi %17, %c24_i32 : i32
    %163 = arith.index_cast %162 : i32 to index
    %164 = memref.load %arg1[%163] : memref<384xi32, #tpu.memory_space<smem>>
    %165 = arith.index_cast %164 : i32 to index
    %c0_64 = arith.constant 0 : index
    %166 = vector.load %arg19[%165, %c0_64] : memref<56x128xf32, #tpu.memory_space<vmem>>, vector<1x128xf32>
    %c24 = arith.constant 24 : index
    %c0_65 = arith.constant 0 : index
    %167 = vector.load %arg21[%c24, %c0_65] : memref<128x128xf32, #tpu.memory_space<vmem>>, vector<1x128xf32>
    tpu.vector_store %arg21[%c24, %c0_65], %166 {strides = array<i32>} : memref<128x128xf32, #tpu.memory_space<vmem>>, vector<1x128xf32>,
    %c25_i32 = arith.constant 25 : i32
    %168 = arith.addi %17, %c25_i32 : i32
    %169 = arith.index_cast %168 : i32 to index
    %170 = memref.load %arg1[%169] : memref<384xi32, #tpu.memory_space<smem>>
    %171 = arith.index_cast %170 : i32 to index
    %c0_66 = arith.constant 0 : index
    %172 = vector.load %arg19[%171, %c0_66] : memref<56x128xf32, #tpu.memory_space<vmem>>, vector<1x128xf32>
    %c25 = arith.constant 25 : index
    %c0_67 = arith.constant 0 : index
    %173 = vector.load %arg21[%c25, %c0_67] : memref<128x128xf32, #tpu.memory_space<vmem>>, vector<1x128xf32>
    tpu.vector_store %arg21[%c25, %c0_67], %172 {strides = array<i32>} : memref<128x128xf32, #tpu.memory_space<vmem>>, vector<1x128xf32>,
    %c26_i32 = arith.constant 26 : i32
    %174 = arith.addi %17, %c26_i32 : i32
    %175 = arith.index_cast %174 : i32 to index
    %176 = memref.load %arg1[%175] : memref<384xi32, #tpu.memory_space<smem>>
    %177 = arith.index_cast %176 : i32 to index
    %c0_68 = arith.constant 0 : index
    %178 = vector.load %arg19[%177, %c0_68] : memref<56x128xf32, #tpu.memory_space<vmem>>, vector<1x128xf32>
    %c26 = arith.constant 26 : index
    %c0_69 = arith.constant 0 : index
    %179 = vector.load %arg21[%c26, %c0_69] : memref<128x128xf32, #tpu.memory_space<vmem>>, vector<1x128xf32>
    tpu.vector_store %arg21[%c26, %c0_69], %178 {strides = array<i32>} : memref<128x128xf32, #tpu.memory_space<vmem>>, vector<1x128xf32>,
    %c27_i32 = arith.constant 27 : i32
    %180 = arith.addi %17, %c27_i32 : i32
    %181 = arith.index_cast %180 : i32 to index
    %182 = memref.load %arg1[%181] : memref<384xi32, #tpu.memory_space<smem>>
    %183 = arith.index_cast %182 : i32 to index
    %c0_70 = arith.constant 0 : index
    %184 = vector.load %arg19[%183, %c0_70] : memref<56x128xf32, #tpu.memory_space<vmem>>, vector<1x128xf32>
    %c27 = arith.constant 27 : index
    %c0_71 = arith.constant 0 : index
    %185 = vector.load %arg21[%c27, %c0_71] : memref<128x128xf32, #tpu.memory_space<vmem>>, vector<1x128xf32>
    tpu.vector_store %arg21[%c27, %c0_71], %184 {strides = array<i32>} : memref<128x128xf32, #tpu.memory_space<vmem>>, vector<1x128xf32>,
    %c28_i32 = arith.constant 28 : i32
    %186 = arith.addi %17, %c28_i32 : i32
    %187 = arith.index_cast %186 : i32 to index
    %188 = memref.load %arg1[%187] : memref<384xi32, #tpu.memory_space<smem>>
    %189 = arith.index_cast %188 : i32 to index
    %c0_72 = arith.constant 0 : index
    %190 = vector.load %arg19[%189, %c0_72] : memref<56x128xf32, #tpu.memory_space<vmem>>, vector<1x128xf32>
    %c28 = arith.constant 28 : index
    %c0_73 = arith.constant 0 : index
    %191 = vector.load %arg21[%c28, %c0_73] : memref<128x128xf32, #tpu.memory_space<vmem>>, vector<1x128xf32>
    tpu.vector_store %arg21[%c28, %c0_73], %190 {strides = array<i32>} : memref<128x128xf32, #tpu.memory_space<vmem>>, vector<1x128xf32>,
    %c29_i32 = arith.constant 29 : i32
    %192 = arith.addi %17, %c29_i32 : i32
    %193 = arith.index_cast %192 : i32 to index
    %194 = memref.load %arg1[%193] : memref<384xi32, #tpu.memory_space<smem>>
    %195 = arith.index_cast %194 : i32 to index
    %c0_74 = arith.constant 0 : index
    %196 = vector.load %arg19[%195, %c0_74] : memref<56x128xf32, #tpu.memory_space<vmem>>, vector<1x128xf32>
    %c29 = arith.constant 29 : index
    %c0_75 = arith.constant 0 : index
    %197 = vector.load %arg21[%c29, %c0_75] : memref<128x128xf32, #tpu.memory_space<vmem>>, vector<1x128xf32>
    tpu.vector_store %arg21[%c29, %c0_75], %196 {strides = array<i32>} : memref<128x128xf32, #tpu.memory_space<vmem>>, vector<1x128xf32>,
    %c30_i32 = arith.constant 30 : i32
    %198 = arith.addi %17, %c30_i32 : i32
    %199 = arith.index_cast %198 : i32 to index
    %200 = memref.load %arg1[%199] : memref<384xi32, #tpu.memory_space<smem>>
    %201 = arith.index_cast %200 : i32 to index
    %c0_76 = arith.constant 0 : index
    %202 = vector.load %arg19[%201, %c0_76] : memref<56x128xf32, #tpu.memory_space<vmem>>, vector<1x128xf32>
    %c30 = arith.constant 30 : index
    %c0_77 = arith.constant 0 : index
    %203 = vector.load %arg21[%c30, %c0_77] : memref<128x128xf32, #tpu.memory_space<vmem>>, vector<1x128xf32>
    tpu.vector_store %arg21[%c30, %c0_77], %202 {strides = array<i32>} : memref<128x128xf32, #tpu.memory_space<vmem>>, vector<1x128xf32>,
    %c31_i32 = arith.constant 31 : i32
    %204 = arith.addi %17, %c31_i32 : i32
    %205 = arith.index_cast %204 : i32 to index
    %206 = memref.load %arg1[%205] : memref<384xi32, #tpu.memory_space<smem>>
    %207 = arith.index_cast %206 : i32 to index
    %c0_78 = arith.constant 0 : index
    %208 = vector.load %arg19[%207, %c0_78] : memref<56x128xf32, #tpu.memory_space<vmem>>, vector<1x128xf32>
    %c31 = arith.constant 31 : index
    %c0_79 = arith.constant 0 : index
    %209 = vector.load %arg21[%c31, %c0_79] : memref<128x128xf32, #tpu.memory_space<vmem>>, vector<1x128xf32>
    tpu.vector_store %arg21[%c31, %c0_79], %208 {strides = array<i32>} : memref<128x128xf32, #tpu.memory_space<vmem>>, vector<1x128xf32>,
    %c32_i32 = arith.constant 32 : i32
    %210 = arith.addi %17, %c32_i32 : i32
    %211 = arith.index_cast %210 : i32 to index
    %212 = memref.load %arg1[%211] : memref<384xi32, #tpu.memory_space<smem>>
    %213 = arith.index_cast %212 : i32 to index
    %c0_80 = arith.constant 0 : index
    %214 = vector.load %arg19[%213, %c0_80] : memref<56x128xf32, #tpu.memory_space<vmem>>, vector<1x128xf32>
    %c32 = arith.constant 32 : index
    %c0_81 = arith.constant 0 : index
    %215 = vector.load %arg21[%c32, %c0_81] : memref<128x128xf32, #tpu.memory_space<vmem>>, vector<1x128xf32>
    tpu.vector_store %arg21[%c32, %c0_81], %214 {strides = array<i32>} : memref<128x128xf32, #tpu.memory_space<vmem>>, vector<1x128xf32>,
    %c33_i32 = arith.constant 33 : i32
    %216 = arith.addi %17, %c33_i32 : i32
    %217 = arith.index_cast %216 : i32 to index
    %218 = memref.load %arg1[%217] : memref<384xi32, #tpu.memory_space<smem>>
    %219 = arith.index_cast %218 : i32 to index
    %c0_82 = arith.constant 0 : index
    %220 = vector.load %arg19[%219, %c0_82] : memref<56x128xf32, #tpu.memory_space<vmem>>, vector<1x128xf32>
    %c33 = arith.constant 33 : index
    %c0_83 = arith.constant 0 : index
    %221 = vector.load %arg21[%c33, %c0_83] : memref<128x128xf32, #tpu.memory_space<vmem>>, vector<1x128xf32>
    tpu.vector_store %arg21[%c33, %c0_83], %220 {strides = array<i32>} : memref<128x128xf32, #tpu.memory_space<vmem>>, vector<1x128xf32>,
    %c34_i32 = arith.constant 34 : i32
    %222 = arith.addi %17, %c34_i32 : i32
    %223 = arith.index_cast %222 : i32 to index
    %224 = memref.load %arg1[%223] : memref<384xi32, #tpu.memory_space<smem>>
    %225 = arith.index_cast %224 : i32 to index
    %c0_84 = arith.constant 0 : index
    %226 = vector.load %arg19[%225, %c0_84] : memref<56x128xf32, #tpu.memory_space<vmem>>, vector<1x128xf32>
    %c34 = arith.constant 34 : index
    %c0_85 = arith.constant 0 : index
    %227 = vector.load %arg21[%c34, %c0_85] : memref<128x128xf32, #tpu.memory_space<vmem>>, vector<1x128xf32>
    tpu.vector_store %arg21[%c34, %c0_85], %226 {strides = array<i32>} : memref<128x128xf32, #tpu.memory_space<vmem>>, vector<1x128xf32>,
    %c35_i32 = arith.constant 35 : i32
    %228 = arith.addi %17, %c35_i32 : i32
    %229 = arith.index_cast %228 : i32 to index
    %230 = memref.load %arg1[%229] : memref<384xi32, #tpu.memory_space<smem>>
    %231 = arith.index_cast %230 : i32 to index
    %c0_86 = arith.constant 0 : index
    %232 = vector.load %arg19[%231, %c0_86] : memref<56x128xf32, #tpu.memory_space<vmem>>, vector<1x128xf32>
    %c35 = arith.constant 35 : index
    %c0_87 = arith.constant 0 : index
    %233 = vector.load %arg21[%c35, %c0_87] : memref<128x128xf32, #tpu.memory_space<vmem>>, vector<1x128xf32>
    tpu.vector_store %arg21[%c35, %c0_87], %232 {strides = array<i32>} : memref<128x128xf32, #tpu.memory_space<vmem>>, vector<1x128xf32>,
    %c36_i32 = arith.constant 36 : i32
    %234 = arith.addi %17, %c36_i32 : i32
    %235 = arith.index_cast %234 : i32 to index
    %236 = memref.load %arg1[%235] : memref<384xi32, #tpu.memory_space<smem>>
    %237 = arith.index_cast %236 : i32 to index
    %c0_88 = arith.constant 0 : index
    %238 = vector.load %arg19[%237, %c0_88] : memref<56x128xf32, #tpu.memory_space<vmem>>, vector<1x128xf32>
    %c36 = arith.constant 36 : index
    %c0_89 = arith.constant 0 : index
    %239 = vector.load %arg21[%c36, %c0_89] : memref<128x128xf32, #tpu.memory_space<vmem>>, vector<1x128xf32>
    tpu.vector_store %arg21[%c36, %c0_89], %238 {strides = array<i32>} : memref<128x128xf32, #tpu.memory_space<vmem>>, vector<1x128xf32>,
    %c37_i32 = arith.constant 37 : i32
    %240 = arith.addi %17, %c37_i32 : i32
    %241 = arith.index_cast %240 : i32 to index
    %242 = memref.load %arg1[%241] : memref<384xi32, #tpu.memory_space<smem>>
    %243 = arith.index_cast %242 : i32 to index
    %c0_90 = arith.constant 0 : index
    %244 = vector.load %arg19[%243, %c0_90] : memref<56x128xf32, #tpu.memory_space<vmem>>, vector<1x128xf32>
    %c37 = arith.constant 37 : index
    %c0_91 = arith.constant 0 : index
    %245 = vector.load %arg21[%c37, %c0_91] : memref<128x128xf32, #tpu.memory_space<vmem>>, vector<1x128xf32>
    tpu.vector_store %arg21[%c37, %c0_91], %244 {strides = array<i32>} : memref<128x128xf32, #tpu.memory_space<vmem>>, vector<1x128xf32>,
    %c38_i32 = arith.constant 38 : i32
    %246 = arith.addi %17, %c38_i32 : i32
    %247 = arith.index_cast %246 : i32 to index
    %248 = memref.load %arg1[%247] : memref<384xi32, #tpu.memory_space<smem>>
    %249 = arith.index_cast %248 : i32 to index
    %c0_92 = arith.constant 0 : index
    %250 = vector.load %arg19[%249, %c0_92] : memref<56x128xf32, #tpu.memory_space<vmem>>, vector<1x128xf32>
    %c38 = arith.constant 38 : index
    %c0_93 = arith.constant 0 : index
    %251 = vector.load %arg21[%c38, %c0_93] : memref<128x128xf32, #tpu.memory_space<vmem>>, vector<1x128xf32>
    tpu.vector_store %arg21[%c38, %c0_93], %250 {strides = array<i32>} : memref<128x128xf32, #tpu.memory_space<vmem>>, vector<1x128xf32>,
    %c39_i32 = arith.constant 39 : i32
    %252 = arith.addi %17, %c39_i32 : i32
    %253 = arith.index_cast %252 : i32 to index
    %254 = memref.load %arg1[%253] : memref<384xi32, #tpu.memory_space<smem>>
    %255 = arith.index_cast %254 : i32 to index
    %c0_94 = arith.constant 0 : index
    %256 = vector.load %arg19[%255, %c0_94] : memref<56x128xf32, #tpu.memory_space<vmem>>, vector<1x128xf32>
    %c39 = arith.constant 39 : index
    %c0_95 = arith.constant 0 : index
    %257 = vector.load %arg21[%c39, %c0_95] : memref<128x128xf32, #tpu.memory_space<vmem>>, vector<1x128xf32>
    tpu.vector_store %arg21[%c39, %c0_95], %256 {strides = array<i32>} : memref<128x128xf32, #tpu.memory_space<vmem>>, vector<1x128xf32>,
    %c40_i32 = arith.constant 40 : i32
    %258 = arith.addi %17, %c40_i32 : i32
    %259 = arith.index_cast %258 : i32 to index
    %260 = memref.load %arg1[%259] : memref<384xi32, #tpu.memory_space<smem>>
    %261 = arith.index_cast %260 : i32 to index
    %c0_96 = arith.constant 0 : index
    %262 = vector.load %arg19[%261, %c0_96] : memref<56x128xf32, #tpu.memory_space<vmem>>, vector<1x128xf32>
    %c40 = arith.constant 40 : index
    %c0_97 = arith.constant 0 : index
    %263 = vector.load %arg21[%c40, %c0_97] : memref<128x128xf32, #tpu.memory_space<vmem>>, vector<1x128xf32>
    tpu.vector_store %arg21[%c40, %c0_97], %262 {strides = array<i32>} : memref<128x128xf32, #tpu.memory_space<vmem>>, vector<1x128xf32>,
    %c41_i32 = arith.constant 41 : i32
    %264 = arith.addi %17, %c41_i32 : i32
    %265 = arith.index_cast %264 : i32 to index
    %266 = memref.load %arg1[%265] : memref<384xi32, #tpu.memory_space<smem>>
    %267 = arith.index_cast %266 : i32 to index
    %c0_98 = arith.constant 0 : index
    %268 = vector.load %arg19[%267, %c0_98] : memref<56x128xf32, #tpu.memory_space<vmem>>, vector<1x128xf32>
    %c41 = arith.constant 41 : index
    %c0_99 = arith.constant 0 : index
    %269 = vector.load %arg21[%c41, %c0_99] : memref<128x128xf32, #tpu.memory_space<vmem>>, vector<1x128xf32>
    tpu.vector_store %arg21[%c41, %c0_99], %268 {strides = array<i32>} : memref<128x128xf32, #tpu.memory_space<vmem>>, vector<1x128xf32>,
    %c42_i32 = arith.constant 42 : i32
    %270 = arith.addi %17, %c42_i32 : i32
    %271 = arith.index_cast %270 : i32 to index
    %272 = memref.load %arg1[%271] : memref<384xi32, #tpu.memory_space<smem>>
    %273 = arith.index_cast %272 : i32 to index
    %c0_100 = arith.constant 0 : index
    %274 = vector.load %arg19[%273, %c0_100] : memref<56x128xf32, #tpu.memory_space<vmem>>, vector<1x128xf32>
    %c42 = arith.constant 42 : index
    %c0_101 = arith.constant 0 : index
    %275 = vector.load %arg21[%c42, %c0_101] : memref<128x128xf32, #tpu.memory_space<vmem>>, vector<1x128xf32>
    tpu.vector_store %arg21[%c42, %c0_101], %274 {strides = array<i32>} : memref<128x128xf32, #tpu.memory_space<vmem>>, vector<1x128xf32>,
    %c43_i32 = arith.constant 43 : i32
    %276 = arith.addi %17, %c43_i32 : i32
    %277 = arith.index_cast %276 : i32 to index
    %278 = memref.load %arg1[%277] : memref<384xi32, #tpu.memory_space<smem>>
    %279 = arith.index_cast %278 : i32 to index
    %c0_102 = arith.constant 0 : index
    %280 = vector.load %arg19[%279, %c0_102] : memref<56x128xf32, #tpu.memory_space<vmem>>, vector<1x128xf32>
    %c43 = arith.constant 43 : index
    %c0_103 = arith.constant 0 : index
    %281 = vector.load %arg21[%c43, %c0_103] : memref<128x128xf32, #tpu.memory_space<vmem>>, vector<1x128xf32>
    tpu.vector_store %arg21[%c43, %c0_103], %280 {strides = array<i32>} : memref<128x128xf32, #tpu.memory_space<vmem>>, vector<1x128xf32>,
    %c44_i32 = arith.constant 44 : i32
    %282 = arith.addi %17, %c44_i32 : i32
    %283 = arith.index_cast %282 : i32 to index
    %284 = memref.load %arg1[%283] : memref<384xi32, #tpu.memory_space<smem>>
    %285 = arith.index_cast %284 : i32 to index
    %c0_104 = arith.constant 0 : index
    %286 = vector.load %arg19[%285, %c0_104] : memref<56x128xf32, #tpu.memory_space<vmem>>, vector<1x128xf32>
    %c44 = arith.constant 44 : index
    %c0_105 = arith.constant 0 : index
    %287 = vector.load %arg21[%c44, %c0_105] : memref<128x128xf32, #tpu.memory_space<vmem>>, vector<1x128xf32>
    tpu.vector_store %arg21[%c44, %c0_105], %286 {strides = array<i32>} : memref<128x128xf32, #tpu.memory_space<vmem>>, vector<1x128xf32>,
    %c45_i32 = arith.constant 45 : i32
    %288 = arith.addi %17, %c45_i32 : i32
    %289 = arith.index_cast %288 : i32 to index
    %290 = memref.load %arg1[%289] : memref<384xi32, #tpu.memory_space<smem>>
    %291 = arith.index_cast %290 : i32 to index
    %c0_106 = arith.constant 0 : index
    %292 = vector.load %arg19[%291, %c0_106] : memref<56x128xf32, #tpu.memory_space<vmem>>, vector<1x128xf32>
    %c45 = arith.constant 45 : index
    %c0_107 = arith.constant 0 : index
    %293 = vector.load %arg21[%c45, %c0_107] : memref<128x128xf32, #tpu.memory_space<vmem>>, vector<1x128xf32>
    tpu.vector_store %arg21[%c45, %c0_107], %292 {strides = array<i32>} : memref<128x128xf32, #tpu.memory_space<vmem>>, vector<1x128xf32>,
    %c46_i32 = arith.constant 46 : i32
    %294 = arith.addi %17, %c46_i32 : i32
    %295 = arith.index_cast %294 : i32 to index
    %296 = memref.load %arg1[%295] : memref<384xi32, #tpu.memory_space<smem>>
    %297 = arith.index_cast %296 : i32 to index
    %c0_108 = arith.constant 0 : index
    %298 = vector.load %arg19[%297, %c0_108] : memref<56x128xf32, #tpu.memory_space<vmem>>, vector<1x128xf32>
    %c46 = arith.constant 46 : index
    %c0_109 = arith.constant 0 : index
    %299 = vector.load %arg21[%c46, %c0_109] : memref<128x128xf32, #tpu.memory_space<vmem>>, vector<1x128xf32>
    tpu.vector_store %arg21[%c46, %c0_109], %298 {strides = array<i32>} : memref<128x128xf32, #tpu.memory_space<vmem>>, vector<1x128xf32>,
    %c47_i32 = arith.constant 47 : i32
    %300 = arith.addi %17, %c47_i32 : i32
    %301 = arith.index_cast %300 : i32 to index
    %302 = memref.load %arg1[%301] : memref<384xi32, #tpu.memory_space<smem>>
    %303 = arith.index_cast %302 : i32 to index
    %c0_110 = arith.constant 0 : index
    %304 = vector.load %arg19[%303, %c0_110] : memref<56x128xf32, #tpu.memory_space<vmem>>, vector<1x128xf32>
    %c47 = arith.constant 47 : index
    %c0_111 = arith.constant 0 : index
    %305 = vector.load %arg21[%c47, %c0_111] : memref<128x128xf32, #tpu.memory_space<vmem>>, vector<1x128xf32>
    tpu.vector_store %arg21[%c47, %c0_111], %304 {strides = array<i32>} : memref<128x128xf32, #tpu.memory_space<vmem>>, vector<1x128xf32>,
    %c48_i32 = arith.constant 48 : i32
    %306 = arith.addi %17, %c48_i32 : i32
    %307 = arith.index_cast %306 : i32 to index
    %308 = memref.load %arg1[%307] : memref<384xi32, #tpu.memory_space<smem>>
    %309 = arith.index_cast %308 : i32 to index
    %c0_112 = arith.constant 0 : index
    %310 = vector.load %arg19[%309, %c0_112] : memref<56x128xf32, #tpu.memory_space<vmem>>, vector<1x128xf32>
    %c48 = arith.constant 48 : index
    %c0_113 = arith.constant 0 : index
    %311 = vector.load %arg21[%c48, %c0_113] : memref<128x128xf32, #tpu.memory_space<vmem>>, vector<1x128xf32>
    tpu.vector_store %arg21[%c48, %c0_113], %310 {strides = array<i32>} : memref<128x128xf32, #tpu.memory_space<vmem>>, vector<1x128xf32>,
    %c49_i32 = arith.constant 49 : i32
    %312 = arith.addi %17, %c49_i32 : i32
    %313 = arith.index_cast %312 : i32 to index
    %314 = memref.load %arg1[%313] : memref<384xi32, #tpu.memory_space<smem>>
    %315 = arith.index_cast %314 : i32 to index
    %c0_114 = arith.constant 0 : index
    %316 = vector.load %arg19[%315, %c0_114] : memref<56x128xf32, #tpu.memory_space<vmem>>, vector<1x128xf32>
    %c49 = arith.constant 49 : index
    %c0_115 = arith.constant 0 : index
    %317 = vector.load %arg21[%c49, %c0_115] : memref<128x128xf32, #tpu.memory_space<vmem>>, vector<1x128xf32>
    tpu.vector_store %arg21[%c49, %c0_115], %316 {strides = array<i32>} : memref<128x128xf32, #tpu.memory_space<vmem>>, vector<1x128xf32>,
    %c50_i32 = arith.constant 50 : i32
    %318 = arith.addi %17, %c50_i32 : i32
    %319 = arith.index_cast %318 : i32 to index
    %320 = memref.load %arg1[%319] : memref<384xi32, #tpu.memory_space<smem>>
    %321 = arith.index_cast %320 : i32 to index
    %c0_116 = arith.constant 0 : index
    %322 = vector.load %arg19[%321, %c0_116] : memref<56x128xf32, #tpu.memory_space<vmem>>, vector<1x128xf32>
    %c50 = arith.constant 50 : index
    %c0_117 = arith.constant 0 : index
    %323 = vector.load %arg21[%c50, %c0_117] : memref<128x128xf32, #tpu.memory_space<vmem>>, vector<1x128xf32>
    tpu.vector_store %arg21[%c50, %c0_117], %322 {strides = array<i32>} : memref<128x128xf32, #tpu.memory_space<vmem>>, vector<1x128xf32>,
    %c51_i32 = arith.constant 51 : i32
    %324 = arith.addi %17, %c51_i32 : i32
    %325 = arith.index_cast %324 : i32 to index
    %326 = memref.load %arg1[%325] : memref<384xi32, #tpu.memory_space<smem>>
    %327 = arith.index_cast %326 : i32 to index
    %c0_118 = arith.constant 0 : index
    %328 = vector.load %arg19[%327, %c0_118] : memref<56x128xf32, #tpu.memory_space<vmem>>, vector<1x128xf32>
    %c51 = arith.constant 51 : index
    %c0_119 = arith.constant 0 : index
    %329 = vector.load %arg21[%c51, %c0_119] : memref<128x128xf32, #tpu.memory_space<vmem>>, vector<1x128xf32>
    tpu.vector_store %arg21[%c51, %c0_119], %328 {strides = array<i32>} : memref<128x128xf32, #tpu.memory_space<vmem>>, vector<1x128xf32>,
    %c52_i32 = arith.constant 52 : i32
    %330 = arith.addi %17, %c52_i32 : i32
    %331 = arith.index_cast %330 : i32 to index
    %332 = memref.load %arg1[%331] : memref<384xi32, #tpu.memory_space<smem>>
    %333 = arith.index_cast %332 : i32 to index
    %c0_120 = arith.constant 0 : index
    %334 = vector.load %arg19[%333, %c0_120] : memref<56x128xf32, #tpu.memory_space<vmem>>, vector<1x128xf32>
    %c52 = arith.constant 52 : index
    %c0_121 = arith.constant 0 : index
    %335 = vector.load %arg21[%c52, %c0_121] : memref<128x128xf32, #tpu.memory_space<vmem>>, vector<1x128xf32>
    tpu.vector_store %arg21[%c52, %c0_121], %334 {strides = array<i32>} : memref<128x128xf32, #tpu.memory_space<vmem>>, vector<1x128xf32>,
    %c53_i32 = arith.constant 53 : i32
    %336 = arith.addi %17, %c53_i32 : i32
    %337 = arith.index_cast %336 : i32 to index
    %338 = memref.load %arg1[%337] : memref<384xi32, #tpu.memory_space<smem>>
    %339 = arith.index_cast %338 : i32 to index
    %c0_122 = arith.constant 0 : index
    %340 = vector.load %arg19[%339, %c0_122] : memref<56x128xf32, #tpu.memory_space<vmem>>, vector<1x128xf32>
    %c53 = arith.constant 53 : index
    %c0_123 = arith.constant 0 : index
    %341 = vector.load %arg21[%c53, %c0_123] : memref<128x128xf32, #tpu.memory_space<vmem>>, vector<1x128xf32>
    tpu.vector_store %arg21[%c53, %c0_123], %340 {strides = array<i32>} : memref<128x128xf32, #tpu.memory_space<vmem>>, vector<1x128xf32>,
    %c54_i32 = arith.constant 54 : i32
    %342 = arith.addi %17, %c54_i32 : i32
    %343 = arith.index_cast %342 : i32 to index
    %344 = memref.load %arg1[%343] : memref<384xi32, #tpu.memory_space<smem>>
    %345 = arith.index_cast %344 : i32 to index
    %c0_124 = arith.constant 0 : index
    %346 = vector.load %arg19[%345, %c0_124] : memref<56x128xf32, #tpu.memory_space<vmem>>, vector<1x128xf32>
    %c54 = arith.constant 54 : index
    %c0_125 = arith.constant 0 : index
    %347 = vector.load %arg21[%c54, %c0_125] : memref<128x128xf32, #tpu.memory_space<vmem>>, vector<1x128xf32>
    tpu.vector_store %arg21[%c54, %c0_125], %346 {strides = array<i32>} : memref<128x128xf32, #tpu.memory_space<vmem>>, vector<1x128xf32>,
    %c55_i32 = arith.constant 55 : i32
    %348 = arith.addi %17, %c55_i32 : i32
    %349 = arith.index_cast %348 : i32 to index
    %350 = memref.load %arg1[%349] : memref<384xi32, #tpu.memory_space<smem>>
    %351 = arith.index_cast %350 : i32 to index
    %c0_126 = arith.constant 0 : index
    %352 = vector.load %arg19[%351, %c0_126] : memref<56x128xf32, #tpu.memory_space<vmem>>, vector<1x128xf32>
    %c55 = arith.constant 55 : index
    %c0_127 = arith.constant 0 : index
    %353 = vector.load %arg21[%c55, %c0_127] : memref<128x128xf32, #tpu.memory_space<vmem>>, vector<1x128xf32>
    tpu.vector_store %arg21[%c55, %c0_127], %352 {strides = array<i32>} : memref<128x128xf32, #tpu.memory_space<vmem>>, vector<1x128xf32>,
    %c56_i32 = arith.constant 56 : i32
    %354 = arith.addi %17, %c56_i32 : i32
    %355 = arith.index_cast %354 : i32 to index
    %356 = memref.load %arg1[%355] : memref<384xi32, #tpu.memory_space<smem>>
    %357 = arith.index_cast %356 : i32 to index
    %c0_128 = arith.constant 0 : index
    %358 = vector.load %arg19[%357, %c0_128] : memref<56x128xf32, #tpu.memory_space<vmem>>, vector<1x128xf32>
    %c56 = arith.constant 56 : index
    %c0_129 = arith.constant 0 : index
    %359 = vector.load %arg21[%c56, %c0_129] : memref<128x128xf32, #tpu.memory_space<vmem>>, vector<1x128xf32>
    tpu.vector_store %arg21[%c56, %c0_129], %358 {strides = array<i32>} : memref<128x128xf32, #tpu.memory_space<vmem>>, vector<1x128xf32>,
    %c57_i32 = arith.constant 57 : i32
    %360 = arith.addi %17, %c57_i32 : i32
    %361 = arith.index_cast %360 : i32 to index
    %362 = memref.load %arg1[%361] : memref<384xi32, #tpu.memory_space<smem>>
    %363 = arith.index_cast %362 : i32 to index
    %c0_130 = arith.constant 0 : index
    %364 = vector.load %arg19[%363, %c0_130] : memref<56x128xf32, #tpu.memory_space<vmem>>, vector<1x128xf32>
    %c57 = arith.constant 57 : index
    %c0_131 = arith.constant 0 : index
    %365 = vector.load %arg21[%c57, %c0_131] : memref<128x128xf32, #tpu.memory_space<vmem>>, vector<1x128xf32>
    tpu.vector_store %arg21[%c57, %c0_131], %364 {strides = array<i32>} : memref<128x128xf32, #tpu.memory_space<vmem>>, vector<1x128xf32>,
    %c58_i32 = arith.constant 58 : i32
    %366 = arith.addi %17, %c58_i32 : i32
    %367 = arith.index_cast %366 : i32 to index
    %368 = memref.load %arg1[%367] : memref<384xi32, #tpu.memory_space<smem>>
    %369 = arith.index_cast %368 : i32 to index
    %c0_132 = arith.constant 0 : index
    %370 = vector.load %arg19[%369, %c0_132] : memref<56x128xf32, #tpu.memory_space<vmem>>, vector<1x128xf32>
    %c58 = arith.constant 58 : index
    %c0_133 = arith.constant 0 : index
    %371 = vector.load %arg21[%c58, %c0_133] : memref<128x128xf32, #tpu.memory_space<vmem>>, vector<1x128xf32>
    tpu.vector_store %arg21[%c58, %c0_133], %370 {strides = array<i32>} : memref<128x128xf32, #tpu.memory_space<vmem>>, vector<1x128xf32>,
    %c59_i32 = arith.constant 59 : i32
    %372 = arith.addi %17, %c59_i32 : i32
    %373 = arith.index_cast %372 : i32 to index
    %374 = memref.load %arg1[%373] : memref<384xi32, #tpu.memory_space<smem>>
    %375 = arith.index_cast %374 : i32 to index
    %c0_134 = arith.constant 0 : index
    %376 = vector.load %arg19[%375, %c0_134] : memref<56x128xf32, #tpu.memory_space<vmem>>, vector<1x128xf32>
    %c59 = arith.constant 59 : index
    %c0_135 = arith.constant 0 : index
    %377 = vector.load %arg21[%c59, %c0_135] : memref<128x128xf32, #tpu.memory_space<vmem>>, vector<1x128xf32>
    tpu.vector_store %arg21[%c59, %c0_135], %376 {strides = array<i32>} : memref<128x128xf32, #tpu.memory_space<vmem>>, vector<1x128xf32>,
    %c60_i32 = arith.constant 60 : i32
    %378 = arith.addi %17, %c60_i32 : i32
    %379 = arith.index_cast %378 : i32 to index
    %380 = memref.load %arg1[%379] : memref<384xi32, #tpu.memory_space<smem>>
    %381 = arith.index_cast %380 : i32 to index
    %c0_136 = arith.constant 0 : index
    %382 = vector.load %arg19[%381, %c0_136] : memref<56x128xf32, #tpu.memory_space<vmem>>, vector<1x128xf32>
    %c60 = arith.constant 60 : index
    %c0_137 = arith.constant 0 : index
    %383 = vector.load %arg21[%c60, %c0_137] : memref<128x128xf32, #tpu.memory_space<vmem>>, vector<1x128xf32>
    tpu.vector_store %arg21[%c60, %c0_137], %382 {strides = array<i32>} : memref<128x128xf32, #tpu.memory_space<vmem>>, vector<1x128xf32>,
    %c61_i32 = arith.constant 61 : i32
    %384 = arith.addi %17, %c61_i32 : i32
    %385 = arith.index_cast %384 : i32 to index
    %386 = memref.load %arg1[%385] : memref<384xi32, #tpu.memory_space<smem>>
    %387 = arith.index_cast %386 : i32 to index
    %c0_138 = arith.constant 0 : index
    %388 = vector.load %arg19[%387, %c0_138] : memref<56x128xf32, #tpu.memory_space<vmem>>, vector<1x128xf32>
    %c61 = arith.constant 61 : index
    %c0_139 = arith.constant 0 : index
    %389 = vector.load %arg21[%c61, %c0_139] : memref<128x128xf32, #tpu.memory_space<vmem>>, vector<1x128xf32>
    tpu.vector_store %arg21[%c61, %c0_139], %388 {strides = array<i32>} : memref<128x128xf32, #tpu.memory_space<vmem>>, vector<1x128xf32>,
    %c62_i32 = arith.constant 62 : i32
    %390 = arith.addi %17, %c62_i32 : i32
    %391 = arith.index_cast %390 : i32 to index
    %392 = memref.load %arg1[%391] : memref<384xi32, #tpu.memory_space<smem>>
    %393 = arith.index_cast %392 : i32 to index
    %c0_140 = arith.constant 0 : index
    %394 = vector.load %arg19[%393, %c0_140] : memref<56x128xf32, #tpu.memory_space<vmem>>, vector<1x128xf32>
    %c62 = arith.constant 62 : index
    %c0_141 = arith.constant 0 : index
    %395 = vector.load %arg21[%c62, %c0_141] : memref<128x128xf32, #tpu.memory_space<vmem>>, vector<1x128xf32>
    tpu.vector_store %arg21[%c62, %c0_141], %394 {strides = array<i32>} : memref<128x128xf32, #tpu.memory_space<vmem>>, vector<1x128xf32>,
    %c63_i32 = arith.constant 63 : i32
    %396 = arith.addi %17, %c63_i32 : i32
    %397 = arith.index_cast %396 : i32 to index
    %398 = memref.load %arg1[%397] : memref<384xi32, #tpu.memory_space<smem>>
    %399 = arith.index_cast %398 : i32 to index
    %c0_142 = arith.constant 0 : index
    %400 = vector.load %arg19[%399, %c0_142] : memref<56x128xf32, #tpu.memory_space<vmem>>, vector<1x128xf32>
    %c63 = arith.constant 63 : index
    %c0_143 = arith.constant 0 : index
    %401 = vector.load %arg21[%c63, %c0_143] : memref<128x128xf32, #tpu.memory_space<vmem>>, vector<1x128xf32>
    tpu.vector_store %arg21[%c63, %c0_143], %400 {strides = array<i32>} : memref<128x128xf32, #tpu.memory_space<vmem>>, vector<1x128xf32>,
    %c64_i32 = arith.constant 64 : i32
    %402 = arith.addi %17, %c64_i32 : i32
    %403 = arith.index_cast %402 : i32 to index
    %404 = memref.load %arg1[%403] : memref<384xi32, #tpu.memory_space<smem>>
    %405 = arith.index_cast %404 : i32 to index
    %c0_144 = arith.constant 0 : index
    %406 = vector.load %arg19[%405, %c0_144] : memref<56x128xf32, #tpu.memory_space<vmem>>, vector<1x128xf32>
    %c64 = arith.constant 64 : index
    %c0_145 = arith.constant 0 : index
    %407 = vector.load %arg21[%c64, %c0_145] : memref<128x128xf32, #tpu.memory_space<vmem>>, vector<1x128xf32>
    tpu.vector_store %arg21[%c64, %c0_145], %406 {strides = array<i32>} : memref<128x128xf32, #tpu.memory_space<vmem>>, vector<1x128xf32>,
    %c65_i32 = arith.constant 65 : i32
    %408 = arith.addi %17, %c65_i32 : i32
    %409 = arith.index_cast %408 : i32 to index
    %410 = memref.load %arg1[%409] : memref<384xi32, #tpu.memory_space<smem>>
    %411 = arith.index_cast %410 : i32 to index
    %c0_146 = arith.constant 0 : index
    %412 = vector.load %arg19[%411, %c0_146] : memref<56x128xf32, #tpu.memory_space<vmem>>, vector<1x128xf32>
    %c65 = arith.constant 65 : index
    %c0_147 = arith.constant 0 : index
    %413 = vector.load %arg21[%c65, %c0_147] : memref<128x128xf32, #tpu.memory_space<vmem>>, vector<1x128xf32>
    tpu.vector_store %arg21[%c65, %c0_147], %412 {strides = array<i32>} : memref<128x128xf32, #tpu.memory_space<vmem>>, vector<1x128xf32>,
    %c66_i32 = arith.constant 66 : i32
    %414 = arith.addi %17, %c66_i32 : i32
    %415 = arith.index_cast %414 : i32 to index
    %416 = memref.load %arg1[%415] : memref<384xi32, #tpu.memory_space<smem>>
    %417 = arith.index_cast %416 : i32 to index
    %c0_148 = arith.constant 0 : index
    %418 = vector.load %arg19[%417, %c0_148] : memref<56x128xf32, #tpu.memory_space<vmem>>, vector<1x128xf32>
    %c66 = arith.constant 66 : index
    %c0_149 = arith.constant 0 : index
    %419 = vector.load %arg21[%c66, %c0_149] : memref<128x128xf32, #tpu.memory_space<vmem>>, vector<1x128xf32>
    tpu.vector_store %arg21[%c66, %c0_149], %418 {strides = array<i32>} : memref<128x128xf32, #tpu.memory_space<vmem>>, vector<1x128xf32>,
    %c67_i32 = arith.constant 67 : i32
    %420 = arith.addi %17, %c67_i32 : i32
    %421 = arith.index_cast %420 : i32 to index
    %422 = memref.load %arg1[%421] : memref<384xi32, #tpu.memory_space<smem>>
    %423 = arith.index_cast %422 : i32 to index
    %c0_150 = arith.constant 0 : index
    %424 = vector.load %arg19[%423, %c0_150] : memref<56x128xf32, #tpu.memory_space<vmem>>, vector<1x128xf32>
    %c67 = arith.constant 67 : index
    %c0_151 = arith.constant 0 : index
    %425 = vector.load %arg21[%c67, %c0_151] : memref<128x128xf32, #tpu.memory_space<vmem>>, vector<1x128xf32>
    tpu.vector_store %arg21[%c67, %c0_151], %424 {strides = array<i32>} : memref<128x128xf32, #tpu.memory_space<vmem>>, vector<1x128xf32>,
    %c68_i32 = arith.constant 68 : i32
    %426 = arith.addi %17, %c68_i32 : i32
    %427 = arith.index_cast %426 : i32 to index
    %428 = memref.load %arg1[%427] : memref<384xi32, #tpu.memory_space<smem>>
    %429 = arith.index_cast %428 : i32 to index
    %c0_152 = arith.constant 0 : index
    %430 = vector.load %arg19[%429, %c0_152] : memref<56x128xf32, #tpu.memory_space<vmem>>, vector<1x128xf32>
    %c68 = arith.constant 68 : index
    %c0_153 = arith.constant 0 : index
    %431 = vector.load %arg21[%c68, %c0_153] : memref<128x128xf32, #tpu.memory_space<vmem>>, vector<1x128xf32>
    tpu.vector_store %arg21[%c68, %c0_153], %430 {strides = array<i32>} : memref<128x128xf32, #tpu.memory_space<vmem>>, vector<1x128xf32>,
    %c69_i32 = arith.constant 69 : i32
    %432 = arith.addi %17, %c69_i32 : i32
    %433 = arith.index_cast %432 : i32 to index
    %434 = memref.load %arg1[%433] : memref<384xi32, #tpu.memory_space<smem>>
    %435 = arith.index_cast %434 : i32 to index
    %c0_154 = arith.constant 0 : index
    %436 = vector.load %arg19[%435, %c0_154] : memref<56x128xf32, #tpu.memory_space<vmem>>, vector<1x128xf32>
    %c69 = arith.constant 69 : index
    %c0_155 = arith.constant 0 : index
    %437 = vector.load %arg21[%c69, %c0_155] : memref<128x128xf32, #tpu.memory_space<vmem>>, vector<1x128xf32>
    tpu.vector_store %arg21[%c69, %c0_155], %436 {strides = array<i32>} : memref<128x128xf32, #tpu.memory_space<vmem>>, vector<1x128xf32>,
    %c70_i32 = arith.constant 70 : i32
    %438 = arith.addi %17, %c70_i32 : i32
    %439 = arith.index_cast %438 : i32 to index
    %440 = memref.load %arg1[%439] : memref<384xi32, #tpu.memory_space<smem>>
    %441 = arith.index_cast %440 : i32 to index
    %c0_156 = arith.constant 0 : index
    %442 = vector.load %arg19[%441, %c0_156] : memref<56x128xf32, #tpu.memory_space<vmem>>, vector<1x128xf32>
    %c70 = arith.constant 70 : index
    %c0_157 = arith.constant 0 : index
    %443 = vector.load %arg21[%c70, %c0_157] : memref<128x128xf32, #tpu.memory_space<vmem>>, vector<1x128xf32>
    tpu.vector_store %arg21[%c70, %c0_157], %442 {strides = array<i32>} : memref<128x128xf32, #tpu.memory_space<vmem>>, vector<1x128xf32>,
    %c71_i32 = arith.constant 71 : i32
    %444 = arith.addi %17, %c71_i32 : i32
    %445 = arith.index_cast %444 : i32 to index
    %446 = memref.load %arg1[%445] : memref<384xi32, #tpu.memory_space<smem>>
    %447 = arith.index_cast %446 : i32 to index
    %c0_158 = arith.constant 0 : index
    %448 = vector.load %arg19[%447, %c0_158] : memref<56x128xf32, #tpu.memory_space<vmem>>, vector<1x128xf32>
    %c71 = arith.constant 71 : index
    %c0_159 = arith.constant 0 : index
    %449 = vector.load %arg21[%c71, %c0_159] : memref<128x128xf32, #tpu.memory_space<vmem>>, vector<1x128xf32>
    tpu.vector_store %arg21[%c71, %c0_159], %448 {strides = array<i32>} : memref<128x128xf32, #tpu.memory_space<vmem>>, vector<1x128xf32>,
    %c72_i32 = arith.constant 72 : i32
    %450 = arith.addi %17, %c72_i32 : i32
    %451 = arith.index_cast %450 : i32 to index
    %452 = memref.load %arg1[%451] : memref<384xi32, #tpu.memory_space<smem>>
    %453 = arith.index_cast %452 : i32 to index
    %c0_160 = arith.constant 0 : index
    %454 = vector.load %arg19[%453, %c0_160] : memref<56x128xf32, #tpu.memory_space<vmem>>, vector<1x128xf32>
    %c72 = arith.constant 72 : index
    %c0_161 = arith.constant 0 : index
    %455 = vector.load %arg21[%c72, %c0_161] : memref<128x128xf32, #tpu.memory_space<vmem>>, vector<1x128xf32>
    tpu.vector_store %arg21[%c72, %c0_161], %454 {strides = array<i32>} : memref<128x128xf32, #tpu.memory_space<vmem>>, vector<1x128xf32>,
    %c73_i32 = arith.constant 73 : i32
    %456 = arith.addi %17, %c73_i32 : i32
    %457 = arith.index_cast %456 : i32 to index
    %458 = memref.load %arg1[%457] : memref<384xi32, #tpu.memory_space<smem>>
    %459 = arith.index_cast %458 : i32 to index
    %c0_162 = arith.constant 0 : index
    %460 = vector.load %arg19[%459, %c0_162] : memref<56x128xf32, #tpu.memory_space<vmem>>, vector<1x128xf32>
    %c73 = arith.constant 73 : index
    %c0_163 = arith.constant 0 : index
    %461 = vector.load %arg21[%c73, %c0_163] : memref<128x128xf32, #tpu.memory_space<vmem>>, vector<1x128xf32>
    tpu.vector_store %arg21[%c73, %c0_163], %460 {strides = array<i32>} : memref<128x128xf32, #tpu.memory_space<vmem>>, vector<1x128xf32>,
    %c74_i32 = arith.constant 74 : i32
    %462 = arith.addi %17, %c74_i32 : i32
    %463 = arith.index_cast %462 : i32 to index
    %464 = memref.load %arg1[%463] : memref<384xi32, #tpu.memory_space<smem>>
    %465 = arith.index_cast %464 : i32 to index
    %c0_164 = arith.constant 0 : index
    %466 = vector.load %arg19[%465, %c0_164] : memref<56x128xf32, #tpu.memory_space<vmem>>, vector<1x128xf32>
    %c74 = arith.constant 74 : index
    %c0_165 = arith.constant 0 : index
    %467 = vector.load %arg21[%c74, %c0_165] : memref<128x128xf32, #tpu.memory_space<vmem>>, vector<1x128xf32>
    tpu.vector_store %arg21[%c74, %c0_165], %466 {strides = array<i32>} : memref<128x128xf32, #tpu.memory_space<vmem>>, vector<1x128xf32>,
    %c75_i32 = arith.constant 75 : i32
    %468 = arith.addi %17, %c75_i32 : i32
    %469 = arith.index_cast %468 : i32 to index
    %470 = memref.load %arg1[%469] : memref<384xi32, #tpu.memory_space<smem>>
    %471 = arith.index_cast %470 : i32 to index
    %c0_166 = arith.constant 0 : index
    %472 = vector.load %arg19[%471, %c0_166] : memref<56x128xf32, #tpu.memory_space<vmem>>, vector<1x128xf32>
    %c75 = arith.constant 75 : index
    %c0_167 = arith.constant 0 : index
    %473 = vector.load %arg21[%c75, %c0_167] : memref<128x128xf32, #tpu.memory_space<vmem>>, vector<1x128xf32>
    tpu.vector_store %arg21[%c75, %c0_167], %472 {strides = array<i32>} : memref<128x128xf32, #tpu.memory_space<vmem>>, vector<1x128xf32>,
    %c76_i32 = arith.constant 76 : i32
    %474 = arith.addi %17, %c76_i32 : i32
    %475 = arith.index_cast %474 : i32 to index
    %476 = memref.load %arg1[%475] : memref<384xi32, #tpu.memory_space<smem>>
    %477 = arith.index_cast %476 : i32 to index
    %c0_168 = arith.constant 0 : index
    %478 = vector.load %arg19[%477, %c0_168] : memref<56x128xf32, #tpu.memory_space<vmem>>, vector<1x128xf32>
    %c76 = arith.constant 76 : index
    %c0_169 = arith.constant 0 : index
    %479 = vector.load %arg21[%c76, %c0_169] : memref<128x128xf32, #tpu.memory_space<vmem>>, vector<1x128xf32>
    tpu.vector_store %arg21[%c76, %c0_169], %478 {strides = array<i32>} : memref<128x128xf32, #tpu.memory_space<vmem>>, vector<1x128xf32>,
    %c77_i32 = arith.constant 77 : i32
    %480 = arith.addi %17, %c77_i32 : i32
    %481 = arith.index_cast %480 : i32 to index
    %482 = memref.load %arg1[%481] : memref<384xi32, #tpu.memory_space<smem>>
    %483 = arith.index_cast %482 : i32 to index
    %c0_170 = arith.constant 0 : index
    %484 = vector.load %arg19[%483, %c0_170] : memref<56x128xf32, #tpu.memory_space<vmem>>, vector<1x128xf32>
    %c77 = arith.constant 77 : index
    %c0_171 = arith.constant 0 : index
    %485 = vector.load %arg21[%c77, %c0_171] : memref<128x128xf32, #tpu.memory_space<vmem>>, vector<1x128xf32>
    tpu.vector_store %arg21[%c77, %c0_171], %484 {strides = array<i32>} : memref<128x128xf32, #tpu.memory_space<vmem>>, vector<1x128xf32>,
    %c78_i32 = arith.constant 78 : i32
    %486 = arith.addi %17, %c78_i32 : i32
    %487 = arith.index_cast %486 : i32 to index
    %488 = memref.load %arg1[%487] : memref<384xi32, #tpu.memory_space<smem>>
    %489 = arith.index_cast %488 : i32 to index
    %c0_172 = arith.constant 0 : index
    %490 = vector.load %arg19[%489, %c0_172] : memref<56x128xf32, #tpu.memory_space<vmem>>, vector<1x128xf32>
    %c78 = arith.constant 78 : index
    %c0_173 = arith.constant 0 : index
    %491 = vector.load %arg21[%c78, %c0_173] : memref<128x128xf32, #tpu.memory_space<vmem>>, vector<1x128xf32>
    tpu.vector_store %arg21[%c78, %c0_173], %490 {strides = array<i32>} : memref<128x128xf32, #tpu.memory_space<vmem>>, vector<1x128xf32>,
    %c79_i32 = arith.constant 79 : i32
    %492 = arith.addi %17, %c79_i32 : i32
    %493 = arith.index_cast %492 : i32 to index
    %494 = memref.load %arg1[%493] : memref<384xi32, #tpu.memory_space<smem>>
    %495 = arith.index_cast %494 : i32 to index
    %c0_174 = arith.constant 0 : index
    %496 = vector.load %arg19[%495, %c0_174] : memref<56x128xf32, #tpu.memory_space<vmem>>, vector<1x128xf32>
    %c79 = arith.constant 79 : index
    %c0_175 = arith.constant 0 : index
    %497 = vector.load %arg21[%c79, %c0_175] : memref<128x128xf32, #tpu.memory_space<vmem>>, vector<1x128xf32>
    tpu.vector_store %arg21[%c79, %c0_175], %496 {strides = array<i32>} : memref<128x128xf32, #tpu.memory_space<vmem>>, vector<1x128xf32>,
    %c80_i32 = arith.constant 80 : i32
    %498 = arith.addi %17, %c80_i32 : i32
    %499 = arith.index_cast %498 : i32 to index
    %500 = memref.load %arg1[%499] : memref<384xi32, #tpu.memory_space<smem>>
    %501 = arith.index_cast %500 : i32 to index
    %c0_176 = arith.constant 0 : index
    %502 = vector.load %arg19[%501, %c0_176] : memref<56x128xf32, #tpu.memory_space<vmem>>, vector<1x128xf32>
    %c80 = arith.constant 80 : index
    %c0_177 = arith.constant 0 : index
    %503 = vector.load %arg21[%c80, %c0_177] : memref<128x128xf32, #tpu.memory_space<vmem>>, vector<1x128xf32>
    tpu.vector_store %arg21[%c80, %c0_177], %502 {strides = array<i32>} : memref<128x128xf32, #tpu.memory_space<vmem>>, vector<1x128xf32>,
    %c81_i32 = arith.constant 81 : i32
    %504 = arith.addi %17, %c81_i32 : i32
    %505 = arith.index_cast %504 : i32 to index
    %506 = memref.load %arg1[%505] : memref<384xi32, #tpu.memory_space<smem>>
    %507 = arith.index_cast %506 : i32 to index
    %c0_178 = arith.constant 0 : index
    %508 = vector.load %arg19[%507, %c0_178] : memref<56x128xf32, #tpu.memory_space<vmem>>, vector<1x128xf32>
    %c81 = arith.constant 81 : index
    %c0_179 = arith.constant 0 : index
    %509 = vector.load %arg21[%c81, %c0_179] : memref<128x128xf32, #tpu.memory_space<vmem>>, vector<1x128xf32>
    tpu.vector_store %arg21[%c81, %c0_179], %508 {strides = array<i32>} : memref<128x128xf32, #tpu.memory_space<vmem>>, vector<1x128xf32>,
    %c82_i32 = arith.constant 82 : i32
    %510 = arith.addi %17, %c82_i32 : i32
    %511 = arith.index_cast %510 : i32 to index
    %512 = memref.load %arg1[%511] : memref<384xi32, #tpu.memory_space<smem>>
    %513 = arith.index_cast %512 : i32 to index
    %c0_180 = arith.constant 0 : index
    %514 = vector.load %arg19[%513, %c0_180] : memref<56x128xf32, #tpu.memory_space<vmem>>, vector<1x128xf32>
    %c82 = arith.constant 82 : index
    %c0_181 = arith.constant 0 : index
    %515 = vector.load %arg21[%c82, %c0_181] : memref<128x128xf32, #tpu.memory_space<vmem>>, vector<1x128xf32>
    tpu.vector_store %arg21[%c82, %c0_181], %514 {strides = array<i32>} : memref<128x128xf32, #tpu.memory_space<vmem>>, vector<1x128xf32>,
    %c83_i32 = arith.constant 83 : i32
    %516 = arith.addi %17, %c83_i32 : i32
    %517 = arith.index_cast %516 : i32 to index
    %518 = memref.load %arg1[%517] : memref<384xi32, #tpu.memory_space<smem>>
    %519 = arith.index_cast %518 : i32 to index
    %c0_182 = arith.constant 0 : index
    %520 = vector.load %arg19[%519, %c0_182] : memref<56x128xf32, #tpu.memory_space<vmem>>, vector<1x128xf32>
    %c83 = arith.constant 83 : index
    %c0_183 = arith.constant 0 : index
    %521 = vector.load %arg21[%c83, %c0_183] : memref<128x128xf32, #tpu.memory_space<vmem>>, vector<1x128xf32>
    tpu.vector_store %arg21[%c83, %c0_183], %520 {strides = array<i32>} : memref<128x128xf32, #tpu.memory_space<vmem>>, vector<1x128xf32>,
    %c84_i32 = arith.constant 84 : i32
    %522 = arith.addi %17, %c84_i32 : i32
    %523 = arith.index_cast %522 : i32 to index
    %524 = memref.load %arg1[%523] : memref<384xi32, #tpu.memory_space<smem>>
    %525 = arith.index_cast %524 : i32 to index
    %c0_184 = arith.constant 0 : index
    %526 = vector.load %arg19[%525, %c0_184] : memref<56x128xf32, #tpu.memory_space<vmem>>, vector<1x128xf32>
    %c84 = arith.constant 84 : index
    %c0_185 = arith.constant 0 : index
    %527 = vector.load %arg21[%c84, %c0_185] : memref<128x128xf32, #tpu.memory_space<vmem>>, vector<1x128xf32>
    tpu.vector_store %arg21[%c84, %c0_185], %526 {strides = array<i32>} : memref<128x128xf32, #tpu.memory_space<vmem>>, vector<1x128xf32>,
    %c85_i32 = arith.constant 85 : i32
    %528 = arith.addi %17, %c85_i32 : i32
    %529 = arith.index_cast %528 : i32 to index
    %530 = memref.load %arg1[%529] : memref<384xi32, #tpu.memory_space<smem>>
    %531 = arith.index_cast %530 : i32 to index
    %c0_186 = arith.constant 0 : index
    %532 = vector.load %arg19[%531, %c0_186] : memref<56x128xf32, #tpu.memory_space<vmem>>, vector<1x128xf32>
    %c85 = arith.constant 85 : index
    %c0_187 = arith.constant 0 : index
    %533 = vector.load %arg21[%c85, %c0_187] : memref<128x128xf32, #tpu.memory_space<vmem>>, vector<1x128xf32>
    tpu.vector_store %arg21[%c85, %c0_187], %532 {strides = array<i32>} : memref<128x128xf32, #tpu.memory_space<vmem>>, vector<1x128xf32>,
    %c86_i32 = arith.constant 86 : i32
    %534 = arith.addi %17, %c86_i32 : i32
    %535 = arith.index_cast %534 : i32 to index
    %536 = memref.load %arg1[%535] : memref<384xi32, #tpu.memory_space<smem>>
    %537 = arith.index_cast %536 : i32 to index
    %c0_188 = arith.constant 0 : index
    %538 = vector.load %arg19[%537, %c0_188] : memref<56x128xf32, #tpu.memory_space<vmem>>, vector<1x128xf32>
    %c86 = arith.constant 86 : index
    %c0_189 = arith.constant 0 : index
    %539 = vector.load %arg21[%c86, %c0_189] : memref<128x128xf32, #tpu.memory_space<vmem>>, vector<1x128xf32>
    tpu.vector_store %arg21[%c86, %c0_189], %538 {strides = array<i32>} : memref<128x128xf32, #tpu.memory_space<vmem>>, vector<1x128xf32>,
    %c87_i32 = arith.constant 87 : i32
    %540 = arith.addi %17, %c87_i32 : i32
    %541 = arith.index_cast %540 : i32 to index
    %542 = memref.load %arg1[%541] : memref<384xi32, #tpu.memory_space<smem>>
    %543 = arith.index_cast %542 : i32 to index
    %c0_190 = arith.constant 0 : index
    %544 = vector.load %arg19[%543, %c0_190] : memref<56x128xf32, #tpu.memory_space<vmem>>, vector<1x128xf32>
    %c87 = arith.constant 87 : index
    %c0_191 = arith.constant 0 : index
    %545 = vector.load %arg21[%c87, %c0_191] : memref<128x128xf32, #tpu.memory_space<vmem>>, vector<1x128xf32>
    tpu.vector_store %arg21[%c87, %c0_191], %544 {strides = array<i32>} : memref<128x128xf32, #tpu.memory_space<vmem>>, vector<1x128xf32>,
    %c88_i32 = arith.constant 88 : i32
    %546 = arith.addi %17, %c88_i32 : i32
    %547 = arith.index_cast %546 : i32 to index
    %548 = memref.load %arg1[%547] : memref<384xi32, #tpu.memory_space<smem>>
    %549 = arith.index_cast %548 : i32 to index
    %c0_192 = arith.constant 0 : index
    %550 = vector.load %arg19[%549, %c0_192] : memref<56x128xf32, #tpu.memory_space<vmem>>, vector<1x128xf32>
    %c88 = arith.constant 88 : index
    %c0_193 = arith.constant 0 : index
    %551 = vector.load %arg21[%c88, %c0_193] : memref<128x128xf32, #tpu.memory_space<vmem>>, vector<1x128xf32>
    tpu.vector_store %arg21[%c88, %c0_193], %550 {strides = array<i32>} : memref<128x128xf32, #tpu.memory_space<vmem>>, vector<1x128xf32>,
    %c89_i32 = arith.constant 89 : i32
    %552 = arith.addi %17, %c89_i32 : i32
    %553 = arith.index_cast %552 : i32 to index
    %554 = memref.load %arg1[%553] : memref<384xi32, #tpu.memory_space<smem>>
    %555 = arith.index_cast %554 : i32 to index
    %c0_194 = arith.constant 0 : index
    %556 = vector.load %arg19[%555, %c0_194] : memref<56x128xf32, #tpu.memory_space<vmem>>, vector<1x128xf32>
    %c89 = arith.constant 89 : index
    %c0_195 = arith.constant 0 : index
    %557 = vector.load %arg21[%c89, %c0_195] : memref<128x128xf32, #tpu.memory_space<vmem>>, vector<1x128xf32>
    tpu.vector_store %arg21[%c89, %c0_195], %556 {strides = array<i32>} : memref<128x128xf32, #tpu.memory_space<vmem>>, vector<1x128xf32>,
    %c90_i32 = arith.constant 90 : i32
    %558 = arith.addi %17, %c90_i32 : i32
    %559 = arith.index_cast %558 : i32 to index
    %560 = memref.load %arg1[%559] : memref<384xi32, #tpu.memory_space<smem>>
    %561 = arith.index_cast %560 : i32 to index
    %c0_196 = arith.constant 0 : index
    %562 = vector.load %arg19[%561, %c0_196] : memref<56x128xf32, #tpu.memory_space<vmem>>, vector<1x128xf32>
    %c90 = arith.constant 90 : index
    %c0_197 = arith.constant 0 : index
    %563 = vector.load %arg21[%c90, %c0_197] : memref<128x128xf32, #tpu.memory_space<vmem>>, vector<1x128xf32>
    tpu.vector_store %arg21[%c90, %c0_197], %562 {strides = array<i32>} : memref<128x128xf32, #tpu.memory_space<vmem>>, vector<1x128xf32>,
    %c91_i32 = arith.constant 91 : i32
    %564 = arith.addi %17, %c91_i32 : i32
    %565 = arith.index_cast %564 : i32 to index
    %566 = memref.load %arg1[%565] : memref<384xi32, #tpu.memory_space<smem>>
    %567 = arith.index_cast %566 : i32 to index
    %c0_198 = arith.constant 0 : index
    %568 = vector.load %arg19[%567, %c0_198] : memref<56x128xf32, #tpu.memory_space<vmem>>, vector<1x128xf32>
    %c91 = arith.constant 91 : index
    %c0_199 = arith.constant 0 : index
    %569 = vector.load %arg21[%c91, %c0_199] : memref<128x128xf32, #tpu.memory_space<vmem>>, vector<1x128xf32>
    tpu.vector_store %arg21[%c91, %c0_199], %568 {strides = array<i32>} : memref<128x128xf32, #tpu.memory_space<vmem>>, vector<1x128xf32>,
    %c92_i32 = arith.constant 92 : i32
    %570 = arith.addi %17, %c92_i32 : i32
    %571 = arith.index_cast %570 : i32 to index
    %572 = memref.load %arg1[%571] : memref<384xi32, #tpu.memory_space<smem>>
    %573 = arith.index_cast %572 : i32 to index
    %c0_200 = arith.constant 0 : index
    %574 = vector.load %arg19[%573, %c0_200] : memref<56x128xf32, #tpu.memory_space<vmem>>, vector<1x128xf32>
    %c92 = arith.constant 92 : index
    %c0_201 = arith.constant 0 : index
    %575 = vector.load %arg21[%c92, %c0_201] : memref<128x128xf32, #tpu.memory_space<vmem>>, vector<1x128xf32>
    tpu.vector_store %arg21[%c92, %c0_201], %574 {strides = array<i32>} : memref<128x128xf32, #tpu.memory_space<vmem>>, vector<1x128xf32>,
    %c93_i32 = arith.constant 93 : i32
    %576 = arith.addi %17, %c93_i32 : i32
    %577 = arith.index_cast %576 : i32 to index
    %578 = memref.load %arg1[%577] : memref<384xi32, #tpu.memory_space<smem>>
    %579 = arith.index_cast %578 : i32 to index
    %c0_202 = arith.constant 0 : index
    %580 = vector.load %arg19[%579, %c0_202] : memref<56x128xf32, #tpu.memory_space<vmem>>, vector<1x128xf32>
    %c93 = arith.constant 93 : index
    %c0_203 = arith.constant 0 : index
    %581 = vector.load %arg21[%c93, %c0_203] : memref<128x128xf32, #tpu.memory_space<vmem>>, vector<1x128xf32>
    tpu.vector_store %arg21[%c93, %c0_203], %580 {strides = array<i32>} : memref<128x128xf32, #tpu.memory_space<vmem>>, vector<1x128xf32>,
    %c94_i32 = arith.constant 94 : i32
    %582 = arith.addi %17, %c94_i32 : i32
    %583 = arith.index_cast %582 : i32 to index
    %584 = memref.load %arg1[%583] : memref<384xi32, #tpu.memory_space<smem>>
    %585 = arith.index_cast %584 : i32 to index
    %c0_204 = arith.constant 0 : index
    %586 = vector.load %arg19[%585, %c0_204] : memref<56x128xf32, #tpu.memory_space<vmem>>, vector<1x128xf32>
    %c94 = arith.constant 94 : index
    %c0_205 = arith.constant 0 : index
    %587 = vector.load %arg21[%c94, %c0_205] : memref<128x128xf32, #tpu.memory_space<vmem>>, vector<1x128xf32>
    tpu.vector_store %arg21[%c94, %c0_205], %586 {strides = array<i32>} : memref<128x128xf32, #tpu.memory_space<vmem>>, vector<1x128xf32>,
    %c95_i32 = arith.constant 95 : i32
    %588 = arith.addi %17, %c95_i32 : i32
    %589 = arith.index_cast %588 : i32 to index
    %590 = memref.load %arg1[%589] : memref<384xi32, #tpu.memory_space<smem>>
    %591 = arith.index_cast %590 : i32 to index
    %c0_206 = arith.constant 0 : index
    %592 = vector.load %arg19[%591, %c0_206] : memref<56x128xf32, #tpu.memory_space<vmem>>, vector<1x128xf32>
    %c95 = arith.constant 95 : index
    %c0_207 = arith.constant 0 : index
    %593 = vector.load %arg21[%c95, %c0_207] : memref<128x128xf32, #tpu.memory_space<vmem>>, vector<1x128xf32>
    tpu.vector_store %arg21[%c95, %c0_207], %592 {strides = array<i32>} : memref<128x128xf32, #tpu.memory_space<vmem>>, vector<1x128xf32>,
    %c96_i32 = arith.constant 96 : i32
    %594 = arith.addi %17, %c96_i32 : i32
    %595 = arith.index_cast %594 : i32 to index
    %596 = memref.load %arg1[%595] : memref<384xi32, #tpu.memory_space<smem>>
    %597 = arith.index_cast %596 : i32 to index
    %c0_208 = arith.constant 0 : index
    %598 = vector.load %arg19[%597, %c0_208] : memref<56x128xf32, #tpu.memory_space<vmem>>, vector<1x128xf32>
    %c96 = arith.constant 96 : index
    %c0_209 = arith.constant 0 : index
    %599 = vector.load %arg21[%c96, %c0_209] : memref<128x128xf32, #tpu.memory_space<vmem>>, vector<1x128xf32>
    tpu.vector_store %arg21[%c96, %c0_209], %598 {strides = array<i32>} : memref<128x128xf32, #tpu.memory_space<vmem>>, vector<1x128xf32>,
    %c97_i32 = arith.constant 97 : i32
    %600 = arith.addi %17, %c97_i32 : i32
    %601 = arith.index_cast %600 : i32 to index
    %602 = memref.load %arg1[%601] : memref<384xi32, #tpu.memory_space<smem>>
    %603 = arith.index_cast %602 : i32 to index
    %c0_210 = arith.constant 0 : index
    %604 = vector.load %arg19[%603, %c0_210] : memref<56x128xf32, #tpu.memory_space<vmem>>, vector<1x128xf32>
    %c97 = arith.constant 97 : index
    %c0_211 = arith.constant 0 : index
    %605 = vector.load %arg21[%c97, %c0_211] : memref<128x128xf32, #tpu.memory_space<vmem>>, vector<1x128xf32>
    tpu.vector_store %arg21[%c97, %c0_211], %604 {strides = array<i32>} : memref<128x128xf32, #tpu.memory_space<vmem>>, vector<1x128xf32>,
    %c98_i32 = arith.constant 98 : i32
    %606 = arith.addi %17, %c98_i32 : i32
    %607 = arith.index_cast %606 : i32 to index
    %608 = memref.load %arg1[%607] : memref<384xi32, #tpu.memory_space<smem>>
    %609 = arith.index_cast %608 : i32 to index
    %c0_212 = arith.constant 0 : index
    %610 = vector.load %arg19[%609, %c0_212] : memref<56x128xf32, #tpu.memory_space<vmem>>, vector<1x128xf32>
    %c98 = arith.constant 98 : index
    %c0_213 = arith.constant 0 : index
    %611 = vector.load %arg21[%c98, %c0_213] : memref<128x128xf32, #tpu.memory_space<vmem>>, vector<1x128xf32>
    tpu.vector_store %arg21[%c98, %c0_213], %610 {strides = array<i32>} : memref<128x128xf32, #tpu.memory_space<vmem>>, vector<1x128xf32>,
    %c99_i32 = arith.constant 99 : i32
    %612 = arith.addi %17, %c99_i32 : i32
    %613 = arith.index_cast %612 : i32 to index
    %614 = memref.load %arg1[%613] : memref<384xi32, #tpu.memory_space<smem>>
    %615 = arith.index_cast %614 : i32 to index
    %c0_214 = arith.constant 0 : index
    %616 = vector.load %arg19[%615, %c0_214] : memref<56x128xf32, #tpu.memory_space<vmem>>, vector<1x128xf32>
    %c99 = arith.constant 99 : index
    %c0_215 = arith.constant 0 : index
    %617 = vector.load %arg21[%c99, %c0_215] : memref<128x128xf32, #tpu.memory_space<vmem>>, vector<1x128xf32>
    tpu.vector_store %arg21[%c99, %c0_215], %616 {strides = array<i32>} : memref<128x128xf32, #tpu.memory_space<vmem>>, vector<1x128xf32>,
    %c100_i32 = arith.constant 100 : i32
    %618 = arith.addi %17, %c100_i32 : i32
    %619 = arith.index_cast %618 : i32 to index
    %620 = memref.load %arg1[%619] : memref<384xi32, #tpu.memory_space<smem>>
    %621 = arith.index_cast %620 : i32 to index
    %c0_216 = arith.constant 0 : index
    %622 = vector.load %arg19[%621, %c0_216] : memref<56x128xf32, #tpu.memory_space<vmem>>, vector<1x128xf32>
    %c100 = arith.constant 100 : index
    %c0_217 = arith.constant 0 : index
    %623 = vector.load %arg21[%c100, %c0_217] : memref<128x128xf32, #tpu.memory_space<vmem>>, vector<1x128xf32>
    tpu.vector_store %arg21[%c100, %c0_217], %622 {strides = array<i32>} : memref<128x128xf32, #tpu.memory_space<vmem>>, vector<1x128xf32>,
    %c101_i32 = arith.constant 101 : i32
    %624 = arith.addi %17, %c101_i32 : i32
    %625 = arith.index_cast %624 : i32 to index
    %626 = memref.load %arg1[%625] : memref<384xi32, #tpu.memory_space<smem>>
    %627 = arith.index_cast %626 : i32 to index
    %c0_218 = arith.constant 0 : index
    %628 = vector.load %arg19[%627, %c0_218] : memref<56x128xf32, #tpu.memory_space<vmem>>, vector<1x128xf32>
    %c101 = arith.constant 101 : index
    %c0_219 = arith.constant 0 : index
    %629 = vector.load %arg21[%c101, %c0_219] : memref<128x128xf32, #tpu.memory_space<vmem>>, vector<1x128xf32>
    tpu.vector_store %arg21[%c101, %c0_219], %628 {strides = array<i32>} : memref<128x128xf32, #tpu.memory_space<vmem>>, vector<1x128xf32>,
    %c102_i32 = arith.constant 102 : i32
    %630 = arith.addi %17, %c102_i32 : i32
    %631 = arith.index_cast %630 : i32 to index
    %632 = memref.load %arg1[%631] : memref<384xi32, #tpu.memory_space<smem>>
    %633 = arith.index_cast %632 : i32 to index
    %c0_220 = arith.constant 0 : index
    %634 = vector.load %arg19[%633, %c0_220] : memref<56x128xf32, #tpu.memory_space<vmem>>, vector<1x128xf32>
    %c102 = arith.constant 102 : index
    %c0_221 = arith.constant 0 : index
    %635 = vector.load %arg21[%c102, %c0_221] : memref<128x128xf32, #tpu.memory_space<vmem>>, vector<1x128xf32>
    tpu.vector_store %arg21[%c102, %c0_221], %634 {strides = array<i32>} : memref<128x128xf32, #tpu.memory_space<vmem>>, vector<1x128xf32>,
    %c103_i32 = arith.constant 103 : i32
    %636 = arith.addi %17, %c103_i32 : i32
    %637 = arith.index_cast %636 : i32 to index
    %638 = memref.load %arg1[%637] : memref<384xi32, #tpu.memory_space<smem>>
    %639 = arith.index_cast %638 : i32 to index
    %c0_222 = arith.constant 0 : index
    %640 = vector.load %arg19[%639, %c0_222] : memref<56x128xf32, #tpu.memory_space<vmem>>, vector<1x128xf32>
    %c103 = arith.constant 103 : index
    %c0_223 = arith.constant 0 : index
    %641 = vector.load %arg21[%c103, %c0_223] : memref<128x128xf32, #tpu.memory_space<vmem>>, vector<1x128xf32>
    tpu.vector_store %arg21[%c103, %c0_223], %640 {strides = array<i32>} : memref<128x128xf32, #tpu.memory_space<vmem>>, vector<1x128xf32>,
    %c104_i32 = arith.constant 104 : i32
    %642 = arith.addi %17, %c104_i32 : i32
    %643 = arith.index_cast %642 : i32 to index
    %644 = memref.load %arg1[%643] : memref<384xi32, #tpu.memory_space<smem>>
    %645 = arith.index_cast %644 : i32 to index
    %c0_224 = arith.constant 0 : index
    %646 = vector.load %arg19[%645, %c0_224] : memref<56x128xf32, #tpu.memory_space<vmem>>, vector<1x128xf32>
    %c104 = arith.constant 104 : index
    %c0_225 = arith.constant 0 : index
    %647 = vector.load %arg21[%c104, %c0_225] : memref<128x128xf32, #tpu.memory_space<vmem>>, vector<1x128xf32>
    tpu.vector_store %arg21[%c104, %c0_225], %646 {strides = array<i32>} : memref<128x128xf32, #tpu.memory_space<vmem>>, vector<1x128xf32>,
    %c105_i32 = arith.constant 105 : i32
    %648 = arith.addi %17, %c105_i32 : i32
    %649 = arith.index_cast %648 : i32 to index
    %650 = memref.load %arg1[%649] : memref<384xi32, #tpu.memory_space<smem>>
    %651 = arith.index_cast %650 : i32 to index
    %c0_226 = arith.constant 0 : index
    %652 = vector.load %arg19[%651, %c0_226] : memref<56x128xf32, #tpu.memory_space<vmem>>, vector<1x128xf32>
    %c105 = arith.constant 105 : index
    %c0_227 = arith.constant 0 : index
    %653 = vector.load %arg21[%c105, %c0_227] : memref<128x128xf32, #tpu.memory_space<vmem>>, vector<1x128xf32>
    tpu.vector_store %arg21[%c105, %c0_227], %652 {strides = array<i32>} : memref<128x128xf32, #tpu.memory_space<vmem>>, vector<1x128xf32>,
    %c106_i32 = arith.constant 106 : i32
    %654 = arith.addi %17, %c106_i32 : i32
    %655 = arith.index_cast %654 : i32 to index
    %656 = memref.load %arg1[%655] : memref<384xi32, #tpu.memory_space<smem>>
    %657 = arith.index_cast %656 : i32 to index
    %c0_228 = arith.constant 0 : index
    %658 = vector.load %arg19[%657, %c0_228] : memref<56x128xf32, #tpu.memory_space<vmem>>, vector<1x128xf32>
    %c106 = arith.constant 106 : index
    %c0_229 = arith.constant 0 : index
    %659 = vector.load %arg21[%c106, %c0_229] : memref<128x128xf32, #tpu.memory_space<vmem>>, vector<1x128xf32>
    tpu.vector_store %arg21[%c106, %c0_229], %658 {strides = array<i32>} : memref<128x128xf32, #tpu.memory_space<vmem>>, vector<1x128xf32>,
    %c107_i32 = arith.constant 107 : i32
    %660 = arith.addi %17, %c107_i32 : i32
    %661 = arith.index_cast %660 : i32 to index
    %662 = memref.load %arg1[%661] : memref<384xi32, #tpu.memory_space<smem>>
    %663 = arith.index_cast %662 : i32 to index
    %c0_230 = arith.constant 0 : index
    %664 = vector.load %arg19[%663, %c0_230] : memref<56x128xf32, #tpu.memory_space<vmem>>, vector<1x128xf32>
    %c107 = arith.constant 107 : index
    %c0_231 = arith.constant 0 : index
    %665 = vector.load %arg21[%c107, %c0_231] : memref<128x128xf32, #tpu.memory_space<vmem>>, vector<1x128xf32>
    tpu.vector_store %arg21[%c107, %c0_231], %664 {strides = array<i32>} : memref<128x128xf32, #tpu.memory_space<vmem>>, vector<1x128xf32>,
    %c108_i32 = arith.constant 108 : i32
    %666 = arith.addi %17, %c108_i32 : i32
    %667 = arith.index_cast %666 : i32 to index
    %668 = memref.load %arg1[%667] : memref<384xi32, #tpu.memory_space<smem>>
    %669 = arith.index_cast %668 : i32 to index
    %c0_232 = arith.constant 0 : index
    %670 = vector.load %arg19[%669, %c0_232] : memref<56x128xf32, #tpu.memory_space<vmem>>, vector<1x128xf32>
    %c108 = arith.constant 108 : index
    %c0_233 = arith.constant 0 : index
    %671 = vector.load %arg21[%c108, %c0_233] : memref<128x128xf32, #tpu.memory_space<vmem>>, vector<1x128xf32>
    tpu.vector_store %arg21[%c108, %c0_233], %670 {strides = array<i32>} : memref<128x128xf32, #tpu.memory_space<vmem>>, vector<1x128xf32>,
    %c109_i32 = arith.constant 109 : i32
    %672 = arith.addi %17, %c109_i32 : i32
    %673 = arith.index_cast %672 : i32 to index
    %674 = memref.load %arg1[%673] : memref<384xi32, #tpu.memory_space<smem>>
    %675 = arith.index_cast %674 : i32 to index
    %c0_234 = arith.constant 0 : index
    %676 = vector.load %arg19[%675, %c0_234] : memref<56x128xf32, #tpu.memory_space<vmem>>, vector<1x128xf32>
    %c109 = arith.constant 109 : index
    %c0_235 = arith.constant 0 : index
    %677 = vector.load %arg21[%c109, %c0_235] : memref<128x128xf32, #tpu.memory_space<vmem>>, vector<1x128xf32>
    tpu.vector_store %arg21[%c109, %c0_235], %676 {strides = array<i32>} : memref<128x128xf32, #tpu.memory_space<vmem>>, vector<1x128xf32>,
    %c110_i32 = arith.constant 110 : i32
    %678 = arith.addi %17, %c110_i32 : i32
    %679 = arith.index_cast %678 : i32 to index
    %680 = memref.load %arg1[%679] : memref<384xi32, #tpu.memory_space<smem>>
    %681 = arith.index_cast %680 : i32 to index
    %c0_236 = arith.constant 0 : index
    %682 = vector.load %arg19[%681, %c0_236] : memref<56x128xf32, #tpu.memory_space<vmem>>, vector<1x128xf32>
    %c110 = arith.constant 110 : index
    %c0_237 = arith.constant 0 : index
    %683 = vector.load %arg21[%c110, %c0_237] : memref<128x128xf32, #tpu.memory_space<vmem>>, vector<1x128xf32>
    tpu.vector_store %arg21[%c110, %c0_237], %682 {strides = array<i32>} : memref<128x128xf32, #tpu.memory_space<vmem>>, vector<1x128xf32>,
    %c111_i32 = arith.constant 111 : i32
    %684 = arith.addi %17, %c111_i32 : i32
    %685 = arith.index_cast %684 : i32 to index
    %686 = memref.load %arg1[%685] : memref<384xi32, #tpu.memory_space<smem>>
    %687 = arith.index_cast %686 : i32 to index
    %c0_238 = arith.constant 0 : index
    %688 = vector.load %arg19[%687, %c0_238] : memref<56x128xf32, #tpu.memory_space<vmem>>, vector<1x128xf32>
    %c111 = arith.constant 111 : index
    %c0_239 = arith.constant 0 : index
    %689 = vector.load %arg21[%c111, %c0_239] : memref<128x128xf32, #tpu.memory_space<vmem>>, vector<1x128xf32>
    tpu.vector_store %arg21[%c111, %c0_239], %688 {strides = array<i32>} : memref<128x128xf32, #tpu.memory_space<vmem>>, vector<1x128xf32>,
    %c112_i32 = arith.constant 112 : i32
    %690 = arith.addi %17, %c112_i32 : i32
    %691 = arith.index_cast %690 : i32 to index
    %692 = memref.load %arg1[%691] : memref<384xi32, #tpu.memory_space<smem>>
    %693 = arith.index_cast %692 : i32 to index
    %c0_240 = arith.constant 0 : index
    %694 = vector.load %arg19[%693, %c0_240] : memref<56x128xf32, #tpu.memory_space<vmem>>, vector<1x128xf32>
    %c112 = arith.constant 112 : index
    %c0_241 = arith.constant 0 : index
    %695 = vector.load %arg21[%c112, %c0_241] : memref<128x128xf32, #tpu.memory_space<vmem>>, vector<1x128xf32>
    tpu.vector_store %arg21[%c112, %c0_241], %694 {strides = array<i32>} : memref<128x128xf32, #tpu.memory_space<vmem>>, vector<1x128xf32>,
    %c113_i32 = arith.constant 113 : i32
    %696 = arith.addi %17, %c113_i32 : i32
    %697 = arith.index_cast %696 : i32 to index
    %698 = memref.load %arg1[%697] : memref<384xi32, #tpu.memory_space<smem>>
    %699 = arith.index_cast %698 : i32 to index
    %c0_242 = arith.constant 0 : index
    %700 = vector.load %arg19[%699, %c0_242] : memref<56x128xf32, #tpu.memory_space<vmem>>, vector<1x128xf32>
    %c113 = arith.constant 113 : index
    %c0_243 = arith.constant 0 : index
    %701 = vector.load %arg21[%c113, %c0_243] : memref<128x128xf32, #tpu.memory_space<vmem>>, vector<1x128xf32>
    tpu.vector_store %arg21[%c113, %c0_243], %700 {strides = array<i32>} : memref<128x128xf32, #tpu.memory_space<vmem>>, vector<1x128xf32>,
    %c114_i32 = arith.constant 114 : i32
    %702 = arith.addi %17, %c114_i32 : i32
    %703 = arith.index_cast %702 : i32 to index
    %704 = memref.load %arg1[%703] : memref<384xi32, #tpu.memory_space<smem>>
    %705 = arith.index_cast %704 : i32 to index
    %c0_244 = arith.constant 0 : index
    %706 = vector.load %arg19[%705, %c0_244] : memref<56x128xf32, #tpu.memory_space<vmem>>, vector<1x128xf32>
    %c114 = arith.constant 114 : index
    %c0_245 = arith.constant 0 : index
    %707 = vector.load %arg21[%c114, %c0_245] : memref<128x128xf32, #tpu.memory_space<vmem>>, vector<1x128xf32>
    tpu.vector_store %arg21[%c114, %c0_245], %706 {strides = array<i32>} : memref<128x128xf32, #tpu.memory_space<vmem>>, vector<1x128xf32>,
    %c115_i32 = arith.constant 115 : i32
    %708 = arith.addi %17, %c115_i32 : i32
    %709 = arith.index_cast %708 : i32 to index
    %710 = memref.load %arg1[%709] : memref<384xi32, #tpu.memory_space<smem>>
    %711 = arith.index_cast %710 : i32 to index
    %c0_246 = arith.constant 0 : index
    %712 = vector.load %arg19[%711, %c0_246] : memref<56x128xf32, #tpu.memory_space<vmem>>, vector<1x128xf32>
    %c115 = arith.constant 115 : index
    %c0_247 = arith.constant 0 : index
    %713 = vector.load %arg21[%c115, %c0_247] : memref<128x128xf32, #tpu.memory_space<vmem>>, vector<1x128xf32>
    tpu.vector_store %arg21[%c115, %c0_247], %712 {strides = array<i32>} : memref<128x128xf32, #tpu.memory_space<vmem>>, vector<1x128xf32>,
    %c116_i32 = arith.constant 116 : i32
    %714 = arith.addi %17, %c116_i32 : i32
    %715 = arith.index_cast %714 : i32 to index
    %716 = memref.load %arg1[%715] : memref<384xi32, #tpu.memory_space<smem>>
    %717 = arith.index_cast %716 : i32 to index
    %c0_248 = arith.constant 0 : index
    %718 = vector.load %arg19[%717, %c0_248] : memref<56x128xf32, #tpu.memory_space<vmem>>, vector<1x128xf32>
    %c116 = arith.constant 116 : index
    %c0_249 = arith.constant 0 : index
    %719 = vector.load %arg21[%c116, %c0_249] : memref<128x128xf32, #tpu.memory_space<vmem>>, vector<1x128xf32>
    tpu.vector_store %arg21[%c116, %c0_249], %718 {strides = array<i32>} : memref<128x128xf32, #tpu.memory_space<vmem>>, vector<1x128xf32>,
    %c117_i32 = arith.constant 117 : i32
    %720 = arith.addi %17, %c117_i32 : i32
    %721 = arith.index_cast %720 : i32 to index
    %722 = memref.load %arg1[%721] : memref<384xi32, #tpu.memory_space<smem>>
    %723 = arith.index_cast %722 : i32 to index
    %c0_250 = arith.constant 0 : index
    %724 = vector.load %arg19[%723, %c0_250] : memref<56x128xf32, #tpu.memory_space<vmem>>, vector<1x128xf32>
    %c117 = arith.constant 117 : index
    %c0_251 = arith.constant 0 : index
    %725 = vector.load %arg21[%c117, %c0_251] : memref<128x128xf32, #tpu.memory_space<vmem>>, vector<1x128xf32>
    tpu.vector_store %arg21[%c117, %c0_251], %724 {strides = array<i32>} : memref<128x128xf32, #tpu.memory_space<vmem>>, vector<1x128xf32>,
    %c118_i32 = arith.constant 118 : i32
    %726 = arith.addi %17, %c118_i32 : i32
    %727 = arith.index_cast %726 : i32 to index
    %728 = memref.load %arg1[%727] : memref<384xi32, #tpu.memory_space<smem>>
    %729 = arith.index_cast %728 : i32 to index
    %c0_252 = arith.constant 0 : index
    %730 = vector.load %arg19[%729, %c0_252] : memref<56x128xf32, #tpu.memory_space<vmem>>, vector<1x128xf32>
    %c118 = arith.constant 118 : index
    %c0_253 = arith.constant 0 : index
    %731 = vector.load %arg21[%c118, %c0_253] : memref<128x128xf32, #tpu.memory_space<vmem>>, vector<1x128xf32>
    tpu.vector_store %arg21[%c118, %c0_253], %730 {strides = array<i32>} : memref<128x128xf32, #tpu.memory_space<vmem>>, vector<1x128xf32>,
    %c119_i32 = arith.constant 119 : i32
    %732 = arith.addi %17, %c119_i32 : i32
    %733 = arith.index_cast %732 : i32 to index
    %734 = memref.load %arg1[%733] : memref<384xi32, #tpu.memory_space<smem>>
    %735 = arith.index_cast %734 : i32 to index
    %c0_254 = arith.constant 0 : index
    %736 = vector.load %arg19[%735, %c0_254] : memref<56x128xf32, #tpu.memory_space<vmem>>, vector<1x128xf32>
    %c119 = arith.constant 119 : index
    %c0_255 = arith.constant 0 : index
    %737 = vector.load %arg21[%c119, %c0_255] : memref<128x128xf32, #tpu.memory_space<vmem>>, vector<1x128xf32>
    tpu.vector_store %arg21[%c119, %c0_255], %736 {strides = array<i32>} : memref<128x128xf32, #tpu.memory_space<vmem>>, vector<1x128xf32>,
    %c120_i32 = arith.constant 120 : i32
    %738 = arith.addi %17, %c120_i32 : i32
    %739 = arith.index_cast %738 : i32 to index
    %740 = memref.load %arg1[%739] : memref<384xi32, #tpu.memory_space<smem>>
    %741 = arith.index_cast %740 : i32 to index
    %c0_256 = arith.constant 0 : index
    %742 = vector.load %arg19[%741, %c0_256] : memref<56x128xf32, #tpu.memory_space<vmem>>, vector<1x128xf32>
    %c120 = arith.constant 120 : index
    %c0_257 = arith.constant 0 : index
    %743 = vector.load %arg21[%c120, %c0_257] : memref<128x128xf32, #tpu.memory_space<vmem>>, vector<1x128xf32>
    tpu.vector_store %arg21[%c120, %c0_257], %742 {strides = array<i32>} : memref<128x128xf32, #tpu.memory_space<vmem>>, vector<1x128xf32>,
    %c121_i32 = arith.constant 121 : i32
    %744 = arith.addi %17, %c121_i32 : i32
    %745 = arith.index_cast %744 : i32 to index
    %746 = memref.load %arg1[%745] : memref<384xi32, #tpu.memory_space<smem>>
    %747 = arith.index_cast %746 : i32 to index
    %c0_258 = arith.constant 0 : index
    %748 = vector.load %arg19[%747, %c0_258] : memref<56x128xf32, #tpu.memory_space<vmem>>, vector<1x128xf32>
    %c121 = arith.constant 121 : index
    %c0_259 = arith.constant 0 : index
    %749 = vector.load %arg21[%c121, %c0_259] : memref<128x128xf32, #tpu.memory_space<vmem>>, vector<1x128xf32>
    tpu.vector_store %arg21[%c121, %c0_259], %748 {strides = array<i32>} : memref<128x128xf32, #tpu.memory_space<vmem>>, vector<1x128xf32>,
    %c122_i32 = arith.constant 122 : i32
    %750 = arith.addi %17, %c122_i32 : i32
    %751 = arith.index_cast %750 : i32 to index
    %752 = memref.load %arg1[%751] : memref<384xi32, #tpu.memory_space<smem>>
    %753 = arith.index_cast %752 : i32 to index
    %c0_260 = arith.constant 0 : index
    %754 = vector.load %arg19[%753, %c0_260] : memref<56x128xf32, #tpu.memory_space<vmem>>, vector<1x128xf32>
    %c122 = arith.constant 122 : index
    %c0_261 = arith.constant 0 : index
    %755 = vector.load %arg21[%c122, %c0_261] : memref<128x128xf32, #tpu.memory_space<vmem>>, vector<1x128xf32>
    tpu.vector_store %arg21[%c122, %c0_261], %754 {strides = array<i32>} : memref<128x128xf32, #tpu.memory_space<vmem>>, vector<1x128xf32>,
    %c123_i32 = arith.constant 123 : i32
    %756 = arith.addi %17, %c123_i32 : i32
    %757 = arith.index_cast %756 : i32 to index
    %758 = memref.load %arg1[%757] : memref<384xi32, #tpu.memory_space<smem>>
    %759 = arith.index_cast %758 : i32 to index
    %c0_262 = arith.constant 0 : index
    %760 = vector.load %arg19[%759, %c0_262] : memref<56x128xf32, #tpu.memory_space<vmem>>, vector<1x128xf32>
    %c123 = arith.constant 123 : index
    %c0_263 = arith.constant 0 : index
    %761 = vector.load %arg21[%c123, %c0_263] : memref<128x128xf32, #tpu.memory_space<vmem>>, vector<1x128xf32>
    tpu.vector_store %arg21[%c123, %c0_263], %760 {strides = array<i32>} : memref<128x128xf32, #tpu.memory_space<vmem>>, vector<1x128xf32>,
    %c124_i32 = arith.constant 124 : i32
    %762 = arith.addi %17, %c124_i32 : i32
    %763 = arith.index_cast %762 : i32 to index
    %764 = memref.load %arg1[%763] : memref<384xi32, #tpu.memory_space<smem>>
    %765 = arith.index_cast %764 : i32 to index
    %c0_264 = arith.constant 0 : index
    %766 = vector.load %arg19[%765, %c0_264] : memref<56x128xf32, #tpu.memory_space<vmem>>, vector<1x128xf32>
    %c124 = arith.constant 124 : index
    %c0_265 = arith.constant 0 : index
    %767 = vector.load %arg21[%c124, %c0_265] : memref<128x128xf32, #tpu.memory_space<vmem>>, vector<1x128xf32>
    tpu.vector_store %arg21[%c124, %c0_265], %766 {strides = array<i32>} : memref<128x128xf32, #tpu.memory_space<vmem>>, vector<1x128xf32>,
    %c125_i32 = arith.constant 125 : i32
    %768 = arith.addi %17, %c125_i32 : i32
    %769 = arith.index_cast %768 : i32 to index
    %770 = memref.load %arg1[%769] : memref<384xi32, #tpu.memory_space<smem>>
    %771 = arith.index_cast %770 : i32 to index
    %c0_266 = arith.constant 0 : index
    %772 = vector.load %arg19[%771, %c0_266] : memref<56x128xf32, #tpu.memory_space<vmem>>, vector<1x128xf32>
    %c125 = arith.constant 125 : index
    %c0_267 = arith.constant 0 : index
    %773 = vector.load %arg21[%c125, %c0_267] : memref<128x128xf32, #tpu.memory_space<vmem>>, vector<1x128xf32>
    tpu.vector_store %arg21[%c125, %c0_267], %772 {strides = array<i32>} : memref<128x128xf32, #tpu.memory_space<vmem>>, vector<1x128xf32>,
    %c126_i32 = arith.constant 126 : i32
    %774 = arith.addi %17, %c126_i32 : i32
    %775 = arith.index_cast %774 : i32 to index
    %776 = memref.load %arg1[%775] : memref<384xi32, #tpu.memory_space<smem>>
    %777 = arith.index_cast %776 : i32 to index
    %c0_268 = arith.constant 0 : index
    %778 = vector.load %arg19[%777, %c0_268] : memref<56x128xf32, #tpu.memory_space<vmem>>, vector<1x128xf32>
    %c126 = arith.constant 126 : index
    %c0_269 = arith.constant 0 : index
    %779 = vector.load %arg21[%c126, %c0_269] : memref<128x128xf32, #tpu.memory_space<vmem>>, vector<1x128xf32>
    tpu.vector_store %arg21[%c126, %c0_269], %778 {strides = array<i32>} : memref<128x128xf32, #tpu.memory_space<vmem>>, vector<1x128xf32>,
    %c127_i32 = arith.constant 127 : i32
    %780 = arith.addi %17, %c127_i32 : i32
    %781 = arith.index_cast %780 : i32 to index
    %782 = memref.load %arg1[%781] : memref<384xi32, #tpu.memory_space<smem>>
    %783 = arith.index_cast %782 : i32 to index
    %c0_270 = arith.constant 0 : index
    %784 = vector.load %arg19[%783, %c0_270] : memref<56x128xf32, #tpu.memory_space<vmem>>, vector<1x128xf32>
    %c127 = arith.constant 127 : index
    %c0_271 = arith.constant 0 : index
    %785 = vector.load %arg21[%c127, %c0_271] : memref<128x128xf32, #tpu.memory_space<vmem>>, vector<1x128xf32>
    tpu.vector_store %arg21[%c127, %c0_271], %784 {strides = array<i32>} : memref<128x128xf32, #tpu.memory_space<vmem>>, vector<1x128xf32>,
    %c0_272 = arith.constant 0 : index
    %c0_273 = arith.constant 0 : index
    %786 = vector.load %arg21[%c0_272, %c0_273] : memref<128x128xf32, #tpu.memory_space<vmem>>, vector<128x128xf32>
    %787 = arith.addf %786, %15 : vector<128x128xf32>
    %c0_274 = arith.constant 0 : index
    %c0_275 = arith.constant 0 : index
    %788 = vector.load %arg13[%c0_274, %c0_275] : memref<128x128xf32, #tpu.memory_space<vmem>>, vector<128x128xf32>
    %cst_276 = arith.constant dense<0.000000e+00> : vector<128x128xf32>
    %789 = tpu.matmul %787, %788, %cst_276 {dimension_numbers = #tpu.dot_dimension_numbers<[1], [0], [0], [1], [0, 0, 1, 1], [], []>} : vector<128x128xf32>, vector<128x128xf32>, vector<128x128xf32> -> vector<128x128xf32>
    %c0_277 = arith.constant 0 : index
    %c0_278 = arith.constant 0 : index
    %790 = vector.load %arg14[%c0_277, %c0_278] : memref<1x128xf32, #tpu.memory_space<vmem>>, vector<1x128xf32>
    %791 = vector.broadcast %790 : vector<1x128xf32> to vector<128x128xf32>
    %792 = arith.addf %789, %791 : vector<128x128xf32>
    %c0_279 = arith.constant 0 : index
    %c0_280 = arith.constant 0 : index
    %793 = vector.load %arg4[%c0_279, %c0_280] : memref<1x128xi32, #tpu.memory_space<vmem>>, vector<1x128xi32>
    %794 = tpu.iota {dimensions = array<i32: 0>} : vector<56x128xi32>
    %795 = vector.broadcast %793 : vector<1x128xi32> to vector<56x128xi32>
    %796 = arith.cmpi eq, %794, %795 : vector<56x128xi32>
    %797 = arith.extui %796 : vector<56x128xi1> to vector<56x128xi32>
    %798 = arith.sitofp %797 : vector<56x128xi32> to vector<56x128xf32>
    %cst_281 = arith.constant 1.000000e+00 : f32
    %799 = vector.broadcast %cst_281 : f32 to vector<128x128xf32>
    %800 = tpu.concatenate %792, %799 in 1 : vector<128x128xf32>, vector<128x128xf32> -> vector<128x256xf32>
    %c0_282 = arith.constant 0 : index
    %c0_283 = arith.constant 0 : index
    %801 = vector.load %arg20[%c0_282, %c0_283] : memref<56x256xf32, #tpu.memory_space<vmem>>, vector<56x256xf32>
    %cst_284 = arith.constant dense<0.000000e+00> : vector<56x256xf32>
    %802 = tpu.matmul %798, %800, %cst_284 {dimension_numbers = #tpu.dot_dimension_numbers<[1], [0], [0], [1], [0, 0, 1, 1], [], []>} : vector<56x128xf32>, vector<128x256xf32>, vector<56x256xf32> -> vector<56x256xf32>
    %803 = arith.addf %801, %802 : vector<56x256xf32>
    %c0_285 = arith.constant 0 : index
    %c0_286 = arith.constant 0 : index
    %804 = vector.load %arg20[%c0_285, %c0_286] : memref<56x256xf32, #tpu.memory_space<vmem>>, vector<56x256xf32>
    tpu.vector_store %arg20[%c0_285, %c0_286], %803 {strides = array<i32>} : memref<56x256xf32, #tpu.memory_space<vmem>>, vector<56x256xf32>,
    %c2_i32_287 = arith.constant 2 : i32
    %805 = arith.cmpi eq, %arg0, %c2_i32_287 : i32
    %806 = arith.extui %805 : i1 to i32
    %c0_i32_288 = arith.constant 0 : i32
    %807 = arith.cmpi ne, %806, %c0_i32_288 : i32
    scf.if %807 {
      %c0_289 = arith.constant 0 : index
      %c0_290 = arith.constant 0 : index
      %808 = vector.load %arg20[%c0_289, %c0_290] : memref<56x256xf32, #tpu.memory_space<vmem>>, vector<56x256xf32>
      %809 = vector.extract_strided_slice %808 {offsets = [0, 0], sizes = [56, 128], strides = [1, 1]} : vector<56x256xf32> to vector<56x128xf32>
      %810 = vector.extract_strided_slice %808 {offsets = [0, 128], sizes = [56, 1], strides = [1, 1]} : vector<56x256xf32> to vector<56x1xf32>
      %cst_291 = arith.constant 1.000000e+00 : f32
      %811 = vector.broadcast %cst_291 : f32 to vector<56x1xf32>
      %812 = arith.maximumf %810, %811 : vector<56x1xf32>
      %813 = tpu.reciprocal %812 {approx = true} : vector<56x1xf32> -> vector<56x1xf32>
      %814 = vector.broadcast %813 : vector<56x1xf32> to vector<56x128xf32>
      %815 = arith.mulf %809, %814 : vector<56x128xf32>
      %c0_292 = arith.constant 0 : index
      %c0_293 = arith.constant 0 : index
      %816 = vector.load %arg15[%c0_292, %c0_293] : memref<128x128xf32, #tpu.memory_space<vmem>>, vector<128x128xf32>
      %cst_294 = arith.constant dense<0.000000e+00> : vector<56x128xf32>
      %817 = tpu.matmul %815, %816, %cst_294 {dimension_numbers = #tpu.dot_dimension_numbers<[1], [0], [0], [1], [0, 0, 1, 1], [], []>} : vector<56x128xf32>, vector<128x128xf32>, vector<56x128xf32> -> vector<56x128xf32>
      %c0_295 = arith.constant 0 : index
      %c0_296 = arith.constant 0 : index
      %818 = vector.load %arg16[%c0_295, %c0_296] : memref<1x128xf32, #tpu.memory_space<vmem>>, vector<1x128xf32>
      %819 = vector.broadcast %818 : vector<1x128xf32> to vector<56x128xf32>
      %820 = arith.addf %817, %819 : vector<56x128xf32>
      %c0_297 = arith.constant 0 : index
      %c0_298 = arith.constant 0 : index
      %821 = vector.load %arg17[%c0_297, %c0_298] : memref<56x128xf32, #tpu.memory_space<vmem>>, vector<56x128xf32>
      tpu.vector_store %arg17[%c0_297, %c0_298], %820 {strides = array<i32>} : memref<56x128xf32, #tpu.memory_space<vmem>>, vector<56x128xf32>,
    } else {
    }
    return
  }
  func.func @transform_0(%arg0: i32, %arg1: memref<384xi32, #tpu.memory_space<smem>>) -> (i32, i32) {
    %c0_i32 = arith.constant 0 : i32
    %c0_i32_0 = arith.constant 0 : i32
    %c0_i32_1 = arith.constant 0 : i32
    return %c0_i32, %c0_i32_0 : i32, i32
  }
  func.func @transform_1(%arg0: i32, %arg1: memref<384xi32, #tpu.memory_space<smem>>) -> (i32, i32) {
    %c0_i32 = arith.constant 0 : i32
    %c0_i32_0 = arith.constant 0 : i32
    return %arg0, %c0_i32 : i32, i32
  }
  func.func @transform_2(%arg0: i32, %arg1: memref<384xi32, #tpu.memory_space<smem>>) -> (i32, i32) {
    %c0_i32 = arith.constant 0 : i32
    %c0_i32_0 = arith.constant 0 : i32
    return %c0_i32, %arg0 : i32, i32
  }
  func.func @transform_3(%arg0: i32, %arg1: memref<384xi32, #tpu.memory_space<smem>>) -> (i32, i32) {
    %c0_i32 = arith.constant 0 : i32
    %c0_i32_0 = arith.constant 0 : i32
    %c0_i32_1 = arith.constant 0 : i32
    return %c0_i32, %c0_i32_0 : i32, i32
  }
  func.func @transform_4(%arg0: i32, %arg1: memref<384xi32, #tpu.memory_space<smem>>) -> (i32, i32) {
    %c0_i32 = arith.constant 0 : i32
    %c0_i32_0 = arith.constant 0 : i32
    %c0_i32_1 = arith.constant 0 : i32
    return %c0_i32, %c0_i32_0 : i32, i32
  }
  func.func @transform_5(%arg0: i32, %arg1: memref<384xi32, #tpu.memory_space<smem>>) -> (i32, i32) {
    %c0_i32 = arith.constant 0 : i32
    %c0_i32_0 = arith.constant 0 : i32
    %c0_i32_1 = arith.constant 0 : i32
    return %c0_i32, %c0_i32_0 : i32, i32
  }
  func.func @transform_6(%arg0: i32, %arg1: memref<384xi32, #tpu.memory_space<smem>>) -> (i32, i32) {
    %c0_i32 = arith.constant 0 : i32
    %c0_i32_0 = arith.constant 0 : i32
    %c0_i32_1 = arith.constant 0 : i32
    return %c0_i32, %c0_i32_0 : i32, i32
  }
  func.func @transform_7(%arg0: i32, %arg1: memref<384xi32, #tpu.memory_space<smem>>) -> (i32, i32) {
    %c0_i32 = arith.constant 0 : i32
    %c0_i32_0 = arith.constant 0 : i32
    %c0_i32_1 = arith.constant 0 : i32
    return %c0_i32, %c0_i32_0 : i32, i32
  }
  func.func @transform_8(%arg0: i32, %arg1: memref<384xi32, #tpu.memory_space<smem>>) -> (i32, i32) {
    %c0_i32 = arith.constant 0 : i32
    %c0_i32_0 = arith.constant 0 : i32
    %c0_i32_1 = arith.constant 0 : i32
    return %c0_i32, %c0_i32_0 : i32, i32
  }
  func.func @transform_9(%arg0: i32, %arg1: memref<384xi32, #tpu.memory_space<smem>>) -> (i32, i32) {
    %c0_i32 = arith.constant 0 : i32
    %c0_i32_0 = arith.constant 0 : i32
    %c0_i32_1 = arith.constant 0 : i32
    return %c0_i32, %c0_i32_0 : i32, i32
  }
  func.func @transform_10(%arg0: i32, %arg1: memref<384xi32, #tpu.memory_space<smem>>) -> (i32, i32) {
    %c0_i32 = arith.constant 0 : i32
    %c0_i32_0 = arith.constant 0 : i32
    %c0_i32_1 = arith.constant 0 : i32
    return %c0_i32, %c0_i32_0 : i32, i32
  }
  func.func @transform_11(%arg0: i32, %arg1: memref<384xi32, #tpu.memory_space<smem>>) -> (i32, i32) {
    %c0_i32 = arith.constant 0 : i32
    %c0_i32_0 = arith.constant 0 : i32
    %c0_i32_1 = arith.constant 0 : i32
    return %c0_i32, %c0_i32_0 : i32, i32
  }
  func.func @transform_12(%arg0: i32, %arg1: memref<384xi32, #tpu.memory_space<smem>>) -> (i32, i32) {
    %c0_i32 = arith.constant 0 : i32
    %c0_i32_0 = arith.constant 0 : i32
    %c0_i32_1 = arith.constant 0 : i32
    return %c0_i32, %c0_i32_0 : i32, i32
  }
  func.func @transform_13(%arg0: i32, %arg1: memref<384xi32, #tpu.memory_space<smem>>) -> (i32, i32) {
    %c0_i32 = arith.constant 0 : i32
    %c0_i32_0 = arith.constant 0 : i32
    %c0_i32_1 = arith.constant 0 : i32
    return %c0_i32, %c0_i32_0 : i32, i32
  }
  func.func @transform_14(%arg0: i32, %arg1: memref<384xi32, #tpu.memory_space<smem>>) -> (i32, i32) {
    %c0_i32 = arith.constant 0 : i32
    %c0_i32_0 = arith.constant 0 : i32
    %c0_i32_1 = arith.constant 0 : i32
    return %c0_i32, %c0_i32_0 : i32, i32
  }
  func.func @transform_15(%arg0: i32, %arg1: memref<384xi32, #tpu.memory_space<smem>>) -> (i32, i32) {
    %c0_i32 = arith.constant 0 : i32
    %c0_i32_0 = arith.constant 0 : i32
    %c0_i32_1 = arith.constant 0 : i32
    return %c0_i32, %c0_i32_0 : i32, i32
  }
  func.func @transform_16(%arg0: i32, %arg1: memref<384xi32, #tpu.memory_space<smem>>) -> (i32, i32) {
    %c0_i32 = arith.constant 0 : i32
    %c0_i32_0 = arith.constant 0 : i32
    return %arg0, %c0_i32 : i32, i32
  }
}

</mosaic_0001>

<bundles_post_ra>
// kernel: tpu_custom_call.1
= control target key start
LH: loop header
LB: loop body
LE: loop exit
PB: predicated region body
PF: predicated region fallthrough
CT: control target
= control target key end

     0   :  { %s3943_s24 = smov [#allocation6]   ;;  %s4818_s0 = inlined_call_operand.hbm [shape: s32[384], index: 0, kind: input, shape index: {}]   ;;  %s4819_s1 = inlined_call_operand.hbm [shape: f32[56,128], index: 1, kind: input, shape index: {}]   ;;  %s4820_s2 = inlined_call_operand.hbm [shape: f32[384,128], index: 2, kind: input, shape index: {}]   ;;  %s4821_s3 = inlined_call_operand.vmem [shape: s32[1,384], index: 3, kind: input, shape index: {}]   ;;  %s4822_s4 = inlined_call_operand.hbm [shape: f32[128,128], index: 4, kind: input, shape index: {}]   ;;  %s4823_s5 = inlined_call_operand.vmem [shape: f32[1,128], index: 5, kind: input, shape index: {}]   ;;  %s4824_s6 = inlined_call_operand.hbm [shape: f32[128,128], index: 6, kind: input, shape index: {}]   ;;  %s4825_s7 = inlined_call_operand.vmem [shape: f32[1,128], index: 7, kind: input, shape index: {}]   ;;  %s4826_s8 = inlined_call_operand.hbm [shape: f32[128,128], index: 8, kind: input, shape index: {}]   ;;  %s4827_s9 = inlined_call_operand.vmem [shape: f32[1,128], index: 9, kind: input, shape index: {}]   ;;  %s4828_s10 = inlined_call_operand.hbm [shape: f32[128,128], index: 10, kind: input, shape index: {}]   ;;  %s4829_s11 = inlined_call_operand.vmem [shape: f32[1,128], index: 11, kind: input, shape index: {}]   ;;  %s4830_s12 = inlined_call_operand.hbm [shape: f32[128,128], index: 12, kind: input, shape index: {}]   ;;  %s4831_s13 = inlined_call_operand.vmem [shape: f32[1,128], index: 13, kind: input, shape index: {}]   ;;  %s4832_s14 = inlined_call_operand.hbm [shape: f32[128,128], index: 14, kind: input, shape index: {}]   ;;  %s4833_s15 = inlined_call_operand.vmem [shape: f32[1,128], index: 15, kind: input, shape index: {}]   ;;  %s4834_s16 = inlined_call_operand.hbm [shape: f32[56,128], index: 16, kind: output, shape index: {0}]   ;;  %s4835_s17 = inlined_call_operand.hbm [shape: f32[384,128], index: 17, kind: output, shape index: {1}]  }
   0x1   :  { %4846 = sst [smem:[#allocation35_spill]] %s4818_s0 }
   0x2   :  { %4847 = sst [smem:[#allocation36_spill]] %s4819_s1 }
   0x3   :  { %4848 = sst [smem:[#allocation37_spill]] %s4820_s2 }
   0x4   :  { %4849 = sst [smem:[#allocation38_spill]] %s4822_s4 }
   0x5   :  { %4850 = sst [smem:[#allocation39_spill]] %s4823_s5 }
   0x6   :  { %4851 = sst [smem:[#allocation40_spill]] %s4824_s6 }
   0x7   :  { %4852 = sst [smem:[#allocation41_spill]] %s4825_s7 }
   0x8   :  { %4853 = sst [smem:[#allocation42_spill]] %s4826_s8 }
   0x9   :  { %4854 = sst [smem:[#allocation43_spill]] %s4827_s9 }
   0xa   :  { %4855 = sst [smem:[#allocation44_spill]] %s4828_s10 }
   0xb   :  { %4856 = sst [smem:[#allocation45_spill]] %s4829_s11 }
   0xc   :  { %4857 = sst [smem:[#allocation46_spill]] %s4830_s12 }
   0xd   :  { %4858 = sst [smem:[#allocation47_spill]] %s4832_s14 }
   0xe   :  { %4859 = sst [smem:[#allocation48_spill]] %s4835_s17 }
   0xf   :  { %s4860_s7 = sld [smem:[#allocation35_spill]] }
  0x15   :  { %24 = dma.hbm_to_smem %s4860_s7, 48, %s3943_s24, [#allocation5] }
  0x16   :  { %3893 = dma.done.wait [#allocation5], 48 }
  0x17   :  { %3894 = vsyncadd [#allocation5], 4294967248 }
  0x18   :  { %26 = sfence }
  0x19   :  { %27 = vsyncpa [#allocation8], 0 }
  0x1a   :  { %28 = vsyncpa [#allocation11], 0 }
  0x1b   :  { %30 = vsyncpa [#allocation11 + $0x1], 0 }
  0x1c   :  { %31 = vsyncpa [#allocation14], 0 }
  0x1d   :  { %32 = vsyncpa [#allocation17], 0 }
  0x1e   :  { %33 = vsyncpa [#allocation20], 0 }
  0x1f   :  { %34 = vsyncpa [#allocation9], 0 }
  0x20   :  { %35 = vsyncpa [#allocation23], 0 }
  0x21   :  { %37 = vsyncpa [#allocation23 + $0x1], 0  ;;  %s4058_s27 = smov 0   ;;  %s4060_s28 = smov 0  }
  0x22   :  { %s4062_s29 = smov 0   ;;  %s4064_s0 = smov 0  }
  0x23 LB: > { %4861 = sst [smem:[#allocation33_spill]] %s3937_s29  ;;  %s4079_s7 = sadd.s32 4294967295, %s3941_s0   ;;  %s3941_s0 = sphi %s4064_s0, %s4911_s0   ;;  %s3937_s29 = sphi %s4062_s29, %s4908_s29   ;;  %s3933_s28 = sphi %s4060_s28, %s4910_s28   ;;  %s3929_s27 = sphi %s4058_s27, %s4909_s27  }
  0x24   : > { %p2878_p0 = scmp.ge.s32.totalorder %s3941_s0, 1  ;;  %p4840_p1 = scmp.eq.s32.totalorder %s4079_s7, 0 }
  0x25   : > { %p420_p2 = scmp.lt.s32.totalorder %s3941_s0, 4  ;;  %s3944_s18 = smov [#allocation12]  }
  0x26   : > { %s445_s19 = sshll.u32 %s3944_s18, 4  ;;  %s3945_s1 = smov [#allocation13]   ;;  %s446_s19 = int_to_ptr.vmem [resolvable:$true] %s445_s19 }
  0x27   : > { %p4085_p4 = pnand %p2878_p0, %p420_p2  ;;  %s461_s20 = sshll.u32 %s3945_s1, 4  ;;  %s4097_s20 = int_to_ptr.vmem [resolvable:$true] %s461_s20 }
  0x28   : > { %s3946_s22 = smov [#allocation16]   ;;  %s3628_s25 = scalar_lea.vmem %s446_s19, 2048 }
  0x29   : > { %s4862_s30 = scalar_select %p4085_p4, 1, 0 }
  0x2a   : > { %p3493_p5 = pneg %p4085_p4  ;;  %s493_s23 = sshll.u32 %s3946_s22, 4  ;;  %s4099_s23 = int_to_ptr.vmem [resolvable:$true] %s493_s23 }
  0x2b   : > { %p3629_p8 = scmp.ne.s32.totalorder %s446_s19, %s3628_s25  ;;  %p3636_p11 = scmp.lt.s32.totalorder %s446_s19, %s446_s19 }
  0x2c   : > { %p4093_p6 = pnand %p3493_p5, %p4840_p1  ;;  %p3637_p12 = scmp.lt.s32.totalorder %s3628_s25, %s3628_s25 }
  0x2e   : > { %p4103_p7 = pneg %p4093_p6  ;;  %p3638_p13 = por %p3637_p12, %p3636_p11 }
  0x30   : > { %p3631_p9 = pnand %p3629_p8, %p4103_p7 }
  0x32   : > { %p3632_p10 = pneg %p3631_p9 }
  0x34   : > { %p3639_p0 = pnand %p3638_p13, %p3632_p10 }
  0x36   : > { %3642 = shalt.err (!%p3639_p0)
}
  0x37   : > { %s4837_s26 = smov 128   ;;  %s4838_s18 = smov 8  }
  0x38   : > { %s4865_s4 = sld [smem:[#allocation38_spill]]  ;;  %s3654_s17 = scalar_lea.vmem %s4097_s20, 2048 }
  0x39   : > { %p3655_p2 = scmp.ne.s32.totalorder %s4097_s20, %s3654_s17  ;;  %p3662_p9 = scmp.lt.s32.totalorder %s4097_s20, %s4097_s20 }
  0x3a   : > { %p3663_p10 = scmp.lt.s32.totalorder %s3654_s17, %s3654_s17 }
  0x3b   : > { %p3657_p5 = pnand %p3655_p2, %p4103_p7 }
  0x3c   : > { %p3664_p11 = por %p3663_p10, %p3662_p9 }
  0x3d   : > { %p3658_p8 = pneg %p3657_p5 }
  0x3e   : > { %3499 = dma.hbm_to_vmem [thread:$0]  (!%p4093_p6), %s4865_s4, 2048, %s446_s19, [#allocation11], %s4837_s26, %s4837_s26, %s4838_s18  }
  0x3f   : > { %p3665_p12 = pnand %p3664_p11, %p3658_p8 }
  0x41   : > { %3668 = shalt.err (!%p3665_p12)
}
  0x42   : > { %s4866_s6 = sld [smem:[#allocation40_spill]]  ;;  %s3680_s19 = scalar_lea.vmem %s4099_s23, 2048 }
  0x43   : > { %p3681_p13 = scmp.ne.s32.totalorder %s4099_s23, %s3680_s19  ;;  %p3688_p5 = scmp.lt.s32.totalorder %s4099_s23, %s4099_s23 }
  0x44   : > { %p3689_p8 = scmp.lt.s32.totalorder %s3680_s19, %s3680_s19 }
  0x45   : > { %p3683_p0 = pnand %p3681_p13, %p4103_p7 }
  0x46   : > { %p3690_p9 = por %p3689_p8, %p3688_p5 }
  0x47   : > { %p3684_p2 = pneg %p3683_p0 }
  0x48   : > { %3502 = dma.hbm_to_vmem [thread:$0]  (!%p4093_p6), %s4866_s6, 2048, %s4097_s20, [#allocation14], %s4837_s26, %s4837_s26, %s4838_s18  }
  0x49   : > { %p3691_p10 = pnand %p3690_p9, %p3684_p2 }
  0x4b   : > { %3694 = shalt.err (!%p3691_p10)
}
  0x4c   : > { %s4867_s10 = sld [smem:[#allocation44_spill]]  ;;  %s3949_s20 = smov [#allocation7]  }
  0x4d   : > { %s432_s25 = sshll.u32 %s3949_s20, 4  ;;  %s3950_s1 = smov [#allocation15]   ;;  %s433_s25 = int_to_ptr.vmem [resolvable:$true] %s432_s25 }
  0x4e   : > { %s477_s4 = sshll.u32 %s3950_s1, 4  ;;  %s3706_s19 = scalar_lea.vmem %s433_s25, 896  ;;  %s478_s4 = int_to_ptr.vmem [resolvable:$true] %s477_s4 }
  0x4f   : > { %p3707_p11 = scmp.ne.s32.totalorder %s433_s25, %s3706_s19  ;;  %p3714_p0 = scmp.lt.s32.totalorder %s433_s25, %s433_s25 }
  0x50   : > { %p3715_p2 = scmp.lt.s32.totalorder %s3706_s19, %s3706_s19 }
  0x51   : > { %p3709_p12 = pnand %p3707_p11, %p4103_p7 }
  0x52   : > { %3508 = dma.hbm_to_vmem [thread:$0]  (!%p4093_p6), %s4867_s10, 2048, %s4099_s23, [#allocation17], %s4837_s26, %s4837_s26, %s4838_s18  }
  0x53   : > { %p3710_p13 = pneg %p3709_p12  ;;  %p3716_p5 = por %p3715_p2, %p3714_p0 }
  0x55   : > { %p3717_p8 = pnand %p3716_p5, %p3710_p13 }
  0x57   : > { %3720 = shalt.err (!%p3717_p8)
}
  0x58   : > { %s4868_s22 = sld [smem:[#allocation36_spill]]  ;;  %s3732_s20 = scalar_lea.vmem %s478_s4, 2048 }
  0x59   : > { %p3733_p9 = scmp.ne.s32.totalorder %s478_s4, %s3732_s20  ;;  %p3740_p12 = scmp.lt.s32.totalorder %s478_s4, %s478_s4 }
  0x5a   : > { %p3741_p0 = scmp.lt.s32.totalorder %s3732_s20, %s3732_s20 }
  0x5b   : > { %p3735_p10 = pnand %p3733_p9, %p4103_p7 }
  0x5c   : > { %p3742_p13 = por %p3741_p0, %p3740_p12 }
  0x5d   : > { %p3736_p11 = pneg %p3735_p10 }
  0x5e   : > { %3496 = dma.hbm_to_vmem [thread:$0]  (!%p4093_p6), %s4868_s22, 896, %s433_s25, [#allocation8], %s4837_s26, %s4837_s26, %s4838_s18  }
  0x5f   : > { %p3743_p2 = pnand %p3742_p13, %p3736_p11 }
  0x61   : > { %3746 = shalt.err (!%p3743_p2)
}
  0x62   : > { %s4869_s8 = sld [smem:[#allocation42_spill]]  ;;  %s3951_s25 = smov [#allocation18]  }
  0x63   : > { %s509_s23 = sshll.u32 %s3951_s25, 4  ;;  %s3952_s17 = smov [#allocation19]   ;;  %s510_s23 = int_to_ptr.vmem [resolvable:$true] %s509_s23 }
  0x64   : > { %s525_s22 = sshll.u32 %s3952_s17, 4  ;;  %s3758_s6 = scalar_lea.vmem %s510_s23, 2048  ;;  %s526_s22 = int_to_ptr.vmem [resolvable:$true] %s525_s22 }
  0x65   : > { %p3759_p5 = scmp.ne.s32.totalorder %s510_s23, %s3758_s6  ;;  %p3766_p10 = scmp.lt.s32.totalorder %s510_s23, %s510_s23 }
  0x66   : > { %p3767_p11 = scmp.lt.s32.totalorder %s3758_s6, %s3758_s6 }
  0x67   : > { %p3761_p8 = pnand %p3759_p5, %p4103_p7 }
  0x68   : > { %3505 = dma.hbm_to_vmem [thread:$0]  (!%p4093_p6), %s4869_s8, 2048, %s478_s4, [#allocation14], %s4837_s26, %s4837_s26, %s4838_s18  }
  0x69   : > { %p3762_p9 = pneg %p3761_p8  ;;  %p3768_p12 = por %p3767_p11, %p3766_p10 }
  0x6b   : > { %p3769_p0 = pnand %p3768_p12, %p3762_p9 }
  0x6d   : > { %3772 = shalt.err (!%p3769_p0)
}
  0x6e   : > { %s4870_s12 = sld [smem:[#allocation46_spill]]  ;;  %s3784_s1 = scalar_lea.vmem %s526_s22, 2048 }
  0x6f   : > { %p3785_p13 = scmp.ne.s32.totalorder %s526_s22, %s3784_s1  ;;  %p3792_p8 = scmp.lt.s32.totalorder %s526_s22, %s526_s22 }
  0x70   : > { %p3793_p10 = scmp.lt.s32.totalorder %s3784_s1, %s3784_s1 }
  0x71   : > { %p3787_p2 = pnand %p3785_p13, %p4103_p7 }
  0x72   : > { %p3794_p9 = por %p3793_p10, %p3792_p8 }
  0x73   : > { %p3788_p5 = pneg %p3787_p2 }
  0x74   : > { %3511 = dma.hbm_to_vmem [thread:$0]  (!%p4093_p6), %s4870_s12, 2048, %s510_s23, [#allocation17], %s4837_s26, %s4837_s26, %s4838_s18  }
  0x75   : > { %p3795_p11 = pnand %p3794_p9, %p3788_p5 }
  0x77   : > { %3798 = shalt.err (!%p3795_p11)
}
  0x78   : > { %s4871_s14 = sld [smem:[#allocation47_spill]]  ;;  %s2877_s21 = sadd.s32 4294967294, %s3941_s0  }
  0x79   : > { %s4189_s24 = sadd.s32 1, %s3941_s0   ;;  %s71_s25 = sadd.s32 1, %s3937_s29 }
  0x7a   : > { %s68_s23 = ssub.s32 %s3941_s0, %s4189_s24  ;;  %p78_p7 = scmp.ne.s32.totalorder %s3937_s29, %s3933_s28 }
  0x7b   : > { %p69_p12 = scmp.eq.s32.totalorder %s68_s23, 0  ;;  %p79_p0 = scmp.eq.s32.totalorder %s3941_s0, 0 }
  0x7c   : > { %p84_p13 = scmp.ne.s32.totalorder %s3933_s28, %s3929_s27  ;;  %p4839_p2 = scmp.eq.s32.totalorder %s4079_s7, 2 }
  0x7d   : > { %s4201_s17 = scalar_select %p69_p12, %s3937_s29, %s71_s25  }
  0x7e   : > { %3514 = dma.hbm_to_vmem [thread:$0]  (!%p4093_p6), %s4871_s14, 2048, %s526_s22, [#allocation20], %s4837_s26, %s4837_s26, %s4838_s18  }
  0x7f   : > { %4872 = sst [smem:[#allocation34_spill]] %s4201_s17  ;;  %p80_p5 = por %p79_p0, %p78_p7 }
  0x80   : > { %p4205_p8 = por %p4840_p1, %p84_p13  ;;  %p4211_p6 = por %p4839_p2, %p78_p7 }
  0x81   : > { %p413_p10 = scmp.eq.s32.totalorder %s2877_s21, 2  ;;  %p3530_p9 = scmp.lt.s32.totalorder %s3941_s0, 3 }
  0x82   : > { %s4873_s22 = scalar_select %p4205_p8, 1, 0 }
  0x83   : > { %s4874_s4 = scalar_select %p4211_p6, 1, 0 }
  0x84   : > { %s542_s20 = sand.u32 1, %s3941_s0   ;;  %p4217_p11 = por %p413_p10, %p84_p13 }
  0x85   : > { %s544_s6 = sand.u32 1, %s3937_s29   ;;  %s2931_s19 = sshll.u32 %s3941_s0, 11 }
  0x86   : > { %s4875_s1 = scalar_select %p4217_p11, 1, 0 }
  0x87   : > { %s2887_s25 = sshll.u32 %s544_s6, 7  ;;  %s4876_s2 = sld [smem:[#allocation37_spill]] }
  0x88   : > { %p4228_p7 = pnand %p3530_p9, %p80_p5  ;;  %s546_s21 = scalar_lea.vmem [#allocation10], %s2887_s25 }
  0x89   : > { %s553_s10 = sshll.u32 %s546_s21, 4  ;;  %s4234_s12 = scalar_lea.sflag [#allocation11], %s542_s20  ;;  %s4232_s10 = int_to_ptr.vmem [resolvable:$true] %s553_s10 }
  0x8a   : > { %p3801_p0 = pneg %p4228_p7 }
  0x8d   : > { %s4226_s18 = scalar_lea.hbm %s4876_s2, %s2931_s19  ;;  %s3804_s23 = scalar_lea.hbm %s4876_s2, 6144 }
  0x8e   : > { %s3799_s6 = scalar_lea.hbm %s4226_s18, 2048  ;;  %p3805_p5 = scmp.lt.s32.totalorder %s4226_s18, %s4876_s2 }
  0x8f   : > { %p3800_p12 = scmp.ne.s32.totalorder %s4226_s18, %s3799_s6  ;;  %p3806_p9 = scmp.lt.s32.totalorder %s3804_s23, %s3799_s6 }
  0x91   : > { %p3802_p13 = pnand %p3801_p0, %p3800_p12  ;;  %p3807_p2 = por %p3806_p9, %p3805_p5 }
  0x93   : > { %p3803_p10 = pneg %p3802_p13 }
  0x95   : > { %p3808_p3 = pnand %p3807_p2, %p3803_p10 }
  0x97   : > { %3811 = shalt.err (!%p3808_p3)
}
  0x98   : > { %s3812_s20 = scalar_lea.vmem %s4232_s10, 2048  ;;  %s3953_s25 = smov [#allocation10]  }
  0x99   : > { %p3813_p1 = scmp.ne.s32.totalorder %s4232_s10, %s3812_s20  ;;  %s3817_s21 = sshll.u32 %s3953_s25, 4  ;;  %s3818_s21 = int_to_ptr.vmem [resolvable:$false] %s3817_s21 }
  0x9a   : > { %s3819_s26 = scalar_lea.vmem %s3818_s21, 4096  ;;  %p3820_p13 = scmp.lt.s32.totalorder %s4232_s10, %s3818_s21 }
  0x9b   : > { %p3815_p11 = pnand %p3813_p1, %p3801_p0  ;;  %p3821_p6 = scmp.lt.s32.totalorder %s3819_s26, %s3812_s20 }
  0x9d   : > { %p3816_p12 = pneg %p3815_p11  ;;  %p3822_p8 = por %p3821_p6, %p3820_p13 }
  0x9f   : > { %p3823_p4 = pnand %p3822_p8, %p3816_p12 }
  0xa1   : > { %3826 = shalt.err (!%p3823_p4)
}
  0xa2   : > { %s4878_s14 = smov 8   ;;  %s4879_s17 = smov 128  }
  0xa3   : > { %3518 = dma.hbm_to_vmem [thread:$0]  (!%p4228_p7), %s4226_s18, 2048, %s4232_s10, %s4234_s12, %s4879_s17, %s4879_s17, %s4878_s14  }
  0xa4   : > { %p4880_p1 = scmp.ne.s32.totalorder %s4862_s30, 0 }
  0xa5   : > { %p4881_p3 = scmp.eq.s32.totalorder (!%p4880_p1), %s4079_s7, 0 }
  0xa6   : > { %571 = sbr.rel (%p4880_p1) target bundleno = 1955 (0x7a3), region = 80 }
  0xab   : > { %3896 = dma.done.wait (%p4881_p3), [#allocation8], 896   ;;  %p4882_p2 = pmov %p4881_p3 }
  0xac   : > { %s577_s8 = sand.u32 1, %s4079_s7   ;;  %s4844_s6 = sand.u32 1, %s3933_s28  }
  0xad   : > { %3898 = vsyncadd (%p4882_p2), [#allocation8], 4294966400  ;;  %s2892_s19 = sshll.u32 %s4844_s6, 7  ;;  %s578_s23 = scalar_lea.sflag [#allocation11], %s577_s8 }
  0xae   : > { %s4268_s20 = scalar_lea.vmem [#allocation10], %s2892_s19  ;;  %p4883_p4 = scmp.ne.s32.totalorder %s4873_s22, 0 }
  0xb0   : > { %3900 = dma.done.wait (%p4883_p4), %s578_s23, 2048  }
  0xb1   : > { %3902 = vsyncadd (%p4883_p4), %s578_s23, 4294965248  ;;  %p4884_p8 = pmov %p4882_p2 }
  0xb2   : > { %p4885_p6 = pmov %p4882_p2 }
  0xb3   : > { %3904 = dma.done.wait (%p4884_p8), [#allocation11], 2048  }
  0xb4   : > { %3906 = vsyncadd (%p4885_p6), [#allocation11], 4294965248  ;;  %p4886_p11 = pmov %p4882_p2 }
  0xb5   : > { %p4887_p7 = pmov %p4882_p2 }
  0xb6   : > { %3908 = dma.done.wait (%p4886_p11), [#allocation14], 4096  }
  0xb7   : > { %3910 = vsyncadd (%p4887_p7), [#allocation14], 4294963200  ;;  %p4888_p0 = pmov %p4882_p2 }
  0xb9   : > { %3912 = dma.done.wait (%p4888_p0), [#allocation17], 4096   ;;  %p4889_p10 = pmov %p4888_p0 }
  0xba   : > { %p4890_p5 = pmov %p4888_p0 }
  0xbb   : > { %3914 = vsyncadd (%p4889_p10), [#allocation17], 4294963200 }
  0xbc   : > { %3916 = dma.done.wait (%p4890_p5), [#allocation20], 2048   ;;  %p4891_p9 = pmov %p4888_p0 }
  0xbd   : > { %p658_p12 = scmp.lt.s32.totalorder %s4079_s7, 2  ;;  %s4298_s22 = scalar_lea.vmem [#allocation22], %s2892_s19 }
  0xbe   : > { %3918 = vsyncadd (%p4891_p9), [#allocation20], 4294965248  ;;  %p4892_p13 = scmp.ne.s32.totalorder %s4079_s7, 0 }
  0xbf   : > { %s4292_s10 = scalar_select %p658_p12, %s4079_s7, 2 }
  0xc0   : > { %665 = sbr.rel (%p4892_p13) target bundleno = 647 (0x287), region = 116  ;;  %s4893_s9 = sld [smem:[#allocation43_spill]] (!%p4892_p13) }
  0xc1   : > { %s4894_s11 = sld [smem:[#allocation45_spill]] (!%p4892_p13) }
  0xc5   : > { %v688_v0 = vld [vmem:[#allocation15 + $0x78] sm:$0xff]  ;;  %v3954_v1 = vmov 0.0   ;;  %v687_v2 = vld [vmem:[#allocation15 + $0x70] sm:$0xff]  ;;  %vm3955_vm0 = vmmov 0   ;;  %v686_v3 = vld [vmem:[#allocation15 + $0x68] sm:$0xff] }
  0xc6   : > { %3098 = vmatprep.subr.mxu0 %v3954_v1  ;;  %933 = vst [vmem:[#allocation3 + $0x30] sm:$0xff] %v3954_v1  ;;  %934 = vst [vmem:[#allocation3] sm:$0xff] %v3954_v1  ;;  %3130 = vmatprep.mubr.msk.f32.mxu0 %vm3955_vm0, %v3954_v1  ;;  %v685_v4 = vld [vmem:[#allocation15 + $0x60] sm:$0xff]  ;;  %v684_v5 = vld [vmem:[#allocation15 + $0x58] sm:$0xff] }
  0xc7   : > { %935 = vst [vmem:[#allocation3 + $0x58] sm:$0xff] %v3954_v1  ;;  %936 = vst [vmem:[#allocation3 + $0x18] sm:$0xff] %v3954_v1  ;;  %3099 = vmatpush3.msra.mxu0 %v688_v0  ;;  %3151 = vmatprep.subr.mxu1 %v3954_v1  ;;  %v818_v6 = vld [vmem:[#allocation16 + $0x78] sm:$0xff]  ;;  %v817_v7 = vld [vmem:[#allocation16 + $0x70] sm:$0xff] }
  0xc8   : > { %937 = vst [vmem:[#allocation3 + $0x50] sm:$0xff] %v3954_v1  ;;  %938 = vst [vmem:[#allocation3 + $0x68] sm:$0xff] %v3954_v1  ;;  %3100 = vmatprep.subr.mxu0 %v3954_v1  ;;  %3183 = vmatprep.mubr.msk.f32.mxu1 %vm3955_vm0, %v3954_v1  ;;  %v683_v8 = vld [vmem:[#allocation15 + $0x50] sm:$0xff]  ;;  %v816_v9 = vld [vmem:[#allocation16 + $0x68] sm:$0xff] }
  0xc9   : > { %939 = vst [vmem:[#allocation3 + $0x8] sm:$0xff] %v3954_v1  ;;  %940 = vst [vmem:[#allocation3 + $0x48] sm:$0xff] %v3954_v1  ;;  %3101 = vmatpush3.msra.mxu0 %v687_v2  ;;  %3152 = vmatpush3.msra.mxu1 %v818_v6  ;;  %v682_v10 = vld [vmem:[#allocation15 + $0x48] sm:$0xff]  ;;  %v815_v11 = vld [vmem:[#allocation16 + $0x60] sm:$0xff] }
  0xca   : > { %941 = vst [vmem:[#allocation3 + $0x40] sm:$0xff] %v3954_v1  ;;  %942 = vst [vmem:[#allocation3 + $0x20] sm:$0xff] %v3954_v1  ;;  %3102 = vmatprep.subr.mxu0 %v3954_v1  ;;  %3153 = vmatprep.subr.mxu1 %v3954_v1  ;;  %v681_v12 = vld [vmem:[#allocation15 + $0x40] sm:$0xff]  ;;  %v814_v13 = vld [vmem:[#allocation16 + $0x58] sm:$0xff] }
  0xcb   : > { %943 = vst [vmem:[#allocation3 + $0x10] sm:$0xff] %v3954_v1  ;;  %944 = vst [vmem:[#allocation3 + $0x38] sm:$0xff] %v3954_v1  ;;  %3103 = vmatpush3.msra.mxu0 %v686_v3  ;;  %3154 = vmatpush3.msra.mxu1 %v817_v7  ;;  %v680_v14 = vld [vmem:[#allocation15 + $0x38] sm:$0xff]  ;;  %v813_v15 = vld [vmem:[#allocation16 + $0x50] sm:$0xff] }
  0xcc   : > { %945 = vst [vmem:[#allocation3 + $0x60] sm:$0xff] %v3954_v1  ;;  %946 = vst [vmem:[#allocation3 + $0x28] sm:$0xff] %v3954_v1  ;;  %3104 = vmatprep.subr.mxu0 %v3954_v1  ;;  %3155 = vmatprep.subr.mxu1 %v3954_v1  ;;  %v679_v16 = vld [vmem:[#allocation15 + $0x30] sm:$0xff]  ;;  %v812_v17 = vld [vmem:[#allocation16 + $0x48] sm:$0xff] }
  0xcd   : > { %3105 = vmatpush3.msra.mxu0 %v685_v4  ;;  %3156 = vmatpush3.msra.mxu1 %v816_v9  ;;  %v678_v18 = vld [vmem:[#allocation15 + $0x28] sm:$0xff]  ;;  %v811_v19 = vld [vmem:[#allocation16 + $0x40] sm:$0xff]  ;;  %v810_v21 = vld [vmem:[#allocation16 + $0x38] sm:$0xff] }
  0xce   : > { %3106 = vmatprep.subr.mxu0 %v3954_v1  ;;  %3157 = vmatprep.subr.mxu1 %v3954_v1  ;;  %v677_v20 = vld [vmem:[#allocation15 + $0x20] sm:$0xff]  ;;  %v676_v22 = vld [vmem:[#allocation15 + $0x18] sm:$0xff]  ;;  %v809_v23 = vld [vmem:[#allocation16 + $0x30] sm:$0xff] }
  0xcf   : > { %3107 = vmatpush3.msra.mxu0 %v684_v5  ;;  %3158 = vmatpush3.msra.mxu1 %v815_v11  ;;  %v675_v24 = vld [vmem:[#allocation15 + $0x10] sm:$0xff]  ;;  %v808_v25 = vld [vmem:[#allocation16 + $0x28] sm:$0xff]  ;;  %v807_v27 = vld [vmem:[#allocation16 + $0x20] sm:$0xff] }
  0xd0   : > { %3108 = vmatprep.subr.mxu0 %v3954_v1  ;;  %3159 = vmatprep.subr.mxu1 %v3954_v1  ;;  %v674_v26 = vld [vmem:[#allocation15 + $0x8] sm:$0xff]  ;;  %v673_v28 = vld [vmem:[#allocation15] sm:$0xff]  ;;  %v806_v29 = vld [vmem:[#allocation16 + $0x18] sm:$0xff] }
  0xd1   : > { %3109 = vmatpush3.msra.mxu0 %v683_v8  ;;  %3160 = vmatpush3.msra.mxu1 %v814_v13  ;;  %v666_v30 = vld [vmem:[#allocation7] sm:$0xff]  ;;  %v667_v31 = vld [vmem:[#allocation7 + $0x8] sm:$0xff]  ;;  %v668_v32 = vld [vmem:[#allocation7 + $0x10] sm:$0xff] }
  0xd2   : > { %3110 = vmatprep.subr.mxu0 %v3954_v1  ;;  %3161 = vmatprep.subr.mxu1 %v3954_v1  ;;  %v669_v33 = vld [vmem:[#allocation7 + $0x18] sm:$0xff]  ;;  %v670_v34 = vld [vmem:[#allocation7 + $0x20] sm:$0xff]  ;;  %v671_v35 = vld [vmem:[#allocation7 + $0x28] sm:$0xff] }
  0xd3   : > { %3111 = vmatpush3.msra.mxu0 %v682_v10  ;;  %3162 = vmatpush3.msra.mxu1 %v813_v15  ;;  %v672_v36 = vld [vmem:[#allocation7 + $0x30] sm:$0xff]  ;;  %v805_v37 = vld [vmem:[#allocation16 + $0x10] sm:$0xff]  ;;  %v804_v38 = vld [vmem:[#allocation16 + $0x8] sm:$0xff] }
  0xd4   : > { %3112 = vmatprep.subr.mxu0 %v3954_v1  ;;  %3163 = vmatprep.subr.mxu1 %v3954_v1  ;;  %v803_v39 = vld [vmem:[#allocation16] sm:$0xff] }
  0xd5   : > { %3113 = vmatpush3.msra.mxu0 %v681_v12  ;;  %3164 = vmatpush3.msra.mxu1 %v812_v17  ;;  %v2901_v40 = vld [vmem:[%s4893_s9] ss:$0 sm:$0xff] }
  0xd6   : > { %3114 = vmatprep.subr.mxu0 %v3954_v1  ;;  %3165 = vmatprep.subr.mxu1 %v3954_v1  ;;  %v2902_v6 = vld [vmem:[%s4894_s11] ss:$0 sm:$0xff] }
  0xd7   : > { %3115 = vmatpush3.msra.mxu0 %v680_v14  ;;  %3166 = vmatpush3.msra.mxu1 %v811_v19 }
  0xd8   : > { %3116 = vmatprep.subr.mxu0 %v3954_v1  ;;  %3167 = vmatprep.subr.mxu1 %v3954_v1 }
  0xd9   : > { %3117 = vmatpush3.msra.mxu0 %v679_v16  ;;  %3168 = vmatpush3.msra.mxu1 %v810_v21 }
  0xda   : > { %3118 = vmatprep.subr.mxu0 %v3954_v1  ;;  %3169 = vmatprep.subr.mxu1 %v3954_v1 }
  0xdb   : > { %3119 = vmatpush3.msra.mxu0 %v678_v18  ;;  %3170 = vmatpush3.msra.mxu1 %v809_v23 }
  0xdc   : > { %3120 = vmatprep.subr.mxu0 %v3954_v1  ;;  %3171 = vmatprep.subr.mxu1 %v3954_v1 }
  0xdd   : > { %3121 = vmatpush3.msra.mxu0 %v677_v20  ;;  %3172 = vmatpush3.msra.mxu1 %v808_v25 }
  0xde   : > { %3122 = vmatprep.subr.mxu0 %v3954_v1  ;;  %3173 = vmatprep.subr.mxu1 %v3954_v1 }
  0xdf   : > { %3123 = vmatpush3.msra.mxu0 %v676_v22  ;;  %3174 = vmatpush3.msra.mxu1 %v807_v27 }
  0xe0   : > { %3124 = vmatprep.subr.mxu0 %v3954_v1  ;;  %3175 = vmatprep.subr.mxu1 %v3954_v1 }
  0xe1   : > { %3125 = vmatpush3.msra.mxu0 %v675_v24  ;;  %3176 = vmatpush3.msra.mxu1 %v806_v29 }
  0xe2   : > { %3126 = vmatprep.subr.mxu0 %v3954_v1  ;;  %3177 = vmatprep.subr.mxu1 %v3954_v1 }
  0xe3   : > { %3127 = vmatpush3.msra.mxu0 %v674_v26  ;;  %3178 = vmatpush3.msra.mxu1 %v805_v37 }
  0xe4   : > { %3128 = vmatprep.subr.mxu0 %v3954_v1  ;;  %3179 = vmatprep.subr.mxu1 %v3954_v1 }
  0xe5   : > { %3129 = vmatpush3.msra.mxu0 %v673_v28  ;;  %3180 = vmatpush3.msra.mxu1 %v804_v38 }
  0xe6   : > { %3131 = vmatmul.mubr.f32.vlgmr.msra.gmra.mxu0 %v666_v30  ;;  %3181 = vmatprep.subr.mxu1 %v3954_v1 }
  0xe7   : > { %3133 = vmatprep.mubr.msk.f32.mxu0 %vm3955_vm0, %v3954_v1  ;;  %3182 = vmatpush3.msra.mxu1 %v803_v39 }
  0xea   : > { %3134 = vmatmul.mubr.f32.gmra.mxu0 %v667_v31 }
  0xeb   : > { %3136 = vmatprep.mubr.msk.f32.mxu0 %vm3955_vm0, %v3954_v1 }
  0xee   : > { %3137 = vmatmul.mubr.f32.gmra.mxu0 %v668_v32 }
  0xef   : > { %3139 = vmatprep.mubr.msk.f32.mxu0 %vm3955_vm0, %v3954_v1 }
  0xf2   : > { %3140 = vmatmul.mubr.f32.gmra.mxu0 %v669_v33 }
  0xf3   : > { %3142 = vmatprep.mubr.msk.f32.mxu0 %vm3955_vm0, %v3954_v1 }
  0xf6   : > { %3143 = vmatmul.mubr.f32.gmra.mxu0 %v670_v34 }
  0xf7   : > { %3145 = vmatprep.mubr.msk.f32.mxu0 %vm3955_vm0, %v3954_v1 }
  0xfa   : > { %3146 = vmatmul.mubr.f32.gmra.mxu0 %v671_v35 }
  0xfb   : > { %3148 = vmatprep.mubr.msk.f32.mxu0 %vm3955_vm0, %v3954_v1 }
  0xfe   : > { %3149 = vmatmul.mubr.f32.gmra.mxu0 %v672_v36 }
 0x1a6   : > { %v762_v41 = vpop.f32.mrf.mxu0 }
 0x1a7   : > { %v763_v42 = vadd.f32 %v2901_v40, %v762_v41 }
 0x1a8   : > { %v3132_v43 = vpop.f32.mrf.mxu0 }
 0x1a9   : > { %v796_v44 = vmax.f32 %v763_v42, 0.0 }
 0x1aa   : > { %v767_v45 = vpop.f32.mrf.mxu0 }
 0x1ab   : > { %v768_v46 = vadd.f32 %v2901_v40, %v767_v45  ;;  %3184 = vmatmul.mubr.f32.vlgmr.msra.gmra.mxu1 %v796_v44 }
 0x1ac   : > { %v3135_v47 = vpop.f32.mrf.mxu0  ;;  %3186 = vmatprep.mubr.msk.f32.mxu1 %vm3955_vm0, %v3954_v1 }
 0x1ad   : > { %v797_v48 = vmax.f32 %v768_v46, 0.0 }
 0x1ae   : > { %v772_v49 = vpop.f32.mrf.mxu0 }
 0x1af   : > { %v773_v50 = vadd.f32 %v2901_v40, %v772_v49  ;;  %3187 = vmatmul.mubr.f32.gmra.mxu1 %v797_v48 }
 0x1b0   : > { %v3138_v51 = vpop.f32.mrf.mxu0  ;;  %3189 = vmatprep.mubr.msk.f32.mxu1 %vm3955_vm0, %v3954_v1 }
 0x1b1   : > { %v798_v52 = vmax.f32 %v773_v50, 0.0 }
 0x1b2   : > { %v777_v53 = vpop.f32.mrf.mxu0 }
 0x1b3   : > { %v778_v54 = vadd.f32 %v2901_v40, %v777_v53  ;;  %3190 = vmatmul.mubr.f32.gmra.mxu1 %v798_v52 }
 0x1b4   : > { %v3141_v55 = vpop.f32.mrf.mxu0  ;;  %3192 = vmatprep.mubr.msk.f32.mxu1 %vm3955_vm0, %v3954_v1 }
 0x1b5   : > { %v799_v56 = vmax.f32 %v778_v54, 0.0 }
 0x1b6   : > { %v782_v57 = vpop.f32.mrf.mxu0 }
 0x1b7   : > { %v783_v58 = vadd.f32 %v2901_v40, %v782_v57  ;;  %3193 = vmatmul.mubr.f32.gmra.mxu1 %v799_v56 }
 0x1b8   : > { %v3144_v59 = vpop.f32.mrf.mxu0  ;;  %3195 = vmatprep.mubr.msk.f32.mxu1 %vm3955_vm0, %v3954_v1 }
 0x1b9   : > { %v800_v60 = vmax.f32 %v783_v58, 0.0 }
 0x1ba   : > { %v787_v61 = vpop.f32.mrf.mxu0 }
 0x1bb   : > { %v788_v62 = vadd.f32 %v2901_v40, %v787_v61  ;;  %3196 = vmatmul.mubr.f32.gmra.mxu1 %v800_v60 }
 0x1bc   : > { %v3147_v63 = vpop.f32.mrf.mxu0  ;;  %3198 = vmatprep.mubr.msk.f32.mxu1 %vm3955_vm0, %v3954_v1 }
 0x1bd   : > { %v801_v0 = vmax.f32 %v788_v62, 0.0 }
 0x1be   : > { %v792_v2 = vpop.f32.mrf.mxu0 }
 0x1bf   : > { %v793_v3 = vadd.f32 %v2901_v40, %v792_v2  ;;  %3199 = vmatmul.mubr.f32.gmra.mxu1 %v801_v0 }
 0x1c0   : > { %v3150_v4 = vpop.f32.mrf.mxu0  ;;  %3201 = vmatprep.mubr.msk.f32.mxu1 %vm3955_vm0, %v3954_v1 }
 0x1c1   : > { %v802_v5 = vmax.f32 %v793_v3, 0.0 }
 0x1c3   : > { %3202 = vmatmul.mubr.f32.gmra.mxu1 %v802_v5 }
 0x26b   : > { %v892_v7 = vpop.f32.mrf.mxu1 }
 0x26c   : > { %v893_v8 = vadd.f32 %v2902_v6, %v892_v7 }
 0x26d   : > { %v3185_v9 = vpop.f32.mrf.mxu1 }
 0x26e   : > { %926 = vst [vmem:[#allocation2] sm:$0xff] %v893_v8 }
 0x26f   : > { %v897_v10 = vpop.f32.mrf.mxu1 }
 0x270   : > { %v898_v11 = vadd.f32 %v2902_v6, %v897_v10 }
 0x271   : > { %v3188_v12 = vpop.f32.mrf.mxu1 }
 0x272   : > { %927 = vst [vmem:[#allocation2 + $0x8] sm:$0xff] %v898_v11 }
 0x273   : > { %v902_v13 = vpop.f32.mrf.mxu1 }
 0x274   : > { %v903_v14 = vadd.f32 %v2902_v6, %v902_v13 }
 0x275   : > { %v3191_v15 = vpop.f32.mrf.mxu1 }
 0x276   : > { %928 = vst [vmem:[#allocation2 + $0x10] sm:$0xff] %v903_v14 }
 0x277   : > { %v907_v16 = vpop.f32.mrf.mxu1 }
 0x278   : > { %v908_v1 = vadd.f32 %v2902_v6, %v907_v16 }
 0x279   : > { %v3194_v17 = vpop.f32.mrf.mxu1 }
 0x27a   : > { %929 = vst [vmem:[#allocation2 + $0x18] sm:$0xff] %v908_v1 }
 0x27b   : > { %v912_v18 = vpop.f32.mrf.mxu1 }
 0x27c   : > { %v913_v19 = vadd.f32 %v2902_v6, %v912_v18 }
 0x27d   : > { %v3197_v20 = vpop.f32.mrf.mxu1 }
 0x27e   : > { %930 = vst [vmem:[#allocation2 + $0x20] sm:$0xff] %v913_v19 }
 0x27f   : > { %v917_v21 = vpop.f32.mrf.mxu1 }
 0x280   : > { %v918_v22 = vadd.f32 %v2902_v6, %v917_v21 }
 0x281   : > { %v3200_v23 = vpop.f32.mrf.mxu1 }
 0x282   : > { %931 = vst [vmem:[#allocation2 + $0x28] sm:$0xff] %v918_v22 }
 0x283   : > { %v922_v24 = vpop.f32.mrf.mxu1 }
 0x284   : > { %v923_v25 = vadd.f32 %v2902_v6, %v922_v24 }
 0x285   : > { %v3203_v26 = vpop.f32.mrf.mxu1 }
 0x286   : > { %932 = vst [vmem:[#allocation2 + $0x30] sm:$0xff] %v923_v25 }
 0x287 PF: > { %v978_v27 = vld [vmem:[#allocation12 + $0x78] sm:$0xff]  ;;  %v977_v28 = vld [vmem:[#allocation12 + $0x70] sm:$0xff]  ;;  %v976_v29 = vld [vmem:[#allocation12 + $0x68] sm:$0xff]  ;;  %s4895_s5 = sld [smem:[#allocation39_spill]]  ;;  %s4402_s19 = sshll.u32 %s4079_s7, 7 }
 0x288   : > { %3204 = vmatprep.subr.mxu0 %v978_v27  ;;  %v975_v30 = vld [vmem:[#allocation12 + $0x60] sm:$0xff]  ;;  %v974_v32 = vld [vmem:[#allocation12 + $0x58] sm:$0xff]  ;;  %v973_v33 = vld [vmem:[#allocation12 + $0x50] sm:$0xff]  ;;  %s1371_s23 = sadd.s32 8, %s4402_s19  ;;  %s1381_s30 = sadd.s32 10, %s4402_s19 }
 0x289   : > { %3205 = vmatpush3.msra.mxu0 %v978_v27  ;;  %v947_v31 = vld [vmem:[%s4268_s20] sm:$0xff]  ;;  %v972_v34 = vld [vmem:[#allocation12 + $0x48] sm:$0xff]  ;;  %v1162_v35 = vld [vmem:[#allocation13 + $0x78] sm:$0xff]  ;;  %s1372_s12 = sld [smem:[#allocation6 + %s1371_s23]]  ;;  %s1386_s21 = sadd.s32 11, %s4402_s19 }
 0x28a   : > { %3206 = vmatprep.subr.mxu0 %v977_v28  ;;  %3236 = vmatprep.mubr.f32.mxu0 %v947_v31  ;;  %v1161_v36 = vld [vmem:[#allocation13 + $0x70] sm:$0xff]  ;;  %v971_v37 = vld [vmem:[#allocation12 + $0x40] sm:$0xff]  ;;  %v1160_v38 = vld [vmem:[#allocation13 + $0x68] sm:$0xff]  ;;  %s1382_s26 = sld [smem:[#allocation6 + %s1381_s30]]  ;;  %s1391_s14 = sadd.s32 12, %s4402_s19 }
 0x28b   : > { %3207 = vmatpush3.msra.mxu0 %v977_v28  ;;  %3260 = vmatprep.subr.mxu1 %v1162_v35  ;;  %v970_v39 = vld [vmem:[#allocation12 + $0x38] sm:$0xff]  ;;  %v1159_v40 = vld [vmem:[#allocation13 + $0x60] sm:$0xff]  ;;  %v969_v41 = vld [vmem:[#allocation12 + $0x30] sm:$0xff]  ;;  %s1387_s17 = sld [smem:[#allocation6 + %s1386_s21]]  ;;  %s1396_s8 = sadd.s32 13, %s4402_s19 }
 0x28c   : > { %3208 = vmatprep.subr.mxu0 %v976_v29  ;;  %3261 = vmatpush3.msra.mxu1 %v1162_v35  ;;  %v1158_v42 = vld [vmem:[#allocation13 + $0x58] sm:$0xff]  ;;  %v968_v43 = vld [vmem:[#allocation12 + $0x28] sm:$0xff]  ;;  %v1157_v44 = vld [vmem:[#allocation13 + $0x50] sm:$0xff]  ;;  %s1392_s6 = sld [smem:[#allocation6 + %s1391_s14]]  ;;  %s1401_s18 = sadd.s32 14, %s4402_s19 }
 0x28d   : > { %3209 = vmatpush3.msra.mxu0 %v976_v29  ;;  %3262 = vmatprep.subr.mxu1 %v1161_v36  ;;  %v967_v45 = vld [vmem:[#allocation12 + $0x20] sm:$0xff]  ;;  %v1156_v46 = vld [vmem:[#allocation13 + $0x48] sm:$0xff]  ;;  %v966_v47 = vld [vmem:[#allocation12 + $0x18] sm:$0xff]  ;;  %s1397_s2 = sld [smem:[#allocation6 + %s1396_s8]]  ;;  %s1336_s21 = sadd.s32 1, %s4402_s19 }
 0x28e   : > { %3210 = vmatprep.subr.mxu0 %v975_v30  ;;  %3263 = vmatpush3.msra.mxu1 %v1161_v36  ;;  %v1155_v48 = vld [vmem:[#allocation13 + $0x40] sm:$0xff]  ;;  %v965_v49 = vld [vmem:[#allocation12 + $0x10] sm:$0xff]  ;;  %v1154_v50 = vld [vmem:[#allocation13 + $0x38] sm:$0xff]  ;;  %s1402_s9 = sld [smem:[#allocation6 + %s1401_s18]]  ;;  %p2922_p1 = scmp.ne.s32.totalorder %s4079_s7, 2 }
 0x28f   : > { %3211 = vmatpush3.msra.mxu0 %v975_v30  ;;  %3264 = vmatprep.subr.mxu1 %v1160_v38  ;;  %v964_v51 = vld [vmem:[#allocation12 + $0x8] sm:$0xff]  ;;  %v1153_v52 = vld [vmem:[#allocation13 + $0x30] sm:$0xff]  ;;  %v963_v53 = vld [vmem:[#allocation12] sm:$0xff]  ;;  %s1373_s11 = scalar_lea.vmem [#allocation2], %s1372_s12  ;;  %s4418_s8 = sld [smem:[#allocation6 + %s1336_s21]] }
 0x290   : > { %3212 = vmatprep.subr.mxu0 %v974_v32  ;;  %3265 = vmatpush3.msra.mxu1 %v1160_v38  ;;  %v1152_v54 = vld [vmem:[#allocation13 + $0x28] sm:$0xff]  ;;  %v1151_v56 = vld [vmem:[#allocation13 + $0x20] sm:$0xff]  ;;  %v949_v57 = vld [vmem:[%s4268_s20 + $0x10] sm:$0xff]  ;;  %s1383_s30 = scalar_lea.vmem [#allocation2], %s1382_s26  ;;  %s1346_s26 = sadd.s32 3, %s4402_s19 }
 0x291   : > { %3213 = vmatpush3.msra.mxu0 %v974_v32  ;;  %3266 = vmatprep.subr.mxu1 %v1159_v40  ;;  %v948_v55 = vld [vmem:[%s4268_s20 + $0x8] sm:$0xff]  ;;  %v950_v58 = vld [vmem:[%s4268_s20 + $0x18] sm:$0xff]  ;;  %v951_v59 = vld [vmem:[%s4268_s20 + $0x20] sm:$0xff]  ;;  %s1388_s14 = scalar_lea.vmem [#allocation2], %s1387_s17 }
 0x292   : > { %3214 = vmatprep.subr.mxu0 %v973_v33  ;;  %3267 = vmatpush3.msra.mxu1 %v1159_v40  ;;  %v952_v60 = vld [vmem:[%s4268_s20 + $0x28] sm:$0xff]  ;;  %v953_v61 = vld [vmem:[%s4268_s20 + $0x30] sm:$0xff]  ;;  %v954_v62 = vld [vmem:[%s4268_s20 + $0x38] sm:$0xff] }
 0x293   : > { %3215 = vmatpush3.msra.mxu0 %v973_v33  ;;  %3268 = vmatprep.subr.mxu1 %v1158_v42  ;;  %v955_v63 = vld [vmem:[%s4268_s20 + $0x40] sm:$0xff]  ;;  %v956_v0 = vld [vmem:[%s4268_s20 + $0x48] sm:$0xff]  ;;  %v957_v2 = vld [vmem:[%s4268_s20 + $0x50] sm:$0xff]  ;;  %s1398_s18 = scalar_lea.vmem [#allocation2], %s1397_s2 }
 0x294   : > { %3216 = vmatprep.subr.mxu0 %v972_v34  ;;  %3269 = vmatpush3.msra.mxu1 %v1158_v42  ;;  %v958_v3 = vld [vmem:[%s4268_s20 + $0x58] sm:$0xff]  ;;  %v959_v4 = vld [vmem:[%s4268_s20 + $0x60] sm:$0xff]  ;;  %v960_v5 = vld [vmem:[%s4268_s20 + $0x68] sm:$0xff] }
 0x295   : > { %3217 = vmatpush3.msra.mxu0 %v972_v34  ;;  %3270 = vmatprep.subr.mxu1 %v1157_v44  ;;  %v961_v6 = vld [vmem:[%s4268_s20 + $0x70] sm:$0xff]  ;;  %v962_v7 = vld [vmem:[%s4268_s20 + $0x78] sm:$0xff]  ;;  %v1148_v10 = vld [vmem:[#allocation13 + $0x8] sm:$0xff]  ;;  %s1376_s20 = sadd.s32 9, %s4402_s19 }
 0x296   : > { %3218 = vmatprep.subr.mxu0 %v971_v37  ;;  %3271 = vmatpush3.msra.mxu1 %v1157_v44  ;;  %v1150_v8 = vld [vmem:[#allocation13 + $0x18] sm:$0xff]  ;;  %v1149_v9 = vld [vmem:[#allocation13 + $0x10] sm:$0xff]  ;;  %v1147_v11 = vld [vmem:[#allocation13] sm:$0xff]  ;;  %s1377_s25 = sld [smem:[#allocation6 + %s1376_s20]] }
 0x297   : > { %3219 = vmatpush3.msra.mxu0 %v971_v37  ;;  %3272 = vmatprep.subr.mxu1 %v1156_v46  ;;  %v2018_v12 = vld [vmem:[#allocation18 + $0x78] sm:$0xff]  ;;  %v2017_v13 = vld [vmem:[#allocation18 + $0x70] sm:$0xff]  ;;  %v2016_v14 = vld [vmem:[#allocation18 + $0x68] sm:$0xff]  ;;  %s4415_s20 = sld [smem:[#allocation6 + %s4402_s19]] }
 0x298   : > { %3220 = vmatprep.subr.mxu0 %v970_v39  ;;  %3273 = vmatpush3.msra.mxu1 %v1156_v46  ;;  %v2015_v15 = vld [vmem:[#allocation18 + $0x60] sm:$0xff]  ;;  %v2014_v16 = vld [vmem:[#allocation18 + $0x58] sm:$0xff]  ;;  %v2013_v1 = vld [vmem:[#allocation18 + $0x50] sm:$0xff] }
 0x299   : > { %3221 = vmatpush3.msra.mxu0 %v970_v39  ;;  %3274 = vmatprep.subr.mxu1 %v1155_v48  ;;  %v2012_v17 = vld [vmem:[#allocation18 + $0x48] sm:$0xff]  ;;  %v2011_v18 = vld [vmem:[#allocation18 + $0x40] sm:$0xff]  ;;  %v2010_v19 = vld [vmem:[#allocation18 + $0x38] sm:$0xff] }
 0x29a   : > { %3222 = vmatprep.subr.mxu0 %v969_v41  ;;  %3275 = vmatpush3.msra.mxu1 %v1155_v48  ;;  %v2009_v20 = vld [vmem:[#allocation18 + $0x30] sm:$0xff]  ;;  %v2008_v21 = vld [vmem:[#allocation18 + $0x28] sm:$0xff]  ;;  %v2007_v22 = vld [vmem:[#allocation18 + $0x20] sm:$0xff] }
 0x29b   : > { %3223 = vmatpush3.msra.mxu0 %v969_v41  ;;  %3276 = vmatprep.subr.mxu1 %v1154_v50  ;;  %v2903_v23 = vld [vmem:[%s4895_s5] ss:$0 sm:$0xff]  ;;  %s1406_s5 = sadd.s32 15, %s4402_s19 }
 0x29c   : > { %3224 = vmatprep.subr.mxu0 %v968_v43  ;;  %3277 = vmatpush3.msra.mxu1 %v1154_v50  ;;  %s4412_s29 = sld [smem:[#allocation6 + %s1406_s5]]  ;;  %s1378_s23 = scalar_lea.vmem [#allocation2], %s1377_s25 }
 0x29d   : > { %3225 = vmatpush3.msra.mxu0 %v968_v43  ;;  %3278 = vmatprep.subr.mxu1 %v1153_v52  ;;  %s1393_s5 = scalar_lea.vmem [#allocation2], %s1392_s6  ;;  %s1403_s25 = scalar_lea.vmem [#allocation2], %s1402_s9 }
 0x29e   : > { %3226 = vmatprep.subr.mxu0 %v967_v45  ;;  %3279 = vmatpush3.msra.mxu1 %v1153_v52  ;;  %s4425_s6 = sld [smem:[#allocation6 + %s1346_s26]]  ;;  %s1333_s2 = scalar_lea.vmem [#allocation2], %s4415_s20 }
 0x29f   : > { %3227 = vmatpush3.msra.mxu0 %v967_v45  ;;  %3280 = vmatprep.subr.mxu1 %v1152_v54 }
 0x2a0   : > { %3228 = vmatprep.subr.mxu0 %v966_v47  ;;  %3281 = vmatpush3.msra.mxu1 %v1152_v54 }
 0x2a1   : > { %3229 = vmatpush3.msra.mxu0 %v966_v47  ;;  %3282 = vmatprep.subr.mxu1 %v1151_v56 }
 0x2a2   : > { %3230 = vmatprep.subr.mxu0 %v965_v49  ;;  %3283 = vmatpush3.msra.mxu1 %v1151_v56  ;;  %s1408_s17 = scalar_lea.vmem [#allocation2], %s4412_s29  ;;  %s1338_s29 = scalar_lea.vmem [#allocation2], %s4418_s8 }
 0x2a3   : > { %3231 = vmatpush3.msra.mxu0 %v965_v49  ;;  %3284 = vmatprep.subr.mxu1 %v1150_v8 }
 0x2a4   : > { %3232 = vmatprep.subr.mxu0 %v964_v51  ;;  %3285 = vmatpush3.msra.mxu1 %v1150_v8  ;;  %s1348_s8 = scalar_lea.vmem [#allocation2], %s4425_s6  ;;  %s1466_s6 = sadd.s32 27, %s4402_s19 }
 0x2a5   : > { %3233 = vmatpush3.msra.mxu0 %v964_v51  ;;  %3286 = vmatprep.subr.mxu1 %v1149_v9 }
 0x2a6   : > { %3234 = vmatprep.subr.mxu0 %v963_v53  ;;  %3287 = vmatpush3.msra.mxu1 %v1149_v9  ;;  %v1374_v9 = vld [vmem:[%s1373_s11] sm:$0x1]  ;;  %s1341_s11 = sadd.s32 2, %s4402_s19 }
 0x2a7   : > { %3235 = vmatpush3.msra.mxu0 %v963_v53  ;;  %3288 = vmatprep.subr.mxu1 %v1148_v10  ;;  %1375 = vst [vmem:[#allocation4 + $0x8] sm:$0x1] %v1374_v9  ;;  %s4421_s12 = sld [smem:[#allocation6 + %s1341_s11]]  ;;  %s1366_s11 = sadd.s32 7, %s4402_s19 }
 0x2a8   : > { %3237 = vmatmul.mubr.f32.vlgmr.msra.gmra.mxu0 %v948_v55  ;;  %3289 = vmatpush3.msra.mxu1 %v1148_v10  ;;  %v1379_v10 = vld [vmem:[%s1378_s23] sm:$0x1]  ;;  %s1351_s23 = sadd.s32 4, %s4402_s19 }
 0x2a9   : > { %3239 = vmatprep.mubr.f32.mxu0 %v949_v57  ;;  %3290 = vmatprep.subr.mxu1 %v1147_v11  ;;  %1380 = vst [vmem:[#allocation4 + $0x9] sm:$0x1] %v1379_v10  ;;  %s1352_s9 = sld [smem:[#allocation6 + %s1351_s23]] }
 0x2aa   : > { %3291 = vmatpush3.msra.mxu1 %v1147_v11  ;;  %3316 = vmatprep.subr.mxu0 %v2018_v12  ;;  %v1384_v11 = vld [vmem:[%s1383_s30] sm:$0x1]  ;;  %s1356_s30 = sadd.s32 5, %s4402_s19 }
 0x2ab   : > { %3317 = vmatpush3.msra.mxu0 %v2018_v12  ;;  %1385 = vst [vmem:[#allocation4 + $0xa] sm:$0x1] %v1384_v11  ;;  %v1389_v12 = vld [vmem:[%s1388_s14] sm:$0x1]  ;;  %s1357_s21 = sld [smem:[#allocation6 + %s1356_s30]]  ;;  %s1361_s14 = sadd.s32 6, %s4402_s19 }
 0x2ac   : > { %3240 = vmatmul.mubr.f32.gmra.mxu0 %v950_v58  ;;  %3318 = vmatprep.subr.mxu0 %v2017_v13  ;;  %1390 = vst [vmem:[#allocation4 + $0xb] sm:$0x1] %v1389_v12  ;;  %s1362_s20 = sld [smem:[#allocation6 + %s1361_s14]]  ;;  %s1461_s30 = sadd.s32 26, %s4402_s19 }
 0x2ad   : > { %3242 = vmatprep.mubr.f32.mxu0 %v951_v59  ;;  %3319 = vmatpush3.msra.mxu0 %v2017_v13  ;;  %v1394_v13 = vld [vmem:[%s1393_s5] sm:$0x1]  ;;  %s1343_s5 = scalar_lea.vmem [#allocation2], %s4421_s12 }
 0x2ae   : > { %3320 = vmatprep.subr.mxu0 %v2016_v14  ;;  %1395 = vst [vmem:[#allocation4 + $0xc] sm:$0x1] %v1394_v13 }
 0x2af   : > { %3321 = vmatpush3.msra.mxu0 %v2016_v14  ;;  %v1399_v14 = vld [vmem:[%s1398_s18] sm:$0x1]  ;;  %s1451_s18 = sadd.s32 24, %s4402_s19  ;;  %s1353_s23 = scalar_lea.vmem [#allocation2], %s1352_s9 }
 0x2b0   : > { %3243 = vmatmul.mubr.f32.gmra.mxu0 %v952_v60  ;;  %3322 = vmatprep.subr.mxu0 %v2015_v15  ;;  %1400 = vst [vmem:[#allocation4 + $0xd] sm:$0x1] %v1399_v14  ;;  %s1452_s26 = sld [smem:[#allocation6 + %s1451_s18]] }
 0x2b1   : > { %3245 = vmatprep.mubr.f32.mxu0 %v953_v61  ;;  %3323 = vmatpush3.msra.mxu0 %v2015_v15  ;;  %v2006_v15 = vld [vmem:[#allocation18 + $0x18] sm:$0xff]  ;;  %s1358_s12 = scalar_lea.vmem [#allocation2], %s1357_s21  ;;  %s1476_s21 = sadd.s32 29, %s4402_s19 }
 0x2b2   : > { %3324 = vmatprep.subr.mxu0 %v2014_v16  ;;  %s1363_s14 = scalar_lea.vmem [#allocation2], %s1362_s20  ;;  %s1481_s20 = sadd.s32 30, %s4402_s19 }
 0x2b3   : > { %3325 = vmatpush3.msra.mxu0 %v2014_v16  ;;  %v1404_v16 = vld [vmem:[%s1403_s25] sm:$0x1]  ;;  %s1367_s25 = sld [smem:[#allocation6 + %s1366_s11]] }
 0x2b4   : > { %3246 = vmatmul.mubr.f32.gmra.mxu0 %v954_v62  ;;  %3326 = vmatprep.subr.mxu0 %v2013_v1  ;;  %1405 = vst [vmem:[#allocation4 + $0xe] sm:$0x1] %v1404_v16  ;;  %s1467_s11 = sld [smem:[#allocation6 + %s1466_s6]] }
 0x2b5   : > { %3248 = vmatprep.mubr.f32.mxu0 %v955_v63  ;;  %3327 = vmatpush3.msra.mxu0 %v2013_v1  ;;  %v1409_v1 = vld [vmem:[%s1408_s17] sm:$0x1]  ;;  %s1456_s17 = sadd.s32 25, %s4402_s19 }
 0x2b6   : > { %3328 = vmatprep.subr.mxu0 %v2012_v17  ;;  %1410 = vst [vmem:[#allocation4 + $0xf] sm:$0x1] %v1409_v1 }
 0x2b7   : > { %3329 = vmatpush3.msra.mxu0 %v2012_v17  ;;  %v2005_v17 = vld [vmem:[#allocation18 + $0x10] sm:$0xff] }
 0x2b8   : > { %3249 = vmatmul.mubr.f32.gmra.mxu0 %v956_v0  ;;  %3330 = vmatprep.subr.mxu0 %v2011_v18 }
 0x2b9   : > { %3251 = vmatprep.mubr.f32.mxu0 %v957_v2  ;;  %3331 = vmatpush3.msra.mxu0 %v2011_v18  ;;  %v1334_v18 = vld [vmem:[%s1333_s2] sm:$0x1]  ;;  %s1457_s2 = sld [smem:[#allocation6 + %s1456_s17]]  ;;  %s1368_s18 = scalar_lea.vmem [#allocation2], %s1367_s25 }
 0x2ba   : > { %3332 = vmatprep.subr.mxu0 %v2010_v19  ;;  %1335 = vst [vmem:[#allocation4] sm:$0x1] %v1334_v18  ;;  %s1486_s25 = sadd.s32 31, %s4402_s19 }
 0x2bb   : > { %3333 = vmatpush3.msra.mxu0 %v2010_v19  ;;  %v2004_v19 = vld [vmem:[#allocation18 + $0x8] sm:$0xff]  ;;  %s1487_s6 = sld [smem:[#allocation6 + %s1486_s25]] }
 0x2bc   : > { %3252 = vmatmul.mubr.f32.gmra.mxu0 %v958_v3  ;;  %3334 = vmatprep.subr.mxu0 %v2009_v20 }
 0x2bd   : > { %3254 = vmatprep.mubr.f32.mxu0 %v959_v4  ;;  %3335 = vmatpush3.msra.mxu0 %v2009_v20  ;;  %v1339_v20 = vld [vmem:[%s1338_s29] sm:$0x1]  ;;  %s1462_s29 = sld [smem:[#allocation6 + %s1461_s30]] }
 0x2be   : > { %3336 = vmatprep.subr.mxu0 %v2008_v21  ;;  %1340 = vst [vmem:[#allocation4 + $0x1] sm:$0x1] %v1339_v20  ;;  %s1482_s30 = sld [smem:[#allocation6 + %s1481_s20]] }
 0x2bf   : > { %3337 = vmatpush3.msra.mxu0 %v2008_v21  ;;  %v2003_v21 = vld [vmem:[#allocation18] sm:$0xff]  ;;  %s1458_s17 = scalar_lea.vmem [#allocation2], %s1457_s2 }
 0x2c0   : > { %3255 = vmatmul.mubr.f32.gmra.mxu0 %v960_v5  ;;  %3338 = vmatprep.subr.mxu0 %v2007_v22 }
 0x2c1   : > { %3257 = vmatprep.mubr.f32.mxu0 %v961_v6  ;;  %3339 = vmatpush3.msra.mxu0 %v2007_v22  ;;  %v1344_v22 = vld [vmem:[%s1343_s5] sm:$0x1]  ;;  %s1471_s5 = sadd.s32 28, %s4402_s19 }
 0x2c2   : > { %3340 = vmatprep.subr.mxu0 %v2006_v15  ;;  %1345 = vst [vmem:[#allocation4 + $0x2] sm:$0x1] %v1344_v22  ;;  %s1472_s9 = sld [smem:[#allocation6 + %s1471_s5]]  ;;  %s1468_s5 = scalar_lea.vmem [#allocation2], %s1467_s11 }
 0x2c3   : > { %3341 = vmatpush3.msra.mxu0 %v2006_v15  ;;  %s1426_s11 = sadd.s32 19, %s4402_s19 }
 0x2c4   : > { %3258 = vmatmul.mubr.f32.gmra.mxu0 %v962_v7  ;;  %3342 = vmatprep.subr.mxu0 %v2005_v17  ;;  %s1483_s20 = scalar_lea.vmem [#allocation2], %s1482_s30  ;;  %s1427_s25 = sld [smem:[#allocation6 + %s1426_s11]] }
 0x2c5   : > { %3343 = vmatpush3.msra.mxu0 %v2005_v17 }
 0x2c6   : > { %3344 = vmatprep.subr.mxu0 %v2004_v19 }
 0x2c7   : > { %3345 = vmatpush3.msra.mxu0 %v2004_v19 }
 0x2c8   : > { %3346 = vmatprep.subr.mxu0 %v2003_v21  ;;  %s1473_s2 = scalar_lea.vmem [#allocation2], %s1472_s9 }
 0x2c9   : > { %3347 = vmatpush3.msra.mxu0 %v2003_v21 }
 0x368   : > { %v3238_v24 = vpop.f32.mrf.mxu0 }
 0x369   : > { %v1058_v25 = vadd.f32 %v3238_v24, %v2903_v23  ;;  %v1354_v24 = vld [vmem:[%s1353_s23] sm:$0x1]  ;;  %s1477_s23 = sld [smem:[#allocation6 + %s1476_s21]] }
 0x36a   : > { %v1052_v26 = vpop.f32.mrf.mxu0  ;;  %1355 = vst [vmem:[#allocation4 + $0x4] sm:$0x1] %v1354_v24 }
 0x36b   : > { %v1053_v27 = vadd.f32 %v2903_v23, %v1052_v26  ;;  %v1132_v30 = vmax.f32 %v1058_v25, 0.0  ;;  %v1359_v25 = vld [vmem:[%s1358_s12] sm:$0x1]  ;;  %s1463_s12 = scalar_lea.vmem [#allocation2], %s1462_s29 }
 0x36c   : > { %v3241_v28 = vpop.f32.mrf.mxu0  ;;  %1360 = vst [vmem:[#allocation4 + $0x5] sm:$0x1] %v1359_v25  ;;  %v1364_v26 = vld [vmem:[%s1363_s14] sm:$0x1]  ;;  %s1411_s14 = sadd.s32 16, %s4402_s19 }
 0x36d   : > { %v1131_v29 = vmax.f32 %v1053_v27, 0.0  ;;  %v1068_v31 = vadd.f32 %v3241_v28, %v2903_v23  ;;  %1365 = vst [vmem:[#allocation4 + $0x6] sm:$0x1] %v1364_v26  ;;  %v1369_v27 = vld [vmem:[%s1368_s18] sm:$0x1]  ;;  %s1416_s18 = sadd.s32 17, %s4402_s19 }
 0x36e   : > { %v1062_v32 = vpop.f32.mrf.mxu0  ;;  %1370 = vst [vmem:[#allocation4 + $0x7] sm:$0x1] %v1369_v27  ;;  %s1417_s21 = sld [smem:[#allocation6 + %s1416_s18]] }
 0x36f   : > { %v1063_v33 = vadd.f32 %v2903_v23, %v1062_v32  ;;  %3292 = vmatprep.mubr.f32.mxu1 %v1131_v29  ;;  %v1134_v36 = vmax.f32 %v1068_v31, 0.0  ;;  %v1459_v29 = vld [vmem:[%s1458_s17] sm:$0x1]  ;;  %s1478_s17 = scalar_lea.vmem [#allocation2], %s1477_s23  ;;  %s1436_s23 = sadd.s32 21, %s4402_s19 }
 0x370   : > { %v3244_v34 = vpop.f32.mrf.mxu0  ;;  %3293 = vmatmul.mubr.f32.vlgmr.msra.gmra.mxu1 %v1132_v30  ;;  %1460 = vst [vmem:[#allocation4 + $0x19] sm:$0x1] %v1459_v29  ;;  %v1464_v30 = vld [vmem:[%s1463_s12] sm:$0x1]  ;;  %s1431_s12 = sadd.s32 20, %s4402_s19  ;;  %s1437_s18 = sld [smem:[#allocation6 + %s1436_s23]] }
 0x371   : > { %v1133_v35 = vmax.f32 %v1063_v33, 0.0  ;;  %v1078_v37 = vadd.f32 %v3244_v34, %v2903_v23  ;;  %1465 = vst [vmem:[#allocation4 + $0x1a] sm:$0x1] %v1464_v30  ;;  %v1469_v31 = vld [vmem:[%s1468_s5] sm:$0x1]  ;;  %s1432_s9 = sld [smem:[#allocation6 + %s1431_s12]] }
 0x372   : > { %v1072_v38 = vpop.f32.mrf.mxu0  ;;  %1470 = vst [vmem:[#allocation4 + $0x1b] sm:$0x1] %v1469_v31  ;;  %v1474_v32 = vld [vmem:[%s1473_s2] sm:$0x1]  ;;  %s1441_s2 = sadd.s32 22, %s4402_s19  ;;  %s1428_s12 = scalar_lea.vmem [#allocation2], %s1427_s25 }
 0x373   : > { %v1073_v39 = vadd.f32 %v2903_v23, %v1072_v38  ;;  %3295 = vmatprep.mubr.f32.mxu1 %v1133_v35  ;;  %v1136_v42 = vmax.f32 %v1078_v37, 0.0  ;;  %1475 = vst [vmem:[#allocation4 + $0x1c] sm:$0x1] %v1474_v32  ;;  %v1479_v33 = vld [vmem:[%s1478_s17] sm:$0x1]  ;;  %s1442_s30 = sld [smem:[#allocation6 + %s1441_s2]] }
 0x374   : > { %v3247_v40 = vpop.f32.mrf.mxu0  ;;  %3296 = vmatmul.mubr.f32.gmra.mxu1 %v1134_v36  ;;  %1480 = vst [vmem:[#allocation4 + $0x1d] sm:$0x1] %v1479_v33  ;;  %v1484_v34 = vld [vmem:[%s1483_s20] sm:$0x1]  ;;  %s1531_s20 = sadd.s32 40, %s4402_s19  ;;  %s1546_s25 = sadd.s32 43, %s4402_s19 }
 0x375   : > { %v1135_v41 = vmax.f32 %v1073_v39, 0.0  ;;  %v1088_v43 = vadd.f32 %v3247_v40, %v2903_v23  ;;  %1485 = vst [vmem:[#allocation4 + $0x1e] sm:$0x1] %v1484_v34  ;;  %v1429_v39 = vld [vmem:[%s1428_s12] sm:$0x1] }
 0x376   : > { %v1082_v44 = vpop.f32.mrf.mxu0  ;;  %1430 = vst [vmem:[#allocation4 + $0x13] sm:$0x1] %v1429_v39  ;;  %s1438_s2 = scalar_lea.vmem [#allocation2], %s1437_s18  ;;  %s1556_s18 = sadd.s32 45, %s4402_s19 }
 0x377   : > { %v1083_v45 = vadd.f32 %v2903_v23, %v1082_v44  ;;  %3298 = vmatprep.mubr.f32.mxu1 %v1135_v41  ;;  %v1138_v48 = vmax.f32 %v1088_v43, 0.0  ;;  %v1439_v41 = vld [vmem:[%s1438_s2] sm:$0x1] }
 0x378   : > { %v3250_v46 = vpop.f32.mrf.mxu0  ;;  %3299 = vmatmul.mubr.f32.gmra.mxu1 %v1136_v42  ;;  %1440 = vst [vmem:[#allocation4 + $0x15] sm:$0x1] %v1439_v41 }
 0x379   : > { %v1137_v47 = vmax.f32 %v1083_v45, 0.0  ;;  %v1098_v49 = vadd.f32 %v3250_v46, %v2903_v23 }
 0x37a   : > { %v1092_v50 = vpop.f32.mrf.mxu0 }
 0x37b   : > { %v1093_v51 = vadd.f32 %v2903_v23, %v1092_v50  ;;  %3301 = vmatprep.mubr.f32.mxu1 %v1137_v47  ;;  %v1140_v54 = vmax.f32 %v1098_v49, 0.0 }
 0x37c   : > { %v3253_v52 = vpop.f32.mrf.mxu0  ;;  %3302 = vmatmul.mubr.f32.gmra.mxu1 %v1138_v48 }
 0x37d   : > { %v1139_v53 = vmax.f32 %v1093_v51, 0.0  ;;  %v1108_v55 = vadd.f32 %v3253_v52, %v2903_v23 }
 0x37e   : > { %v1102_v56 = vpop.f32.mrf.mxu0 }
 0x37f   : > { %v1103_v57 = vadd.f32 %v2903_v23, %v1102_v56  ;;  %3304 = vmatprep.mubr.f32.mxu1 %v1139_v53  ;;  %v1142_v60 = vmax.f32 %v1108_v55, 0.0 }
 0x380   : > { %v3256_v58 = vpop.f32.mrf.mxu0  ;;  %3305 = vmatmul.mubr.f32.gmra.mxu1 %v1140_v54 }
 0x381   : > { %v1141_v59 = vmax.f32 %v1103_v57, 0.0  ;;  %v1118_v61 = vadd.f32 %v3256_v58, %v2903_v23 }
 0x382   : > { %v1112_v62 = vpop.f32.mrf.mxu0 }
 0x383   : > { %v1113_v63 = vadd.f32 %v2903_v23, %v1112_v62  ;;  %3307 = vmatprep.mubr.f32.mxu1 %v1141_v59  ;;  %v1144_v3 = vmax.f32 %v1118_v61, 0.0 }
 0x384   : > { %v3259_v0 = vpop.f32.mrf.mxu0  ;;  %3308 = vmatmul.mubr.f32.gmra.mxu1 %v1142_v60 }
 0x385   : > { %v1143_v2 = vmax.f32 %v1113_v63, 0.0  ;;  %v1128_v4 = vadd.f32 %v3259_v0, %v2903_v23 }
 0x386   : > { %v1122_v5 = vpop.f32.mrf.mxu0 }
 0x387   : > { %v1123_v6 = vadd.f32 %v2903_v23, %v1122_v5  ;;  %3310 = vmatprep.mubr.f32.mxu1 %v1143_v2  ;;  %v1146_v8 = vmax.f32 %v1128_v4, 0.0  ;;  %v1349_v23 = vld [vmem:[%s1348_s8] sm:$0x1]  ;;  %s1453_s8 = scalar_lea.vmem [#allocation2], %s1452_s26  ;;  %s1412_s26 = sld [smem:[#allocation6 + %s1411_s14]] }
 0x388   : > { %3311 = vmatmul.mubr.f32.gmra.mxu1 %v1144_v3  ;;  %1350 = vst [vmem:[#allocation4 + $0x3] sm:$0x1] %v1349_v23  ;;  %v1454_v28 = vld [vmem:[%s1453_s8] sm:$0x1]  ;;  %s1421_s8 = sadd.s32 18, %s4402_s19  ;;  %s1488_s14 = scalar_lea.vmem [#allocation2], %s1487_s6 }
 0x389   : > { %v1145_v7 = vmax.f32 %v1123_v6, 0.0  ;;  %1455 = vst [vmem:[#allocation4 + $0x18] sm:$0x1] %v1454_v28  ;;  %s1422_s29 = sld [smem:[#allocation6 + %s1421_s8]]  ;;  %v1489_v35 = vld [vmem:[%s1488_s14] sm:$0x1] }
 0x38a   : > { %1490 = vst [vmem:[#allocation4 + $0x1f] sm:$0x1] %v1489_v35  ;;  %s1418_s8 = scalar_lea.vmem [#allocation2], %s1417_s21  ;;  %s1446_s6 = sadd.s32 23, %s4402_s19 }
 0x38b   : > { %3313 = vmatprep.mubr.f32.mxu1 %v1145_v7  ;;  %v1419_v37 = vld [vmem:[%s1418_s8] sm:$0x1]  ;;  %s1447_s11 = sld [smem:[#allocation6 + %s1446_s6]]  ;;  %s1433_s14 = scalar_lea.vmem [#allocation2], %s1432_s9 }
 0x38c   : > { %3314 = vmatmul.mubr.f32.gmra.mxu1 %v1146_v8  ;;  %1420 = vst [vmem:[#allocation4 + $0x11] sm:$0x1] %v1419_v37  ;;  %v1434_v40 = vld [vmem:[%s1433_s14] sm:$0x1]  ;;  %s1536_s21 = sadd.s32 41, %s4402_s19  ;;  %s1443_s8 = scalar_lea.vmem [#allocation2], %s1442_s30 }
 0x38d   : > { %s1413_s5 = scalar_lea.vmem [#allocation2], %s1412_s26  ;;  %s1532_s26 = sld [smem:[#allocation6 + %s1531_s20]]  ;;  %1435 = vst [vmem:[#allocation4 + $0x14] sm:$0x1] %v1434_v40  ;;  %v1444_v42 = vld [vmem:[%s1443_s8] sm:$0x1] }
 0x38e   : > { %v1414_v36 = vld [vmem:[%s1413_s5] sm:$0x1]  ;;  %s1541_s5 = sadd.s32 42, %s4402_s19  ;;  %s1537_s23 = sld [smem:[#allocation6 + %s1536_s21]]  ;;  %1445 = vst [vmem:[#allocation4 + $0x16] sm:$0x1] %v1444_v42 }
 0x38f   : > { %1415 = vst [vmem:[#allocation4 + $0x10] sm:$0x1] %v1414_v36  ;;  %s1423_s17 = scalar_lea.vmem [#allocation2], %s1422_s29  ;;  %s1542_s29 = sld [smem:[#allocation6 + %s1541_s5]] }
 0x390   : > { %v1424_v38 = vld [vmem:[%s1423_s17] sm:$0x1]  ;;  %s1551_s17 = sadd.s32 44, %s4402_s19  ;;  %s1547_s6 = sld [smem:[#allocation6 + %s1546_s25]] }
 0x391   : > { %1425 = vst [vmem:[#allocation4 + $0x12] sm:$0x1] %v1424_v38  ;;  %s1448_s20 = scalar_lea.vmem [#allocation2], %s1447_s11  ;;  %s1552_s9 = sld [smem:[#allocation6 + %s1551_s17]] }
 0x392   : > { %v1449_v43 = vld [vmem:[%s1448_s20] sm:$0x1]  ;;  %s1561_s14 = sadd.s32 46, %s4402_s19  ;;  %s1557_s21 = sld [smem:[#allocation6 + %s1556_s18]] }
 0x393   : > { %1450 = vst [vmem:[#allocation4 + $0x17] sm:$0x1] %v1449_v43  ;;  %s1533_s12 = scalar_lea.vmem [#allocation2], %s1532_s26  ;;  %s1562_s30 = sld [smem:[#allocation6 + %s1561_s14]] }
 0x394   : > { %v1534_v44 = vld [vmem:[%s1533_s12] sm:$0x1]  ;;  %s1538_s5 = scalar_lea.vmem [#allocation2], %s1537_s23  ;;  %s1566_s11 = sadd.s32 47, %s4402_s19 }
 0x395   : > { %1535 = vst [vmem:[#allocation4 + $0x28] sm:$0x1] %v1534_v44  ;;  %v1539_v45 = vld [vmem:[%s1538_s5] sm:$0x1]  ;;  %s1543_s2 = scalar_lea.vmem [#allocation2], %s1542_s29  ;;  %s1491_s8 = sadd.s32 32, %s4402_s19 }
 0x396   : > { %1540 = vst [vmem:[#allocation4 + $0x29] sm:$0x1] %v1539_v45  ;;  %v1544_v46 = vld [vmem:[%s1543_s2] sm:$0x1]  ;;  %s1567_s25 = sld [smem:[#allocation6 + %s1566_s11]]  ;;  %s1548_s17 = scalar_lea.vmem [#allocation2], %s1547_s6 }
 0x397   : > { %1545 = vst [vmem:[#allocation4 + $0x2a] sm:$0x1] %v1544_v46  ;;  %v1549_v47 = vld [vmem:[%s1548_s17] sm:$0x1]  ;;  %s1492_s26 = sld [smem:[#allocation6 + %s1491_s8]]  ;;  %s1553_s20 = scalar_lea.vmem [#allocation2], %s1552_s9 }
 0x398   : > { %1550 = vst [vmem:[#allocation4 + $0x2b] sm:$0x1] %v1549_v47  ;;  %v1554_v48 = vld [vmem:[%s1553_s20] sm:$0x1]  ;;  %s1496_s23 = sadd.s32 33, %s4402_s19  ;;  %s1501_s12 = sadd.s32 34, %s4402_s19 }
 0x399   : > { %1555 = vst [vmem:[#allocation4 + $0x2c] sm:$0x1] %v1554_v48  ;;  %s1497_s18 = sld [smem:[#allocation6 + %s1496_s23]]  ;;  %s1558_s14 = scalar_lea.vmem [#allocation2], %s1557_s21  ;;  %v1971_v45 = vld [vmem:[#allocation4] sm:$0xff]  ;;  %v1972_v46 = vld [vmem:[#allocation4 + $0x8] sm:$0xff] }
 0x39a   : > { %v1559_v49 = vld [vmem:[%s1558_s14] sm:$0x1]  ;;  %s1502_s29 = sld [smem:[#allocation6 + %s1501_s12]]  ;;  %s1563_s5 = scalar_lea.vmem [#allocation2], %s1562_s30 }
 0x39b   : > { %1560 = vst [vmem:[#allocation4 + $0x2d] sm:$0x1] %v1559_v49  ;;  %v1564_v50 = vld [vmem:[%s1563_s5] sm:$0x1]  ;;  %s1506_s6 = sadd.s32 35, %s4402_s19  ;;  %s1511_s2 = sadd.s32 36, %s4402_s19 }
 0x39c   : > { %1565 = vst [vmem:[#allocation4 + $0x2e] sm:$0x1] %v1564_v50  ;;  %s1507_s11 = sld [smem:[#allocation6 + %s1506_s6]]  ;;  %s1568_s8 = scalar_lea.vmem [#allocation2], %s1567_s25 }
 0x39d   : > { %v1569_v51 = vld [vmem:[%s1568_s8] sm:$0x1]  ;;  %s1512_s9 = sld [smem:[#allocation6 + %s1511_s2]]  ;;  %s1493_s17 = scalar_lea.vmem [#allocation2], %s1492_s26 }
 0x39e   : > { %1570 = vst [vmem:[#allocation4 + $0x2f] sm:$0x1] %v1569_v51  ;;  %v1494_v52 = vld [vmem:[%s1493_s17] sm:$0x1]  ;;  %s1516_s21 = sadd.s32 37, %s4402_s19  ;;  %s1521_s20 = sadd.s32 38, %s4402_s19 }
 0x39f   : > { %1495 = vst [vmem:[#allocation4 + $0x20] sm:$0x1] %v1494_v52  ;;  %s1517_s23 = sld [smem:[#allocation6 + %s1516_s21]]  ;;  %s1498_s12 = scalar_lea.vmem [#allocation2], %s1497_s18 }
 0x3a0   : > { %v1499_v53 = vld [vmem:[%s1498_s12] sm:$0x1]  ;;  %s1522_s30 = sld [smem:[#allocation6 + %s1521_s20]]  ;;  %s1503_s14 = scalar_lea.vmem [#allocation2], %s1502_s29 }
 0x3a1   : > { %1500 = vst [vmem:[#allocation4 + $0x21] sm:$0x1] %v1499_v53  ;;  %v1504_v54 = vld [vmem:[%s1503_s14] sm:$0x1]  ;;  %s1526_s25 = sadd.s32 39, %s4402_s19  ;;  %s1611_s5 = sadd.s32 56, %s4402_s19 }
 0x3a2   : > { %1505 = vst [vmem:[#allocation4 + $0x22] sm:$0x1] %v1504_v54  ;;  %s1527_s6 = sld [smem:[#allocation6 + %s1526_s25]]  ;;  %s1508_s2 = scalar_lea.vmem [#allocation2], %s1507_s11 }
 0x3a3   : > { %v1509_v55 = vld [vmem:[%s1508_s2] sm:$0x1]  ;;  %s1612_s26 = sld [smem:[#allocation6 + %s1611_s5]]  ;;  %s1513_s8 = scalar_lea.vmem [#allocation2], %s1512_s9 }
 0x3a4   : > { %1510 = vst [vmem:[#allocation4 + $0x23] sm:$0x1] %v1509_v55  ;;  %v1514_v56 = vld [vmem:[%s1513_s8] sm:$0x1]  ;;  %s1616_s18 = sadd.s32 57, %s4402_s19  ;;  %s1621_s17 = sadd.s32 58, %s4402_s19 }
 0x3a5   : > { %1515 = vst [vmem:[#allocation4 + $0x24] sm:$0x1] %v1514_v56  ;;  %s1617_s21 = sld [smem:[#allocation6 + %s1616_s18]]  ;;  %s1518_s20 = scalar_lea.vmem [#allocation2], %s1517_s23  ;;  %v1973_v55 = vld [vmem:[#allocation4 + $0x10] sm:$0xff] }
 0x3a6   : > { %v1519_v57 = vld [vmem:[%s1518_s20] sm:$0x1]  ;;  %s1622_s29 = sld [smem:[#allocation6 + %s1621_s17]]  ;;  %s1523_s12 = scalar_lea.vmem [#allocation2], %s1522_s30 }
 0x3a7   : > { %1520 = vst [vmem:[#allocation4 + $0x25] sm:$0x1] %v1519_v57  ;;  %v1524_v58 = vld [vmem:[%s1523_s12] sm:$0x1]  ;;  %s1626_s11 = sadd.s32 59, %s4402_s19  ;;  %s1631_s14 = sadd.s32 60, %s4402_s19 }
 0x3a8   : > { %1525 = vst [vmem:[#allocation4 + $0x26] sm:$0x1] %v1524_v58  ;;  %s1627_s25 = sld [smem:[#allocation6 + %s1626_s11]]  ;;  %s1528_s5 = scalar_lea.vmem [#allocation2], %s1527_s6  ;;  %v1974_v57 = vld [vmem:[#allocation4 + $0x18] sm:$0xff] }
 0x3a9   : > { %v1529_v59 = vld [vmem:[%s1528_s5] sm:$0x1]  ;;  %s1632_s9 = sld [smem:[#allocation6 + %s1631_s14]]  ;;  %s1613_s2 = scalar_lea.vmem [#allocation2], %s1612_s26 }
 0x3aa   : > { %1530 = vst [vmem:[#allocation4 + $0x27] sm:$0x1] %v1529_v59  ;;  %v1614_v60 = vld [vmem:[%s1613_s2] sm:$0x1]  ;;  %s1636_s23 = sadd.s32 61, %s4402_s19  ;;  %s1641_s8 = sadd.s32 62, %s4402_s19 }
 0x3ab   : > { %1615 = vst [vmem:[#allocation4 + $0x38] sm:$0x1] %v1614_v60  ;;  %s1637_s18 = sld [smem:[#allocation6 + %s1636_s23]]  ;;  %s1618_s17 = scalar_lea.vmem [#allocation2], %s1617_s21 }
 0x3ac   : > { %v1619_v61 = vld [vmem:[%s1618_s17] sm:$0x1]  ;;  %s1642_s30 = sld [smem:[#allocation6 + %s1641_s8]]  ;;  %s1623_s20 = scalar_lea.vmem [#allocation2], %s1622_s29 }
 0x3ad   : > { %1620 = vst [vmem:[#allocation4 + $0x39] sm:$0x1] %v1619_v61  ;;  %v1624_v62 = vld [vmem:[%s1623_s20] sm:$0x1]  ;;  %s1646_s6 = sadd.s32 63, %s4402_s19  ;;  %s1571_s12 = sadd.s32 48, %s4402_s19 }
 0x3ae   : > { %1625 = vst [vmem:[#allocation4 + $0x3a] sm:$0x1] %v1624_v62  ;;  %s1647_s11 = sld [smem:[#allocation6 + %s1646_s6]]  ;;  %s1628_s14 = scalar_lea.vmem [#allocation2], %s1627_s25 }
 0x3af   : > { %v1629_v63 = vld [vmem:[%s1628_s14] sm:$0x1]  ;;  %s1572_s26 = sld [smem:[#allocation6 + %s1571_s12]]  ;;  %s1633_s5 = scalar_lea.vmem [#allocation2], %s1632_s9 }
 0x3b0   : > { %1630 = vst [vmem:[#allocation4 + $0x3b] sm:$0x1] %v1629_v63  ;;  %v1634_v0 = vld [vmem:[%s1633_s5] sm:$0x1]  ;;  %s1576_s21 = sadd.s32 49, %s4402_s19  ;;  %s1581_s2 = sadd.s32 50, %s4402_s19 }
 0x3b1   : > { %1635 = vst [vmem:[#allocation4 + $0x3c] sm:$0x1] %v1634_v0  ;;  %s1577_s23 = sld [smem:[#allocation6 + %s1576_s21]]  ;;  %s1638_s8 = scalar_lea.vmem [#allocation2], %s1637_s18 }
 0x3b2   : > { %v1639_v2 = vld [vmem:[%s1638_s8] sm:$0x1]  ;;  %s1582_s29 = sld [smem:[#allocation6 + %s1581_s2]]  ;;  %s1643_s17 = scalar_lea.vmem [#allocation2], %s1642_s30 }
 0x3b3   : > { %1640 = vst [vmem:[#allocation4 + $0x3d] sm:$0x1] %v1639_v2  ;;  %v1644_v3 = vld [vmem:[%s1643_s17] sm:$0x1]  ;;  %s1586_s25 = sadd.s32 51, %s4402_s19  ;;  %s1591_s20 = sadd.s32 52, %s4402_s19 }
 0x3b4   : > { %1645 = vst [vmem:[#allocation4 + $0x3e] sm:$0x1] %v1644_v3  ;;  %s1587_s6 = sld [smem:[#allocation6 + %s1586_s25]]  ;;  %s1648_s12 = scalar_lea.vmem [#allocation2], %s1647_s11  ;;  %v1975_v3 = vld [vmem:[#allocation4 + $0x20] sm:$0xff] }
 0x3b5   : > { %v1649_v4 = vld [vmem:[%s1648_s12] sm:$0x1]  ;;  %s1592_s9 = sld [smem:[#allocation6 + %s1591_s20]]  ;;  %s1573_s14 = scalar_lea.vmem [#allocation2], %s1572_s26 }
 0x3b6   : > { %1650 = vst [vmem:[#allocation4 + $0x3f] sm:$0x1] %v1649_v4  ;;  %v1574_v5 = vld [vmem:[%s1573_s14] sm:$0x1]  ;;  %s1596_s18 = sadd.s32 53, %s4402_s19  ;;  %s1601_s5 = sadd.s32 54, %s4402_s19 }
 0x3b7   : > { %1575 = vst [vmem:[#allocation4 + $0x30] sm:$0x1] %v1574_v5  ;;  %s1597_s21 = sld [smem:[#allocation6 + %s1596_s18]]  ;;  %s1578_s2 = scalar_lea.vmem [#allocation2], %s1577_s23  ;;  %v1976_v5 = vld [vmem:[#allocation4 + $0x28] sm:$0xff] }
 0x3b8   : > { %v1579_v6 = vld [vmem:[%s1578_s2] sm:$0x1]  ;;  %s1602_s30 = sld [smem:[#allocation6 + %s1601_s5]]  ;;  %s1583_s8 = scalar_lea.vmem [#allocation2], %s1582_s29 }
 0x3b9   : > { %1580 = vst [vmem:[#allocation4 + $0x31] sm:$0x1] %v1579_v6  ;;  %v1584_v7 = vld [vmem:[%s1583_s8] sm:$0x1]  ;;  %s1606_s11 = sadd.s32 55, %s4402_s19  ;;  %s1691_s17 = sadd.s32 72, %s4402_s19 }
 0x3ba   : > { %1585 = vst [vmem:[#allocation4 + $0x32] sm:$0x1] %v1584_v7  ;;  %s1607_s25 = sld [smem:[#allocation6 + %s1606_s11]]  ;;  %s1588_s20 = scalar_lea.vmem [#allocation2], %s1587_s6 }
 0x3bb   : > { %v1589_v8 = vld [vmem:[%s1588_s20] sm:$0x1]  ;;  %s1692_s26 = sld [smem:[#allocation6 + %s1691_s17]]  ;;  %s1593_s12 = scalar_lea.vmem [#allocation2], %s1592_s9 }
 0x3bc   : > { %1590 = vst [vmem:[#allocation4 + $0x33] sm:$0x1] %v1589_v8  ;;  %v1594_v9 = vld [vmem:[%s1593_s12] sm:$0x1]  ;;  %s1696_s23 = sadd.s32 73, %s4402_s19  ;;  %s1701_s14 = sadd.s32 74, %s4402_s19 }
 0x3bd   : > { %1595 = vst [vmem:[#allocation4 + $0x34] sm:$0x1] %v1594_v9  ;;  %s1697_s18 = sld [smem:[#allocation6 + %s1696_s23]]  ;;  %s1598_s5 = scalar_lea.vmem [#allocation2], %s1597_s21 }
 0x3be   : > { %v1599_v10 = vld [vmem:[%s1598_s5] sm:$0x1]  ;;  %s1702_s29 = sld [smem:[#allocation6 + %s1701_s14]]  ;;  %s1603_s2 = scalar_lea.vmem [#allocation2], %s1602_s30 }
 0x3bf   : > { %1600 = vst [vmem:[#allocation4 + $0x35] sm:$0x1] %v1599_v10  ;;  %v1604_v11 = vld [vmem:[%s1603_s2] sm:$0x1]  ;;  %s1706_s6 = sadd.s32 75, %s4402_s19  ;;  %s1711_s8 = sadd.s32 76, %s4402_s19 }
 0x3c0   : > { %1605 = vst [vmem:[#allocation4 + $0x36] sm:$0x1] %v1604_v11  ;;  %s1707_s11 = sld [smem:[#allocation6 + %s1706_s6]]  ;;  %s1608_s17 = scalar_lea.vmem [#allocation2], %s1607_s25 }
 0x3c1   : > { %v1609_v12 = vld [vmem:[%s1608_s17] sm:$0x1]  ;;  %s1712_s9 = sld [smem:[#allocation6 + %s1711_s8]]  ;;  %s1693_s20 = scalar_lea.vmem [#allocation2], %s1692_s26 }
 0x3c2   : > { %1610 = vst [vmem:[#allocation4 + $0x37] sm:$0x1] %v1609_v12  ;;  %v1694_v13 = vld [vmem:[%s1693_s20] sm:$0x1]  ;;  %s1716_s21 = sadd.s32 77, %s4402_s19  ;;  %s1721_s12 = sadd.s32 78, %s4402_s19 }
 0x3c3   : > { %1695 = vst [vmem:[#allocation4 + $0x48] sm:$0x1] %v1694_v13  ;;  %s1717_s23 = sld [smem:[#allocation6 + %s1716_s21]]  ;;  %s1698_s14 = scalar_lea.vmem [#allocation2], %s1697_s18 }
 0x3c4   : > { %v1699_v14 = vld [vmem:[%s1698_s14] sm:$0x1]  ;;  %s1722_s30 = sld [smem:[#allocation6 + %s1721_s12]]  ;;  %s1703_s5 = scalar_lea.vmem [#allocation2], %s1702_s29 }
 0x3c5   : > { %1700 = vst [vmem:[#allocation4 + $0x49] sm:$0x1] %v1699_v14  ;;  %v1704_v15 = vld [vmem:[%s1703_s5] sm:$0x1]  ;;  %s1726_s25 = sadd.s32 79, %s4402_s19  ;;  %s1651_s2 = sadd.s32 64, %s4402_s19 }
 0x3c6   : > { %1705 = vst [vmem:[#allocation4 + $0x4a] sm:$0x1] %v1704_v15  ;;  %s1727_s6 = sld [smem:[#allocation6 + %s1726_s25]]  ;;  %s1708_s8 = scalar_lea.vmem [#allocation2], %s1707_s11  ;;  %v1978_v15 = vld [vmem:[#allocation4 + $0x38] sm:$0xff] }
 0x3c7   : > { %v1709_v16 = vld [vmem:[%s1708_s8] sm:$0x1]  ;;  %s1652_s26 = sld [smem:[#allocation6 + %s1651_s2]]  ;;  %s1713_s17 = scalar_lea.vmem [#allocation2], %s1712_s9 }
 0x3c8   : > { %1710 = vst [vmem:[#allocation4 + $0x4b] sm:$0x1] %v1709_v16  ;;  %v1714_v1 = vld [vmem:[%s1713_s17] sm:$0x1]  ;;  %s1656_s18 = sadd.s32 65, %s4402_s19  ;;  %s1661_s20 = sadd.s32 66, %s4402_s19 }
 0x3c9   : > { %1715 = vst [vmem:[#allocation4 + $0x4c] sm:$0x1] %v1714_v1  ;;  %s1657_s21 = sld [smem:[#allocation6 + %s1656_s18]]  ;;  %s1718_s12 = scalar_lea.vmem [#allocation2], %s1717_s23  ;;  %v1977_v14 = vld [vmem:[#allocation4 + $0x30] sm:$0xff] }
 0x3ca   : > { %v1719_v17 = vld [vmem:[%s1718_s12] sm:$0x1]  ;;  %s1662_s29 = sld [smem:[#allocation6 + %s1661_s20]]  ;;  %s1723_s14 = scalar_lea.vmem [#allocation2], %s1722_s30 }
 0x3cb   : > { %1720 = vst [vmem:[#allocation4 + $0x4d] sm:$0x1] %v1719_v17  ;;  %v1724_v18 = vld [vmem:[%s1723_s14] sm:$0x1]  ;;  %s1666_s11 = sadd.s32 67, %s4402_s19  ;;  %s1671_s5 = sadd.s32 68, %s4402_s19 }
 0x3cc   : > { %1725 = vst [vmem:[#allocation4 + $0x4e] sm:$0x1] %v1724_v18  ;;  %s1667_s25 = sld [smem:[#allocation6 + %s1666_s11]]  ;;  %s1728_s2 = scalar_lea.vmem [#allocation2], %s1727_s6 }
 0x3cd   : > { %v1729_v19 = vld [vmem:[%s1728_s2] sm:$0x1]  ;;  %s1672_s9 = sld [smem:[#allocation6 + %s1671_s5]]  ;;  %s1653_s8 = scalar_lea.vmem [#allocation2], %s1652_s26 }
 0x3ce   : > { %1730 = vst [vmem:[#allocation4 + $0x4f] sm:$0x1] %v1729_v19  ;;  %v1654_v20 = vld [vmem:[%s1653_s8] sm:$0x1]  ;;  %s1676_s23 = sadd.s32 69, %s4402_s19  ;;  %s1681_s17 = sadd.s32 70, %s4402_s19 }
 0x3cf   : > { %1655 = vst [vmem:[#allocation4 + $0x40] sm:$0x1] %v1654_v20  ;;  %s1677_s18 = sld [smem:[#allocation6 + %s1676_s23]]  ;;  %s1658_s20 = scalar_lea.vmem [#allocation2], %s1657_s21 }
 0x3d0   : > { %v1659_v21 = vld [vmem:[%s1658_s20] sm:$0x1]  ;;  %s1682_s30 = sld [smem:[#allocation6 + %s1681_s17]]  ;;  %s1663_s12 = scalar_lea.vmem [#allocation2], %s1662_s29 }
 0x3d1   : > { %1660 = vst [vmem:[#allocation4 + $0x41] sm:$0x1] %v1659_v21  ;;  %v1664_v22 = vld [vmem:[%s1663_s12] sm:$0x1]  ;;  %s1686_s6 = sadd.s32 71, %s4402_s19  ;;  %s1771_s14 = sadd.s32 88, %s4402_s19 }
 0x3d2   : > { %1665 = vst [vmem:[#allocation4 + $0x42] sm:$0x1] %v1664_v22  ;;  %s1687_s11 = sld [smem:[#allocation6 + %s1686_s6]]  ;;  %s1668_s5 = scalar_lea.vmem [#allocation2], %s1667_s25 }
 0x3d3   : > { %v1669_v23 = vld [vmem:[%s1668_s5] sm:$0x1]  ;;  %s1772_s26 = sld [smem:[#allocation6 + %s1771_s14]]  ;;  %s1673_s2 = scalar_lea.vmem [#allocation2], %s1672_s9 }
 0x3d4   : > { %1670 = vst [vmem:[#allocation4 + $0x43] sm:$0x1] %v1669_v23  ;;  %v1674_v24 = vld [vmem:[%s1673_s2] sm:$0x1]  ;;  %s1776_s21 = sadd.s32 89, %s4402_s19  ;;  %s1781_s8 = sadd.s32 90, %s4402_s19 }
 0x3d5   : > { %1675 = vst [vmem:[#allocation4 + $0x44] sm:$0x1] %v1674_v24  ;;  %s1777_s23 = sld [smem:[#allocation6 + %s1776_s21]]  ;;  %s1678_s17 = scalar_lea.vmem [#allocation2], %s1677_s18 }
 0x3d6   : > { %v1679_v25 = vld [vmem:[%s1678_s17] sm:$0x1]  ;;  %s1782_s29 = sld [smem:[#allocation6 + %s1781_s8]]  ;;  %s1683_s20 = scalar_lea.vmem [#allocation2], %s1682_s30 }
 0x3d7   : > { %1680 = vst [vmem:[#allocation4 + $0x45] sm:$0x1] %v1679_v25  ;;  %v1684_v26 = vld [vmem:[%s1683_s20] sm:$0x1]  ;;  %s1786_s25 = sadd.s32 91, %s4402_s19  ;;  %s1791_s12 = sadd.s32 92, %s4402_s19 }
 0x3d8   : > { %1685 = vst [vmem:[#allocation4 + $0x46] sm:$0x1] %v1684_v26  ;;  %s1787_s6 = sld [smem:[#allocation6 + %s1786_s25]]  ;;  %s1688_s14 = scalar_lea.vmem [#allocation2], %s1687_s11  ;;  %v1980_v25 = vld [vmem:[#allocation4 + $0x48] sm:$0xff] }
 0x3d9   : > { %v1689_v27 = vld [vmem:[%s1688_s14] sm:$0x1]  ;;  %s1792_s9 = sld [smem:[#allocation6 + %s1791_s12]]  ;;  %s1773_s5 = scalar_lea.vmem [#allocation2], %s1772_s26 }
 0x3da   : > { %1690 = vst [vmem:[#allocation4 + $0x47] sm:$0x1] %v1689_v27  ;;  %v1774_v28 = vld [vmem:[%s1773_s5] sm:$0x1]  ;;  %s1796_s18 = sadd.s32 93, %s4402_s19  ;;  %s1801_s2 = sadd.s32 94, %s4402_s19 }
 0x3db   : > { %1775 = vst [vmem:[#allocation4 + $0x58] sm:$0x1] %v1774_v28  ;;  %s1797_s21 = sld [smem:[#allocation6 + %s1796_s18]]  ;;  %s1778_s8 = scalar_lea.vmem [#allocation2], %s1777_s23 }
 0x3dc   : > { %v1779_v29 = vld [vmem:[%s1778_s8] sm:$0x1]  ;;  %s1802_s30 = sld [smem:[#allocation6 + %s1801_s2]]  ;;  %s1783_s17 = scalar_lea.vmem [#allocation2], %s1782_s29 }
 0x3dd   : > { %1780 = vst [vmem:[#allocation4 + $0x59] sm:$0x1] %v1779_v29  ;;  %v1784_v30 = vld [vmem:[%s1783_s17] sm:$0x1]  ;;  %s1806_s11 = sadd.s32 95, %s4402_s19  ;;  %s1731_s20 = sadd.s32 80, %s4402_s19 }
 0x3de   : > { %1785 = vst [vmem:[#allocation4 + $0x5a] sm:$0x1] %v1784_v30  ;;  %s1807_s25 = sld [smem:[#allocation6 + %s1806_s11]]  ;;  %s1788_s12 = scalar_lea.vmem [#allocation2], %s1787_s6 }
 0x3df   : > { %v1789_v31 = vld [vmem:[%s1788_s12] sm:$0x1]  ;;  %s1732_s26 = sld [smem:[#allocation6 + %s1731_s20]]  ;;  %s1793_s14 = scalar_lea.vmem [#allocation2], %s1792_s9 }
 0x3e0   : > { %1790 = vst [vmem:[#allocation4 + $0x5b] sm:$0x1] %v1789_v31  ;;  %v1794_v32 = vld [vmem:[%s1793_s14] sm:$0x1]  ;;  %s1736_s23 = sadd.s32 81, %s4402_s19  ;;  %s1741_s5 = sadd.s32 82, %s4402_s19 }
 0x3e1   : > { %1795 = vst [vmem:[#allocation4 + $0x5c] sm:$0x1] %v1794_v32  ;;  %s1737_s18 = sld [smem:[#allocation6 + %s1736_s23]]  ;;  %s1798_s2 = scalar_lea.vmem [#allocation2], %s1797_s21  ;;  %v1979_v23 = vld [vmem:[#allocation4 + $0x40] sm:$0xff] }
 0x3e2   : > { %v1799_v33 = vld [vmem:[%s1798_s2] sm:$0x1]  ;;  %s1742_s29 = sld [smem:[#allocation6 + %s1741_s5]]  ;;  %s1803_s8 = scalar_lea.vmem [#allocation2], %s1802_s30 }
 0x3e3   : > { %1800 = vst [vmem:[#allocation4 + $0x5d] sm:$0x1] %v1799_v33  ;;  %v1804_v34 = vld [vmem:[%s1803_s8] sm:$0x1]  ;;  %s1746_s6 = sadd.s32 83, %s4402_s19  ;;  %s1751_s17 = sadd.s32 84, %s4402_s19 }
 0x3e4   : > { %1805 = vst [vmem:[#allocation4 + $0x5e] sm:$0x1] %v1804_v34  ;;  %s1747_s11 = sld [smem:[#allocation6 + %s1746_s6]]  ;;  %s1808_s20 = scalar_lea.vmem [#allocation2], %s1807_s25 }
 0x3e5   : > { %v1809_v35 = vld [vmem:[%s1808_s20] sm:$0x1]  ;;  %s1752_s9 = sld [smem:[#allocation6 + %s1751_s17]]  ;;  %s1733_s12 = scalar_lea.vmem [#allocation2], %s1732_s26 }
 0x3e6   : > { %1810 = vst [vmem:[#allocation4 + $0x5f] sm:$0x1] %v1809_v35  ;;  %v1734_v36 = vld [vmem:[%s1733_s12] sm:$0x1]  ;;  %s1756_s21 = sadd.s32 85, %s4402_s19  ;;  %s1761_s14 = sadd.s32 86, %s4402_s19 }
 0x3e7   : > { %1735 = vst [vmem:[#allocation4 + $0x50] sm:$0x1] %v1734_v36  ;;  %s4514_s23 = sld [smem:[#allocation6 + %s1756_s21]]  ;;  %s1738_s5 = scalar_lea.vmem [#allocation2], %s1737_s18 }
 0x3e8   : > { %v1739_v37 = vld [vmem:[%s1738_s5] sm:$0x1]  ;;  %s4516_s30 = sld [smem:[#allocation6 + %s1761_s14]]  ;;  %s1743_s25 = scalar_lea.vmem [#allocation2], %s1742_s29 }
 0x3e9   : > { %s4896_s6 = sld [smem:[#allocation41_spill]]  ;;  %1740 = vst [vmem:[#allocation4 + $0x51] sm:$0x1] %v1739_v37  ;;  %v1744_v39 = vld [vmem:[%s1743_s25] sm:$0x1]  ;;  %s1766_s26 = sadd.s32 87, %s4402_s19 }
 0x3ea   : > { %s1851_s17 = sadd.s32 104, %s4402_s19  ;;  %1745 = vst [vmem:[#allocation4 + $0x52] sm:$0x1] %v1744_v39  ;;  %s4525_s20 = sld [smem:[#allocation6 + %s1766_s26]] }
 0x3eb   : > { %s1748_s18 = scalar_lea.vmem [#allocation2], %s1747_s11  ;;  %s4527_s12 = sld [smem:[#allocation6 + %s1851_s17]] }
 0x3ec   : > { %v1749_v41 = vld [vmem:[%s1748_s18] sm:$0x1]  ;;  %s1753_s21 = scalar_lea.vmem [#allocation2], %s1752_s9  ;;  %s1856_s29 = sadd.s32 105, %s4402_s19 }
 0x3ed   : > { %1750 = vst [vmem:[#allocation4 + $0x53] sm:$0x1] %v1749_v41  ;;  %v1754_v43 = vld [vmem:[%s1753_s21] sm:$0x1]  ;;  %s1861_s14 = sadd.s32 106, %s4402_s19  ;;  %s4532_s5 = sld [smem:[#allocation6 + %s1856_s29]] }
 0x3ee   : > { %1755 = vst [vmem:[#allocation4 + $0x54] sm:$0x1] %v1754_v43  ;;  %s1758_s11 = scalar_lea.vmem [#allocation2], %s4514_s23  ;;  %s4537_s9 = sld [smem:[#allocation6 + %s1861_s14]]  ;;  %v1982_v36 = vld [vmem:[#allocation4 + $0x58] sm:$0xff] }
 0x3ef   : > { %v4521_v38 = vld [vmem:[%s4896_s6] ss:$0 sm:$0xff]  ;;  %s1763_s2 = scalar_lea.vmem [#allocation2], %s4516_s30  ;;  %s1866_s8 = sadd.s32 107, %s4402_s19 }
 0x3f0   : > { %v1759_v48 = vld [vmem:[%s1758_s11] sm:$0x1]  ;;  %s1871_s6 = sadd.s32 108, %s4402_s19  ;;  %s4544_s23 = sld [smem:[#allocation6 + %s1866_s8]] }
 0x3f1   : > { %1760 = vst [vmem:[#allocation4 + $0x55] sm:$0x1] %v1759_v48  ;;  %v1764_v50 = vld [vmem:[%s1763_s2] sm:$0x1]  ;;  %s1768_s25 = scalar_lea.vmem [#allocation2], %s4525_s20  ;;  %s4547_s30 = sld [smem:[#allocation6 + %s1871_s6]] }
 0x3f2   : > { %1765 = vst [vmem:[#allocation4 + $0x56] sm:$0x1] %v1764_v50  ;;  %v1769_v56 = vld [vmem:[%s1768_s25] sm:$0x1]  ;;  %s1853_s26 = scalar_lea.vmem [#allocation2], %s4527_s12  ;;  %s1876_s17 = sadd.s32 109, %s4402_s19 }
 0x3f3   : > { %1770 = vst [vmem:[#allocation4 + $0x57] sm:$0x1] %v1769_v56  ;;  %v1854_v59 = vld [vmem:[%s1853_s26] sm:$0x1]  ;;  %s1881_s18 = sadd.s32 110, %s4402_s19  ;;  %s4554_s20 = sld [smem:[#allocation6 + %s1876_s17]] }
 0x3f4   : > { %1855 = vst [vmem:[#allocation4 + $0x68] sm:$0x1] %v1854_v59  ;;  %s1858_s21 = scalar_lea.vmem [#allocation2], %s4532_s5  ;;  %s4559_s29 = sld [smem:[#allocation6 + %s1881_s18]] }
 0x3f5   : > { %v1859_v63 = vld [vmem:[%s1858_s21] sm:$0x1]  ;;  %s1863_s12 = scalar_lea.vmem [#allocation2], %s4537_s9  ;;  %s1886_s14 = sadd.s32 111, %s4402_s19 }
 0x3f6   : > { %1860 = vst [vmem:[#allocation4 + $0x69] sm:$0x1] %v1859_v63  ;;  %v1864_v4 = vld [vmem:[%s1863_s12] sm:$0x1]  ;;  %s1811_s11 = sadd.s32 96, %s4402_s19  ;;  %s4566_s5 = sld [smem:[#allocation6 + %s1886_s14]] }
 0x3f7   : > { %1865 = vst [vmem:[#allocation4 + $0x6a] sm:$0x1] %v1864_v4  ;;  %s1868_s2 = scalar_lea.vmem [#allocation2], %s4544_s23  ;;  %s4569_s9 = sld [smem:[#allocation6 + %s1811_s11]] }
 0x3f8   : > { %v1869_v8 = vld [vmem:[%s1868_s2] sm:$0x1]  ;;  %s1873_s8 = scalar_lea.vmem [#allocation2], %s4547_s30  ;;  %s1816_s6 = sadd.s32 97, %s4402_s19 }
 0x3f9   : > { %1870 = vst [vmem:[#allocation4 + $0x6b] sm:$0x1] %v1869_v8  ;;  %v1874_v11 = vld [vmem:[%s1873_s8] sm:$0x1]  ;;  %s1821_s25 = sadd.s32 98, %s4402_s19  ;;  %s4576_s23 = sld [smem:[#allocation6 + %s1816_s6]] }
 0x3fa   : > { %1875 = vst [vmem:[#allocation4 + $0x6c] sm:$0x1] %v1874_v11  ;;  %s1878_s26 = scalar_lea.vmem [#allocation2], %s4554_s20  ;;  %s4581_s30 = sld [smem:[#allocation6 + %s1821_s25]]  ;;  %v1981_v34 = vld [vmem:[#allocation4 + $0x50] sm:$0xff] }
 0x3fb   : > { %v1879_v1 = vld [vmem:[%s1878_s26] sm:$0x1]  ;;  %s1883_s17 = scalar_lea.vmem [#allocation2], %s4559_s29  ;;  %s1826_s18 = sadd.s32 99, %s4402_s19 }
 0x3fc   : > { %1880 = vst [vmem:[#allocation4 + $0x6d] sm:$0x1] %v1879_v1  ;;  %v1884_v18 = vld [vmem:[%s1883_s17] sm:$0x1]  ;;  %s1831_s21 = sadd.s32 100, %s4402_s19  ;;  %s4588_s20 = sld [smem:[#allocation6 + %s1826_s18]] }
 0x3fd   : > { %1885 = vst [vmem:[#allocation4 + $0x6e] sm:$0x1] %v1884_v18  ;;  %s1888_s12 = scalar_lea.vmem [#allocation2], %s4566_s5  ;;  %s4591_s29 = sld [smem:[#allocation6 + %s1831_s21]] }
 0x3fe   : > { %v1889_v24 = vld [vmem:[%s1888_s12] sm:$0x1]  ;;  %s1813_s14 = scalar_lea.vmem [#allocation2], %s4569_s9  ;;  %s1836_s11 = sadd.s32 101, %s4402_s19 }
 0x3ff   : > { %1890 = vst [vmem:[#allocation4 + $0x6f] sm:$0x1] %v1889_v24  ;;  %v1814_v27 = vld [vmem:[%s1813_s14] sm:$0x1]  ;;  %s1841_s2 = sadd.s32 102, %s4402_s19  ;;  %s4598_s5 = sld [smem:[#allocation6 + %s1836_s11]] }
 0x400   : > { %1815 = vst [vmem:[#allocation4 + $0x60] sm:$0x1] %v1814_v27  ;;  %s1818_s8 = scalar_lea.vmem [#allocation2], %s4576_s23  ;;  %s4603_s6 = sld [smem:[#allocation6 + %s1841_s2]] }
 0x401   : > { %v1819_v31 = vld [vmem:[%s1818_s8] sm:$0x1]  ;;  %s1823_s9 = scalar_lea.vmem [#allocation2], %s4581_s30  ;;  %s1846_s25 = sadd.s32 103, %s4402_s19 }
 0x402   : > { %1820 = vst [vmem:[#allocation4 + $0x61] sm:$0x1] %v1819_v31  ;;  %v1824_v35 = vld [vmem:[%s1823_s9] sm:$0x1]  ;;  %s1931_s26 = sadd.s32 120, %s4402_s19  ;;  %s4610_s23 = sld [smem:[#allocation6 + %s1846_s25]] }
 0x403   : > { %1825 = vst [vmem:[#allocation4 + $0x62] sm:$0x1] %v1824_v35  ;;  %s1828_s17 = scalar_lea.vmem [#allocation2], %s4588_s20  ;;  %s4613_s30 = sld [smem:[#allocation6 + %s1931_s26]] }
 0x404   : > { %s1833_s18 = scalar_lea.vmem [#allocation2], %s4591_s29  ;;  %s1936_s21 = sadd.s32 121, %s4402_s19 }
 0x405   : > { %v1834_v43 = vld [vmem:[%s1833_s18] sm:$0x1]  ;;  %s1941_s12 = sadd.s32 122, %s4402_s19  ;;  %s4622_s20 = sld [smem:[#allocation6 + %s1936_s21]] }
 0x406   : > { %1835 = vst [vmem:[#allocation4 + $0x64] sm:$0x1] %v1834_v43  ;;  %s1838_s14 = scalar_lea.vmem [#allocation2], %s4598_s5  ;;  %s4628_s29 = sld [smem:[#allocation6 + %s1941_s12]] }
 0x407   : > { %s1843_s11 = scalar_lea.vmem [#allocation2], %s4603_s6  ;;  %s1946_s2 = sadd.s32 123, %s4402_s19 }
 0x408   : > { %v1844_v48 = vld [vmem:[%s1843_s11] sm:$0x1]  ;;  %s1951_s8 = sadd.s32 124, %s4402_s19  ;;  %s1947_s5 = sld [smem:[#allocation6 + %s1946_s2]] }
 0x409   : > { %1845 = vst [vmem:[#allocation4 + $0x66] sm:$0x1] %v1844_v48  ;;  %s1848_s9 = scalar_lea.vmem [#allocation2], %s4610_s23  ;;  %s1952_s25 = sld [smem:[#allocation6 + %s1951_s8]] }
 0x40a   : > { %s1933_s6 = scalar_lea.vmem [#allocation2], %s4613_s30  ;;  %s1956_s26 = sadd.s32 125, %s4402_s19 }
 0x40b   : > { %s1957_s18 = sld [smem:[#allocation6 + %s1956_s26]]  ;;  %s1938_s23 = scalar_lea.vmem [#allocation2], %s4622_s20 }
 0x40c   : > { %s1943_s12 = scalar_lea.vmem [#allocation2], %s4628_s29  ;;  %s1891_s30 = sadd.s32 112, %s4402_s19 }
 0x40d   : > { %v1944_v56 = vld [vmem:[%s1943_s12] sm:$0x1]  ;;  %s4652_s8 = sld [smem:[#allocation6 + %s1891_s30]] }
 0x40e   : > { %1945 = vst [vmem:[#allocation4 + $0x7a] sm:$0x1] %v1944_v56  ;;  %s1948_s2 = scalar_lea.vmem [#allocation2], %s1947_s5 }
 0x40f   : > { %s1953_s20 = scalar_lea.vmem [#allocation2], %s1952_s25  ;;  %s1906_s25 = sadd.s32 115, %s4402_s19 }
 0x410   : > { %s1907_s12 = sld [smem:[#allocation6 + %s1906_s25]] }
 0x411   : > { %s1958_s26 = scalar_lea.vmem [#allocation2], %s1957_s18 }
 0x413   : > { %s1893_s18 = scalar_lea.vmem [#allocation2], %s4652_s8 }
 0x416   : > { %s1908_s25 = scalar_lea.vmem [#allocation2], %s1907_s12 }
 0x430   : > { %v3294_v40 = vpop.f32.mrf.mxu1 }
 0x431   : > { %v1242_v42 = vadd.f32 %v3294_v40, %v4521_v38  ;;  %v1829_v40 = vld [vmem:[%s1828_s17] sm:$0x1]  ;;  %s1961_s17 = sadd.s32 126, %s4402_s19 }
 0x432   : > { %v1236_v44 = vpop.f32.mrf.mxu1  ;;  %1830 = vst [vmem:[#allocation4 + $0x63] sm:$0x1] %v1829_v40  ;;  %s1962_s21 = sld [smem:[#allocation6 + %s1961_s17]] }
 0x433   : > { %1316 = vst [vmem:[%s4298_s22 + $0x8] sm:$0xff] %v1242_v42  ;;  %v1237_v47 = vadd.f32 %v4521_v38, %v1236_v44  ;;  %v1988_v53 = vadd.f32 %v1972_v46, %v1242_v42 }
 0x434   : > { %v3297_v49 = vpop.f32.mrf.mxu1 }
 0x435   : > { %1315 = vst [vmem:[%s4298_s22] sm:$0xff] %v1237_v47  ;;  %v1987_v51 = vadd.f32 %v1971_v45, %v1237_v47  ;;  %v1252_v52 = vadd.f32 %v3297_v49, %v4521_v38  ;;  %v1839_v47 = vld [vmem:[%s1838_s14] sm:$0x1]  ;;  %s1966_s14 = sadd.s32 127, %s4402_s19 }
 0x436   : > { %v1246_v54 = vpop.f32.mrf.mxu1  ;;  %1840 = vst [vmem:[#allocation4 + $0x65] sm:$0x1] %v1839_v47  ;;  %s1967_s11 = sld [smem:[#allocation6 + %s1966_s14]] }
 0x437   : > { %1318 = vst [vmem:[%s4298_s22 + $0x18] sm:$0xff] %v1252_v52  ;;  %v1247_v58 = vadd.f32 %v4521_v38, %v1246_v54  ;;  %3348 = vmatprep.mubr.f32.mxu0 %v1987_v51  ;;  %v1990_v0 = vadd.f32 %v1974_v57, %v1252_v52  ;;  %v1849_v51 = vld [vmem:[%s1848_s9] sm:$0x1]  ;;  %s1896_s9 = sadd.s32 113, %s4402_s19 }
 0x438   : > { %v3300_v60 = vpop.f32.mrf.mxu1  ;;  %3349 = vmatmul.mubr.f32.vlgmr.msra.gmra.mxu0 %v1988_v53  ;;  %1850 = vst [vmem:[#allocation4 + $0x67] sm:$0x1] %v1849_v51  ;;  %v1934_v53 = vld [vmem:[%s1933_s6] sm:$0x1]  ;;  %s1901_s6 = sadd.s32 114, %s4402_s19  ;;  %s1897_s29 = sld [smem:[#allocation6 + %s1896_s9]] }
 0x439   : > { %1317 = vst [vmem:[%s4298_s22 + $0x10] sm:$0xff] %v1247_v58  ;;  %v1989_v61 = vadd.f32 %v1973_v55, %v1247_v58  ;;  %v1262_v62 = vadd.f32 %v3300_v60, %v4521_v38  ;;  %1935 = vst [vmem:[#allocation4 + $0x78] sm:$0x1] %v1934_v53  ;;  %v1939_v55 = vld [vmem:[%s1938_s23] sm:$0x1]  ;;  %s1902_s17 = sld [smem:[#allocation6 + %s1901_s6]] }
 0x43a   : > { %v1256_v2 = vpop.f32.mrf.mxu1  ;;  %1940 = vst [vmem:[#allocation4 + $0x79] sm:$0x1] %v1939_v55  ;;  %v1949_v57 = vld [vmem:[%s1948_s2] sm:$0x1]  ;;  %s1963_s5 = scalar_lea.vmem [#allocation2], %s1962_s21  ;;  %s1911_s23 = sadd.s32 116, %s4402_s19 }
 0x43b   : > { %1320 = vst [vmem:[%s4298_s22 + $0x28] sm:$0xff] %v1262_v62  ;;  %v1257_v6 = vadd.f32 %v4521_v38, %v1256_v2  ;;  %3351 = vmatprep.mubr.f32.mxu0 %v1989_v61  ;;  %v1992_v12 = vadd.f32 %v1976_v5, %v1262_v62  ;;  %1950 = vst [vmem:[#allocation4 + $0x7b] sm:$0x1] %v1949_v57  ;;  %v1954_v58 = vld [vmem:[%s1953_s20] sm:$0x1]  ;;  %s1912_s30 = sld [smem:[#allocation6 + %s1911_s23]] }
 0x43c   : > { %v3303_v7 = vpop.f32.mrf.mxu1  ;;  %3352 = vmatmul.mubr.f32.gmra.mxu0 %v1990_v0  ;;  %1955 = vst [vmem:[#allocation4 + $0x7c] sm:$0x1] %v1954_v58  ;;  %v1959_v61 = vld [vmem:[%s1958_s26] sm:$0x1]  ;;  %s1968_s14 = scalar_lea.vmem [#allocation2], %s1967_s11  ;;  %s1916_s2 = sadd.s32 117, %s4402_s19 }
 0x43d   : > { %1319 = vst [vmem:[%s4298_s22 + $0x20] sm:$0xff] %v1257_v6  ;;  %v1991_v9 = vadd.f32 %v1975_v3, %v1257_v6  ;;  %v1272_v10 = vadd.f32 %v3303_v7, %v4521_v38  ;;  %1960 = vst [vmem:[#allocation4 + $0x7d] sm:$0x1] %v1959_v61  ;;  %v1964_v63 = vld [vmem:[%s1963_s5] sm:$0x1]  ;;  %s1921_s20 = sadd.s32 118, %s4402_s19 }
 0x43e   : > { %v1266_v13 = vpop.f32.mrf.mxu1  ;;  %1965 = vst [vmem:[#allocation4 + $0x7e] sm:$0x1] %v1964_v63  ;;  %v1969_v0 = vld [vmem:[%s1968_s14] sm:$0x1]  ;;  %s1917_s9 = sld [smem:[#allocation6 + %s1916_s2]]  ;;  %s1898_s6 = scalar_lea.vmem [#allocation2], %s1897_s29 }
 0x43f   : > { %1322 = vst [vmem:[%s4298_s22 + $0x38] sm:$0xff] %v1272_v10  ;;  %v1267_v16 = vadd.f32 %v4521_v38, %v1266_v13  ;;  %3354 = vmatprep.mubr.f32.mxu0 %v1991_v9  ;;  %v1994_v21 = vadd.f32 %v1978_v15, %v1272_v10  ;;  %v1983_v59 = vld [vmem:[#allocation4 + $0x60] sm:$0xff]  ;;  %1970 = vst [vmem:[#allocation4 + $0x7f] sm:$0x1] %v1969_v0  ;;  %v1894_v2 = vld [vmem:[%s1893_s18] sm:$0x1]  ;;  %s4897_s18 = scalar_lea.vmem %s4821_s3, %s4292_s10 }
 0x440   : > { %v3306_v17 = vpop.f32.mrf.mxu1  ;;  %3355 = vmatmul.mubr.f32.gmra.mxu0 %v1992_v12  ;;  %1895 = vst [vmem:[#allocation4 + $0x70] sm:$0x1] %v1894_v2  ;;  %v1899_v3 = vld [vmem:[%s1898_s6] sm:$0x1]  ;;  %s1922_s21 = sld [smem:[#allocation6 + %s1921_s20]]  ;;  %s1903_s26 = scalar_lea.vmem [#allocation2], %s1902_s17 }
 0x441   : > { %1321 = vst [vmem:[%s4298_s22 + $0x30] sm:$0xff] %v1267_v16  ;;  %v1993_v19 = vadd.f32 %v1977_v14, %v1267_v16  ;;  %v1282_v20 = vadd.f32 %v3306_v17, %v4521_v38  ;;  %1900 = vst [vmem:[#allocation4 + $0x71] sm:$0x1] %v1899_v3  ;;  %v1904_v4 = vld [vmem:[%s1903_s26] sm:$0x1]  ;;  %s1926_s5 = sadd.s32 119, %s4402_s19 }
 0x442   : > { %v1276_v22 = vpop.f32.mrf.mxu1  ;;  %1905 = vst [vmem:[#allocation4 + $0x72] sm:$0x1] %v1904_v4  ;;  %s1927_s11 = sld [smem:[#allocation6 + %s1926_s5]]  ;;  %v1909_v5 = vld [vmem:[%s1908_s25] sm:$0x1]  ;;  %s1913_s23 = scalar_lea.vmem [#allocation2], %s1912_s30 }
 0x443   : > { %1324 = vst [vmem:[%s4298_s22 + $0x48] sm:$0xff] %v1282_v20  ;;  %v1277_v26 = vadd.f32 %v4521_v38, %v1276_v22  ;;  %3357 = vmatprep.mubr.f32.mxu0 %v1993_v19  ;;  %v1996_v32 = vadd.f32 %v1980_v25, %v1282_v20  ;;  %1910 = vst [vmem:[#allocation4 + $0x73] sm:$0x1] %v1909_v5  ;;  %v1914_v6 = vld [vmem:[%s1913_s23] sm:$0x1]  ;;  %v3956_v14 = vmov 1.0  }
 0x444   : > { %v3309_v28 = vpop.f32.mrf.mxu1  ;;  %3358 = vmatmul.mubr.f32.gmra.mxu0 %v1994_v21  ;;  %1915 = vst [vmem:[#allocation4 + $0x74] sm:$0x1] %v1914_v6  ;;  %s1918_s8 = scalar_lea.vmem [#allocation2], %s1917_s9  ;;  %2219 = vmatprep.subr.mxu1 %v3956_v14  ;;  %v3957_v15 = vmov 0.0   ;;  %v2208_v2 = vld [vmem:[#allocation3 + $0x18] sm:$0xff]  ;;  %v2209_v5 = vld [vmem:[#allocation3 + $0x50] sm:$0xff] }
 0x445   : > { %1323 = vst [vmem:[%s4298_s22 + $0x40] sm:$0xff] %v1277_v26  ;;  %v1995_v29 = vadd.f32 %v1979_v23, %v1277_v26  ;;  %v1292_v30 = vadd.f32 %v3309_v28, %v4521_v38  ;;  %v1919_v7 = vld [vmem:[%s1918_s8] sm:$0x1]  ;;  %2283 = vmatprep.mubr.f32.mxu1 %v3957_v15 }
 0x446   : > { %v1286_v33 = vpop.f32.mrf.mxu1  ;;  %1920 = vst [vmem:[#allocation4 + $0x75] sm:$0x1] %v1919_v7  ;;  %s1923_s14 = scalar_lea.vmem [#allocation2], %s1922_s21  ;;  %v1986_v10 = vld [vmem:[#allocation4 + $0x78] sm:$0xff] }
 0x447   : > { %1326 = vst [vmem:[%s4298_s22 + $0x58] sm:$0xff] %v1292_v30  ;;  %v1287_v37 = vadd.f32 %v4521_v38, %v1286_v33  ;;  %3360 = vmatprep.mubr.f32.mxu0 %v1995_v29  ;;  %v1998_v44 = vadd.f32 %v1982_v36, %v1292_v30  ;;  %v1924_v8 = vld [vmem:[%s1923_s14] sm:$0x1] }
 0x448   : > { %v3312_v39 = vpop.f32.mrf.mxu1  ;;  %3361 = vmatmul.mubr.f32.gmra.mxu0 %v1996_v32  ;;  %1925 = vst [vmem:[#allocation4 + $0x76] sm:$0x1] %v1924_v8  ;;  %s1928_s29 = scalar_lea.vmem [#allocation2], %s1927_s11  ;;  %v2906_v29 = vld [vmem:[%s4831_s13] ss:$0 sm:$0xff] }
 0x449   : > { %1325 = vst [vmem:[%s4298_s22 + $0x50] sm:$0xff] %v1287_v37  ;;  %v1997_v41 = vadd.f32 %v1981_v34, %v1287_v37  ;;  %v4617_v42 = vadd.f32 %v3312_v39, %v4521_v38  ;;  %v1929_v9 = vld [vmem:[%s1928_s29] sm:$0x1] }
 0x44a   : > { %v1296_v45 = vpop.f32.mrf.mxu1  ;;  %1930 = vst [vmem:[#allocation4 + $0x77] sm:$0x1] %v1929_v9  ;;  %v2210_v8 = vld [vmem:[#allocation3 + $0x68] sm:$0xff] }
 0x44b   : > { %1328 = vst [vmem:[%s4298_s22 + $0x68] sm:$0xff] %v4617_v42  ;;  %v1297_v46 = vadd.f32 %v4521_v38, %v1296_v45  ;;  %3363 = vmatprep.mubr.f32.mxu0 %v1997_v41  ;;  %v2172_v45 = vlaneseq }
 0x44c   : > { %v3315_v49 = vpop.f32.mrf.mxu1  ;;  %3364 = vmatmul.mubr.f32.gmra.mxu0 %v1998_v44 }
 0x44d   : > { %1327 = vst [vmem:[%s4298_s22 + $0x60] sm:$0xff] %v1297_v46  ;;  %v4635_v50 = vadd.f32 %v3315_v49, %v4521_v38  ;;  %v1999_v60 = vadd.f32 %v1983_v59, %v1297_v46  ;;  %v2173_v48 = vshrl.u32 %v2172_v45, 7  ;;  %v2907_v49 = vld [vmem:[%s4897_s18] ss:$0 sm:$0xff]  ;;  %v2206_v59 = vld [vmem:[#allocation3] sm:$0xff] }
 0x44e   : > { %v1306_v52 = vpop.f32.mrf.mxu1 }
 0x44f   : > { %1330 = vst [vmem:[%s4298_s22 + $0x78] sm:$0xff] %v4635_v50  ;;  %v4644_v54 = vadd.f32 %v4521_v38, %v1306_v52  ;;  %v1984_v38 = vld [vmem:[#allocation4 + $0x68] sm:$0xff]  ;;  %3366 = vmatprep.mubr.f32.mxu0 %v1999_v60  ;;  %v2002_v13 = vadd.f32 %v1986_v10, %v4635_v50  ;;  %vm2184_vm1 = vcmp.eq.s32.totalorder %v2173_v48, %v2907_v49  ;;  %v2174_v52 = vadd.s32 8, %v2173_v48 }
 0x450   : > { %v2000_v62 = vadd.f32 %v1984_v38, %v4617_v42  ;;  %v2175_v53 = vadd.s32 16, %v2173_v48  ;;  %v2177_v55 = vadd.s32 32, %v2173_v48  ;;  %v2178_v56 = vadd.s32 40, %v2173_v48  ;;  %v2205_v38 = vld [vmem:[#allocation3 + $0x30] sm:$0xff] }
 0x451   : > { %1329 = vst [vmem:[%s4298_s22 + $0x70] sm:$0xff] %v4644_v54  ;;  %v1985_v11 = vld [vmem:[#allocation4 + $0x70] sm:$0xff]  ;;  %vm2185_vm2 = vcmp.eq.s32.totalorder %v2174_v52, %v2907_v49  ;;  %v2179_v57 = vadd.s32 48, %v2173_v48 }
 0x452   : > { %3367 = vmatmul.mubr.f32.gmra.mxu0 %v2000_v62  ;;  %v2001_v12 = vadd.f32 %v1985_v11, %v4644_v54  ;;  %vm2186_vm3 = vcmp.eq.s32.totalorder %v2175_v53, %v2907_v49  ;;  %v2176_v54 = vadd.s32 24, %v2173_v48  ;;  %vm2188_vm5 = vcmp.eq.s32.totalorder %v2177_v55, %v2907_v49  ;;  %v2207_v62 = vld [vmem:[#allocation3 + $0x58] sm:$0xff]  ;;  %v2211_v11 = vld [vmem:[#allocation3 + $0x8] sm:$0xff] }
 0x453   : > { %vm2189_vm6 = vcmp.eq.s32.totalorder %v2178_v56, %v2907_v49  ;;  %vm2190_vm7 = vcmp.eq.s32.totalorder %v2179_v57, %v2907_v49 }
 0x454   : > { %3369 = vmatprep.mubr.f32.mxu0 %v2001_v12  ;;  %vm2187_vm4 = vcmp.eq.s32.totalorder %v2176_v54, %v2907_v49 }
 0x456   : > { %3370 = vmatmul.mubr.f32.gmra.mxu0 %v2002_v13 }
 0x4f8   : > { %v3350_v16 = vpop.f32.mrf.mxu0 }
 0x4f9   : > { %v2098_v50 = vadd.f32 %v3350_v16, %v2906_v29 }
 0x4fa   : > { %v2092_v1 = vpop.f32.mrf.mxu0 }
 0x4fb   : > { %v2093_v51 = vadd.f32 %v2906_v29, %v2092_v1  ;;  %v2213_v1 = vld [vmem:[#allocation3 + $0x40] sm:$0xff] }
 0x4fc   : > { %v3353_v17 = vpop.f32.mrf.mxu0 }
 0x4fd   : > { %v2108_v46 = vadd.f32 %v3353_v17, %v2906_v29 }
 0x4fe   : > { %v2102_v18 = vpop.f32.mrf.mxu0 }
 0x4ff   : > { %v2103_v47 = vadd.f32 %v2906_v29, %v2102_v18 }
 0x500   : > { %v3356_v19 = vpop.f32.mrf.mxu0 }
 0x501   : > { %v2118_v43 = vadd.f32 %v3356_v19, %v2906_v29  ;;  %v2214_v19 = vld [vmem:[#allocation3 + $0x20] sm:$0xff] }
 0x502   : > { %v2112_v20 = vpop.f32.mrf.mxu0 }
 0x503   : > { %v2113_v44 = vadd.f32 %v2906_v29, %v2112_v20 }
 0x504   : > { %v3359_v21 = vpop.f32.mrf.mxu0 }
 0x505   : > { %v2128_v41 = vadd.f32 %v3359_v21, %v2906_v29 }
 0x506   : > { %v2122_v22 = vpop.f32.mrf.mxu0 }
 0x507   : > { %v2123_v42 = vadd.f32 %v2906_v29, %v2122_v22  ;;  %v2215_v22 = vld [vmem:[#allocation3 + $0x10] sm:$0xff] }
 0x508   : > { %v3362_v23 = vpop.f32.mrf.mxu0 }
 0x509   : > { %v2138_v39 = vadd.f32 %v3362_v23, %v2906_v29 }
 0x50a   : > { %v2132_v24 = vpop.f32.mrf.mxu0 }
 0x50b   : > { %v2133_v40 = vadd.f32 %v2906_v29, %v2132_v24 }
 0x50c   : > { %v3365_v25 = vpop.f32.mrf.mxu0 }
 0x50d   : > { %v2148_v36 = vadd.f32 %v3365_v25, %v2906_v29  ;;  %v2216_v25 = vld [vmem:[#allocation3 + $0x38] sm:$0xff] }
 0x50e   : > { %v2142_v26 = vpop.f32.mrf.mxu0 }
 0x50f   : > { %v2143_v37 = vadd.f32 %v2906_v29, %v2142_v26 }
 0x512   : > { %v3368_v27 = vpop.f32.mrf.mxu0 }
 0x513   : > { %v2158_v34 = vadd.f32 %v3368_v27, %v2906_v29 }
 0x514   : > { %v2152_v28 = vpop.f32.mrf.mxu0 }
 0x515   : > { %v2153_v35 = vadd.f32 %v2906_v29, %v2152_v28  ;;  %v2217_v28 = vld [vmem:[#allocation3 + $0x60] sm:$0xff] }
 0x516   : > { %v3371_v30 = vpop.f32.mrf.mxu0 }
 0x517   : > { %v2168_v31 = vadd.f32 %v3371_v30, %v2906_v29 }
 0x518   : > { %v2162_v32 = vpop.f32.mrf.mxu0 }
 0x519   : > { %v2163_v33 = vadd.f32 %v2906_v29, %v2162_v32  ;;  %2220 = vmatpush1.msra.mxu1 %v2168_v31  ;;  %v2218_v31 = vld [vmem:[#allocation3 + $0x28] sm:$0xff] }
 0x51a   : > { %2221 = vmatprep.subr.mxu1 %v3956_v14 }
 0x51b   : > { %2222 = vmatpush1.msra.mxu1 %v2163_v33 }
 0x51c   : > { %2223 = vmatprep.subr.mxu1 %v3956_v14 }
 0x51d   : > { %2224 = vmatpush1.msra.mxu1 %v2158_v34 }
 0x51e   : > { %2225 = vmatprep.subr.mxu1 %v3956_v14 }
 0x51f   : > { %2226 = vmatpush1.msra.mxu1 %v2153_v35 }
 0x520   : > { %2227 = vmatprep.subr.mxu1 %v3956_v14 }
 0x521   : > { %2228 = vmatpush1.msra.mxu1 %v2148_v36 }
 0x522   : > { %2229 = vmatprep.subr.mxu1 %v3956_v14 }
 0x523   : > { %2230 = vmatpush1.msra.mxu1 %v2143_v37 }
 0x524   : > { %2231 = vmatprep.subr.mxu1 %v3956_v14 }
 0x525   : > { %2232 = vmatpush1.msra.mxu1 %v2138_v39 }
 0x526   : > { %2233 = vmatprep.subr.mxu1 %v3956_v14 }
 0x527   : > { %2234 = vmatpush1.msra.mxu1 %v2133_v40 }
 0x528   : > { %2235 = vmatprep.subr.mxu1 %v3956_v14 }
 0x529   : > { %2236 = vmatpush1.msra.mxu1 %v2128_v41 }
 0x52a   : > { %2237 = vmatprep.subr.mxu1 %v3956_v14 }
 0x52b   : > { %2238 = vmatpush1.msra.mxu1 %v2123_v42 }
 0x52c   : > { %2239 = vmatprep.subr.mxu1 %v3956_v14 }
 0x52d   : > { %2240 = vmatpush1.msra.mxu1 %v2118_v43 }
 0x52e   : > { %2241 = vmatprep.subr.mxu1 %v3956_v14 }
 0x52f   : > { %2242 = vmatpush1.msra.mxu1 %v2113_v44 }
 0x530   : > { %2243 = vmatprep.subr.mxu1 %v3956_v14 }
 0x531   : > { %2244 = vmatpush1.msra.mxu1 %v2108_v46 }
 0x532   : > { %2245 = vmatprep.subr.mxu1 %v3956_v14 }
 0x533   : > { %2246 = vmatpush1.msra.mxu1 %v2103_v47 }
 0x534   : > { %2247 = vmatprep.subr.mxu1 %v3956_v14 }
 0x535   : > { %2248 = vmatpush1.msra.mxu1 %v2098_v50 }
 0x536   : > { %2249 = vmatprep.subr.mxu1 %v3956_v14 }
 0x537   : > { %2250 = vmatpush1.msra.mxu1 %v2093_v51 }
 0x538   : > { %2915 = vmatmul.mubr.msk.f32.vlgmr.msra.gmra.mxu1 %vm2184_vm1, %v3956_v14 }
 0x539   : > { %2289 = vmatprep.mubr.f32.mxu1 %v3957_v15 }
 0x53c   : > { %2916 = vmatmul.mubr.msk.f32.gmra.mxu1 %vm2185_vm2, %v3956_v14 }
 0x53d   : > { %2295 = vmatprep.mubr.f32.mxu1 %v3957_v15 }
 0x540   : > { %2917 = vmatmul.mubr.msk.f32.gmra.mxu1 %vm2186_vm3, %v3956_v14 }
 0x541   : > { %2301 = vmatprep.mubr.f32.mxu1 %v3957_v15 }
 0x544   : > { %2918 = vmatmul.mubr.msk.f32.gmra.mxu1 %vm2187_vm4, %v3956_v14 }
 0x545   : > { %2307 = vmatprep.mubr.f32.mxu1 %v3957_v15 }
 0x548   : > { %2919 = vmatmul.mubr.msk.f32.gmra.mxu1 %vm2188_vm5, %v3956_v14 }
 0x549   : > { %2313 = vmatprep.mubr.f32.mxu1 %v3957_v15 }
 0x54c   : > { %2920 = vmatmul.mubr.msk.f32.gmra.mxu1 %vm2189_vm6, %v3956_v14 }
 0x54d   : > { %2319 = vmatprep.mubr.f32.mxu1 %v3957_v15 }
 0x550   : > { %2921 = vmatmul.mubr.msk.f32.gmra.mxu1 %vm2190_vm7, %v3956_v14  ;;  %v2212_v14 = vld [vmem:[#allocation3 + $0x48] sm:$0xff] }
 0x5f8   : > { %v2285_v58 = vpop.f32.mrf.mxu1 }
 0x5f9   : > { %v2326_v60 = vadd.f32 %v2285_v58, %v2205_v38 }
 0x5fa   : > { %v2287_v61 = vpop.f32.mrf.mxu1 }
 0x5fb   : > { %2340 = vst [vmem:[#allocation3 + $0x30] sm:$0xff] %v2326_v60  ;;  %v2327_v63 = vadd.f32 %v2287_v61, %v2206_v59 }
 0x5fc   : > { %v2291_v0 = vpop.f32.mrf.mxu1 }
 0x5fd   : > { %2341 = vst [vmem:[#allocation3] sm:$0xff] %v2327_v63  ;;  %v2328_v3 = vadd.f32 %v2291_v0, %v2207_v62 }
 0x5fe   : > { %v2293_v4 = vpop.f32.mrf.mxu1 }
 0x5ff   : > { %2342 = vst [vmem:[#allocation3 + $0x58] sm:$0xff] %v2328_v3  ;;  %v2329_v6 = vadd.f32 %v2293_v4, %v2208_v2 }
 0x600   : > { %v2297_v7 = vpop.f32.mrf.mxu1 }
 0x601   : > { %2343 = vst [vmem:[#allocation3 + $0x18] sm:$0xff] %v2329_v6  ;;  %v2330_v9 = vadd.f32 %v2297_v7, %v2209_v5 }
 0x602   : > { %v2299_v10 = vpop.f32.mrf.mxu1 }
 0x603   : > { %2344 = vst [vmem:[#allocation3 + $0x50] sm:$0xff] %v2330_v9  ;;  %v2331_v12 = vadd.f32 %v2299_v10, %v2210_v8 }
 0x604   : > { %v2303_v13 = vpop.f32.mrf.mxu1 }
 0x605   : > { %2345 = vst [vmem:[#allocation3 + $0x68] sm:$0xff] %v2331_v12  ;;  %v2332_v15 = vadd.f32 %v2303_v13, %v2211_v11 }
 0x606   : > { %v2305_v16 = vpop.f32.mrf.mxu1 }
 0x607   : > { %2346 = vst [vmem:[#allocation3 + $0x8] sm:$0xff] %v2332_v15  ;;  %v2333_v17 = vadd.f32 %v2305_v16, %v2212_v14 }
 0x608   : > { %v2309_v18 = vpop.f32.mrf.mxu1 }
 0x609   : > { %2347 = vst [vmem:[#allocation3 + $0x48] sm:$0xff] %v2333_v17  ;;  %v2334_v20 = vadd.f32 %v2309_v18, %v2213_v1 }
 0x60a   : > { %v2311_v21 = vpop.f32.mrf.mxu1 }
 0x60b   : > { %2348 = vst [vmem:[#allocation3 + $0x40] sm:$0xff] %v2334_v20  ;;  %v2335_v23 = vadd.f32 %v2311_v21, %v2214_v19 }
 0x60c   : > { %v2315_v24 = vpop.f32.mrf.mxu1 }
 0x60d   : > { %2349 = vst [vmem:[#allocation3 + $0x20] sm:$0xff] %v2335_v23  ;;  %v2336_v26 = vadd.f32 %v2315_v24, %v2215_v22 }
 0x60e   : > { %v2317_v27 = vpop.f32.mrf.mxu1 }
 0x60f   : > { %2350 = vst [vmem:[#allocation3 + $0x10] sm:$0xff] %v2336_v26  ;;  %v2337_v29 = vadd.f32 %v2317_v27, %v2216_v25 }
 0x610   : > { %v2321_v30 = vpop.f32.mrf.mxu1 }
 0x611   : > { %2351 = vst [vmem:[#allocation3 + $0x38] sm:$0xff] %v2337_v29  ;;  %v2338_v32 = vadd.f32 %v2321_v30, %v2217_v28  ;;  %2357 = sbr.rel (%p2922_p1) target bundleno = 1910 (0x776), region = 120 }
 0x612   : > { %v2323_v33 = vpop.f32.mrf.mxu1 }
 0x613   : > { %2352 = vst [vmem:[#allocation3 + $0x60] sm:$0xff] %v2338_v32  ;;  %v2339_v34 = vadd.f32 %v2323_v33, %v2218_v31 }
 0x615   : > { %2353 = vst [vmem:[#allocation3 + $0x28] sm:$0xff] %v2339_v34 }
 0x616   : > { %v2367_v35 = vld [vmem:[#allocation3 + $0x20] sm:$0xff]  ;;  %v2363_v37 = vld [vmem:[#allocation3 + $0x68] sm:$0xff]  ;;  %v3958_v39 = vmov 0   ;;  %v2361_v43 = vld [vmem:[#allocation3 + $0x18] sm:$0xff]  ;;  %v3959_v46 = vmov 0.0   ;;  %vm3960_vm8 = vmmov 0  }
 0x617   : > { %v2359_v36 = vld [vmem:[#allocation3] sm:$0xff]  ;;  %3594 = vset.pattern.permute.xlu1 %v3958_v39  ;;  %3593 = vset.pattern.permute.xlu0 %v3958_v39  ;;  %v2376_v40 = vmax.f32 %v2367_v35, 1.0  ;;  %v2374_v42 = vmax.f32 %v2363_v37, 1.0  ;;  %v2373_v44 = vmax.f32 %v2361_v43, 1.0  ;;  %v2365_v45 = vld [vmem:[#allocation3 + $0x48] sm:$0xff]  ;;  %v2442_v48 = vld [vmem:[#allocation19 + $0x70] sm:$0xff] }
 0x618   : > { %v2372_v41 = vmax.f32 %v2359_v36, 1.0  ;;  %3372 = vmatprep.subr.mxu0 %v3959_v46  ;;  %v2443_v47 = vld [vmem:[#allocation19 + $0x78] sm:$0xff]  ;;  %3425 = vmatprep.subr.mxu1 %v3959_v46  ;;  %v2369_v49 = vld [vmem:[#allocation3 + $0x38] sm:$0xff]  ;;  %v2441_v50 = vld [vmem:[#allocation19 + $0x68] sm:$0xff]  ;;  %v2375_v51 = vmax.f32 %v2365_v45, 1.0 }
 0x619   : > { %3595 = vrcp.f32 %v2376_v40  ;;  %3373 = vmatpush3.msra.mxu0 %v2443_v47  ;;  %3441 = vmatpush3.msra.mxu1 %v2443_v47  ;;  %v2377_v52 = vmax.f32 %v2369_v49, 1.0  ;;  %v2440_v53 = vld [vmem:[#allocation19 + $0x60] sm:$0xff]  ;;  %v2439_v55 = vld [vmem:[#allocation19 + $0x58] sm:$0xff]  ;;  %v2438_v57 = vld [vmem:[#allocation19 + $0x50] sm:$0xff] }
 0x61a   : > { %3597 = vrcp.f32 %v2372_v41  ;;  %3374 = vmatprep.subr.mxu0 %v3959_v46  ;;  %3426 = vmatprep.subr.mxu1 %v3959_v46  ;;  %v2437_v38 = vld [vmem:[#allocation19 + $0x48] sm:$0xff]  ;;  %v2436_v58 = vld [vmem:[#allocation19 + $0x40] sm:$0xff]  ;;  %v2435_v60 = vld [vmem:[#allocation19 + $0x38] sm:$0xff] }
 0x61b   : > { %3599 = vrcp.f32 %v2374_v42  ;;  %3375 = vmatpush3.msra.mxu0 %v2442_v48  ;;  %3442 = vmatpush3.msra.mxu1 %v2442_v48  ;;  %v2434_v0 = vld [vmem:[#allocation19 + $0x30] sm:$0xff]  ;;  %v2433_v2 = vld [vmem:[#allocation19 + $0x28] sm:$0xff]  ;;  %v2432_v5 = vld [vmem:[#allocation19 + $0x20] sm:$0xff] }
 0x61c   : > { %3601 = vrcp.f32 %v2373_v44  ;;  %3376 = vmatprep.subr.mxu0 %v3959_v46  ;;  %3427 = vmatprep.subr.mxu1 %v3959_v46  ;;  %v2371_v54 = vld [vmem:[#allocation3 + $0x28] sm:$0xff]  ;;  %v2431_v6 = vld [vmem:[#allocation19 + $0x18] sm:$0xff]  ;;  %v2430_v8 = vld [vmem:[#allocation19 + $0x10] sm:$0xff] }
 0x61d   : > { %3377 = vmatpush3.msra.mxu0 %v2441_v50  ;;  %3443 = vmatpush3.msra.mxu1 %v2441_v50  ;;  %3603 = vrcp.f32 %v2375_v51  ;;  %v2378_v56 = vmax.f32 %v2371_v54, 1.0  ;;  %v2429_v9 = vld [vmem:[#allocation19 + $0x8] sm:$0xff]  ;;  %v2428_v10 = vld [vmem:[#allocation19] sm:$0xff]  ;;  %v2366_v11 = vld [vmem:[#allocation3 + $0x40] sm:$0xff] }
 0x61e   : > { %3378 = vmatprep.subr.mxu0 %v3959_v46  ;;  %3428 = vmatprep.subr.mxu1 %v3959_v46  ;;  %3605 = vrcp.f32 %v2377_v52  ;;  %v2358_v12 = vld [vmem:[#allocation3 + $0x30] sm:$0xff]  ;;  %v2360_v1 = vld [vmem:[#allocation3 + $0x58] sm:$0xff]  ;;  %v2364_v25 = vld [vmem:[#allocation3 + $0x8] sm:$0xff] }
 0x61f   : > { %3379 = vmatpush3.msra.mxu0 %v2440_v53  ;;  %3444 = vmatpush3.msra.mxu1 %v2440_v53  ;;  %3607 = vrcp.f32 %v2378_v56  ;;  %v2362_v20 = vld [vmem:[#allocation3 + $0x50] sm:$0xff]  ;;  %v2370_v27 = vld [vmem:[#allocation3 + $0x60] sm:$0xff]  ;;  %v2923_v31 = vld [vmem:[%s4833_s15] ss:$0 sm:$0xff] }
 0x620   : > { %3380 = vmatprep.subr.mxu0 %v3959_v46  ;;  %3429 = vmatprep.subr.mxu1 %v3959_v46  ;;  %v2368_v21 = vld [vmem:[#allocation3 + $0x10] sm:$0xff] }
 0x621   : > { %3381 = vmatpush3.msra.mxu0 %v2439_v55  ;;  %3445 = vmatpush3.msra.mxu1 %v2439_v55 }
 0x622   : > { %3382 = vmatprep.subr.mxu0 %v3959_v46  ;;  %3430 = vmatprep.subr.mxu1 %v3959_v46 }
 0x623   : > { %3383 = vmatpush3.msra.mxu0 %v2438_v57  ;;  %3446 = vmatpush3.msra.mxu1 %v2438_v57 }
 0x624   : > { %3384 = vmatprep.subr.mxu0 %v3959_v46  ;;  %3431 = vmatprep.subr.mxu1 %v3959_v46 }
 0x625   : > { %3385 = vmatpush3.msra.mxu0 %v2437_v38  ;;  %3447 = vmatpush3.msra.mxu1 %v2437_v38 }
 0x626   : > { %v3596_v59 = vpop.eup %3595  ;;  %3386 = vmatprep.subr.mxu0 %v3959_v46  ;;  %3432 = vmatprep.subr.mxu1 %v3959_v46 }
 0x627   : > { %v3598_v61 = vpop.eup %3597  ;;  %2408 = vperm.xlu1 %3594, %v3596_v59   ;;  %3387 = vmatpush3.msra.mxu0 %v2436_v58 }
 0x628   : > { %v3600_v62 = vpop.eup %3599  ;;  %2388 = vperm.xlu0 %3593, %v3598_v61   ;;  %3388 = vmatprep.subr.mxu0 %v3959_v46 }
 0x629   : > { %v3602_v63 = vpop.eup %3601  ;;  %3448 = vmatpush3.msra.mxu1 %v2436_v58  ;;  %3389 = vmatpush3.msra.mxu0 %v2435_v60 }
 0x62a   : > { %3433 = vmatprep.subr.mxu1 %v3959_v46  ;;  %3390 = vmatprep.subr.mxu0 %v3959_v46  ;;  %v3604_v3 = vpop.eup %3603 }
 0x62b   : > { %2398 = vperm.xlu1 %3594, %v3600_v62   ;;  %3449 = vmatpush3.msra.mxu1 %v2435_v60  ;;  %v3606_v4 = vpop.eup %3605 }
 0x62c   : > { %2393 = vperm.xlu0 %3593, %v3602_v63   ;;  %3391 = vmatpush3.msra.mxu0 %v2434_v0  ;;  %v3608_v7 = vpop.eup %3607 }
 0x62d   : > { %3434 = vmatprep.subr.mxu1 %v3959_v46  ;;  %3392 = vmatprep.subr.mxu0 %v3959_v46 }
 0x62e   : > { %3450 = vmatpush3.msra.mxu1 %v2434_v0  ;;  %3393 = vmatpush3.msra.mxu0 %v2433_v2 }
 0x62f   : > { %2403 = vperm.xlu1 %3594, %v3604_v3   ;;  %3435 = vmatprep.subr.mxu1 %v3959_v46 }
 0x630   : > { %2413 = vperm.xlu0 %3593, %v3606_v4   ;;  %3394 = vmatprep.subr.mxu0 %v3959_v46 }
 0x631   : > { %3451 = vmatpush3.msra.mxu1 %v2433_v2  ;;  %3395 = vmatpush3.msra.mxu0 %v2432_v5 }
 0x632   : > { %3436 = vmatprep.subr.mxu1 %v3959_v46  ;;  %3396 = vmatprep.subr.mxu0 %v3959_v46 }
 0x633   : > { %3452 = vmatpush3.msra.mxu1 %v2432_v5  ;;  %3397 = vmatpush3.msra.mxu0 %v2431_v6 }
 0x634   : > { %2418 = vperm.xlu0 %3593, %v3608_v7   ;;  %3437 = vmatprep.subr.mxu1 %v3959_v46 }
 0x635   : > { %3398 = vmatprep.subr.mxu0 %v3959_v46  ;;  %3453 = vmatpush3.msra.mxu1 %v2431_v6 }
 0x636   : > { %3399 = vmatpush3.msra.mxu0 %v2430_v8  ;;  %3438 = vmatprep.subr.mxu1 %v3959_v46 }
 0x637   : > { %3400 = vmatprep.subr.mxu0 %v3959_v46  ;;  %3454 = vmatpush3.msra.mxu1 %v2430_v8 }
 0x638   : > { %3401 = vmatpush3.msra.mxu0 %v2429_v9  ;;  %3439 = vmatprep.subr.mxu1 %v3959_v46 }
 0x639   : > { %3402 = vmatprep.subr.mxu0 %v3959_v46  ;;  %3455 = vmatpush3.msra.mxu1 %v2429_v9 }
 0x63a   : > { %3403 = vmatpush3.msra.mxu0 %v2428_v10  ;;  %3404 = vmatprep.mubr.msk.f32.mxu0 %vm3960_vm8, %v3959_v46 }
 0x63b   : > { %3440 = vmatprep.subr.mxu1 %v3959_v46  ;;  %3416 = vmatprep.mubr.msk.f32.mxu1 %vm3960_vm8, %v3959_v46 }
 0x63c   : > { %3456 = vmatpush3.msra.mxu1 %v2428_v10 }
 0x6a2   : > { %v2409_v13 = vpop.permute.xlu1 %2408 }
 0x6a3   : > { %v2425_v14 = vmul.f32 %v2409_v13, %v2366_v11  ;;  %v2389_v15 = vpop.permute.xlu0 %2388 }
 0x6a4   : > { %v2421_v16 = vmul.f32 %v2389_v15, %v2358_v12 }
 0x6a5   : > { %3417 = vmatmul.mubr.f32.vlgmr.msra.gmra.mxu1 %v2425_v14 }
 0x6a6   : > { %3405 = vmatmul.mubr.f32.vlgmr.msra.gmra.mxu0 %v2421_v16  ;;  %3419 = vmatprep.mubr.msk.f32.mxu1 %vm3960_vm8, %v3959_v46  ;;  %v2399_v17 = vpop.permute.xlu1 %2398 }
 0x6a7   : > { %v2394_v18 = vpop.permute.xlu0 %2393  ;;  %3407 = vmatprep.mubr.msk.f32.mxu0 %vm3960_vm8, %v3959_v46  ;;  %v2423_v23 = vmul.f32 %v2399_v17, %v2362_v20 }
 0x6a8   : > { %v2422_v19 = vmul.f32 %v2394_v18, %v2360_v1 }
 0x6aa   : > { %3408 = vmatmul.mubr.f32.gmra.mxu0 %v2422_v19  ;;  %v2404_v26 = vpop.permute.xlu1 %2403 }
 0x6ab   : > { %v2414_v22 = vpop.permute.xlu0 %2413  ;;  %3410 = vmatprep.mubr.msk.f32.mxu0 %vm3960_vm8, %v3959_v46  ;;  %v2424_v29 = vmul.f32 %v2404_v26, %v2364_v25 }
 0x6ac   : > { %v2426_v24 = vmul.f32 %v2414_v22, %v2368_v21 }
 0x6ae   : > { %3411 = vmatmul.mubr.f32.gmra.mxu0 %v2423_v23  ;;  %3420 = vmatmul.mubr.f32.gmra.mxu1 %v2426_v24 }
 0x6af   : > { %v2419_v28 = vpop.permute.xlu0 %2418  ;;  %3413 = vmatprep.mubr.msk.f32.mxu0 %vm3960_vm8, %v3959_v46  ;;  %3422 = vmatprep.mubr.msk.f32.mxu1 %vm3960_vm8, %v3959_v46 }
 0x6b0   : > { %v2427_v30 = vmul.f32 %v2419_v28, %v2370_v27 }
 0x6b2   : > { %3414 = vmatmul.mubr.f32.gmra.mxu0 %v2424_v29  ;;  %3423 = vmatmul.mubr.f32.gmra.mxu1 %v2427_v30 }
 0x765   : > { %v2537_v32 = vpop.f32.mrf.mxu1 }
 0x766   : > { %v2517_v33 = vpop.f32.mrf.mxu0  ;;  %v2538_v34 = vadd.f32 %v2923_v31, %v2537_v32 }
 0x767   : > { %v2518_v35 = vadd.f32 %v2923_v31, %v2517_v33  ;;  %v3418_v36 = vpop.f32.mrf.mxu1 }
 0x768   : > { %v3406_v37 = vpop.f32.mrf.mxu0  ;;  %2555 = vst [vmem:[#allocation21 + $0x20] sm:$0xff] %v2538_v34 }
 0x769   : > { %2551 = vst [vmem:[#allocation21] sm:$0xff] %v2518_v35 }
 0x76a   : > { %v2522_v39 = vpop.f32.mrf.mxu0 }
 0x76b   : > { %v2523_v40 = vadd.f32 %v2923_v31, %v2522_v39 }
 0x76c   : > { %v3409_v41 = vpop.f32.mrf.mxu0 }
 0x76d   : > { %2552 = vst [vmem:[#allocation21 + $0x8] sm:$0xff] %v2523_v40 }
 0x76e   : > { %v2527_v42 = vpop.f32.mrf.mxu0  ;;  %v2542_v43 = vpop.f32.mrf.mxu1 }
 0x76f   : > { %v2528_v44 = vadd.f32 %v2923_v31, %v2527_v42  ;;  %v2543_v45 = vadd.f32 %v2923_v31, %v2542_v43 }
 0x770   : > { %v3412_v46 = vpop.f32.mrf.mxu0  ;;  %v3421_v47 = vpop.f32.mrf.mxu1 }
 0x771   : > { %2553 = vst [vmem:[#allocation21 + $0x10] sm:$0xff] %v2528_v44  ;;  %2556 = vst [vmem:[#allocation21 + $0x28] sm:$0xff] %v2543_v45 }
 0x772   : > { %v2532_v48 = vpop.f32.mrf.mxu0  ;;  %v2547_v49 = vpop.f32.mrf.mxu1 }
 0x773   : > { %v2533_v50 = vadd.f32 %v2923_v31, %v2532_v48  ;;  %v2548_v51 = vadd.f32 %v2923_v31, %v2547_v49 }
 0x774   : > { %v3415_v52 = vpop.f32.mrf.mxu0  ;;  %v3424_v53 = vpop.f32.mrf.mxu1 }
 0x775   : > { %2554 = vst [vmem:[#allocation21 + $0x18] sm:$0xff] %v2533_v50  ;;  %2557 = vst [vmem:[#allocation21 + $0x30] sm:$0xff] %v2548_v51 }
 0x776 PF: > { %s3961_s20 = smov [#allocation21]   ;;  %p4898_p2 = scmp.eq.s32.totalorder %s4079_s7, 2 }
 0x777   : > { %s2569_s9 = sshll.u32 %s3961_s20, 4  ;;  %s2570_s9 = int_to_ptr.vmem [resolvable:$true] %s2569_s9 }
 0x778   : > { %s3827_s6 = scalar_lea.vmem %s2570_s9, 896  ;;  %p3834_p6 = scmp.lt.s32.totalorder %s2570_s9, %s2570_s9 }
 0x779   : > { %p3828_p3 = scmp.ne.s32.totalorder %s2570_s9, %s3827_s6  ;;  %p3835_p11 = scmp.lt.s32.totalorder %s3827_s6, %s3827_s6 }
 0x77b   : > { %p3829_p4 = pnand %p3828_p3, %p4898_p2  ;;  %p3836_p7 = por %p3835_p11, %p3834_p6 }
 0x77d   : > { %p3830_p8 = pneg %p3829_p4 }
 0x77f   : > { %p3837_p0 = pnand %p3836_p7, %p3830_p8 }
 0x781   : > { %3840 = shalt.err (!%p3837_p0)
}
 0x782   : > { %s3962_s21 = smov 128   ;;  %s3963_s26 = smov 8  }
 0x783   : > { %p4899_p10 = pmov %p4898_p2  ;;  %s2932_s25 = sshll.u32 %s4079_s7, 11 }
 0x784   : > { %s2585_s23 = sshll.u32 %s4298_s22, 4  ;;  %s4900_s29 = sld [smem:[#allocation48_spill]]  ;;  %s4770_s23 = int_to_ptr.vmem [resolvable:$true] %s2585_s23 }
 0x785   : > { %3488 = dma.vmem_to_hbm [thread:$0]  (%p4899_p10), %s2570_s9, 896, %s4834_s16, [#allocation9], %s3962_s21, %s3962_s21, %s3963_s26  }
 0x786   : > { %s4902_s12 = sand.u32 1, %s3933_s28   ;;  %s3851_s18 = scalar_lea.vmem %s4770_s23, 2048 }
 0x787   : > { %s2559_s30 = scalar_lea.sflag [#allocation23], %s4902_s12  ;;  %p3852_p5 = scmp.ne.s32.totalorder %s4770_s23, %s3851_s18 }
 0x788   : > { %p4903_p9 = scmp.ne.s32.totalorder %s4874_s4, 0  ;;  %s3964_s10 = smov [#allocation22]  }
 0x789   : > { %s3855_s2 = sshll.u32 %s3964_s10, 4  ;;  %s3856_s2 = int_to_ptr.vmem [resolvable:$false] %s3855_s2 }
 0x78a   : > { %s4901_s19 = smov %s4900_s29  ;;  %s4768_s17 = scalar_lea.hbm %s4900_s29, %s2932_s25 }
 0x78b   : > { %p3853_p12 = pnand %p3852_p5, %p4903_p9  ;;  %s3857_s22 = scalar_lea.vmem %s3856_s2, 4096 }
 0x78c   : > { %p3858_p1 = scmp.lt.s32.totalorder %s4770_s23, %s3856_s2  ;;  %p3859_p3 = scmp.lt.s32.totalorder %s3857_s22, %s3851_s18 }
 0x78d   : > { %p3854_p13 = pneg %p3853_p12 }
 0x78e   : > { %p3860_p2 = por %p3859_p3, %p3858_p1 }
 0x790   : > { %p3861_p4 = pnand %p3860_p2, %p3854_p13 }
 0x792   : > { %3864 = shalt.err (!%p3861_p4)
}
 0x793   : > { %s3865_s20 = scalar_lea.hbm %s4768_s17, 2048  ;;  %s3869_s5 = scalar_lea.hbm %s4901_s19, 6144 }
 0x794   : > { %p3866_p8 = scmp.ne.s32.totalorder %s4768_s17, %s3865_s20  ;;  %p3870_p7 = scmp.lt.s32.totalorder %s4768_s17, %s4901_s19 }
 0x795   : > { %p3871_p0 = scmp.lt.s32.totalorder %s3869_s5, %s3865_s20 }
 0x796   : > { %p3867_p6 = pnand %p3866_p8, %p4903_p9 }
 0x797   : > { %p3872_p10 = por %p3871_p0, %p3870_p7 }
 0x798   : > { %p3868_p11 = pneg %p3867_p6 }
 0x79a   : > { %p3873_p5 = pnand %p3872_p10, %p3868_p11 }
 0x79c   : > { %3876 = shalt.err (!%p3873_p5)
}
 0x79d   : > { %3489 = dma.vmem_to_hbm [thread:$0]  (%p4903_p9), %s4770_s23, 2048, %s4768_s17, %s2559_s30, %s3962_s21, %s3962_s21, %s3963_s26  }
 0x79e   : > { %p4904_p12 = scmp.eq.s32.totalorder %s4079_s7, 2 }
 0x7a0   : > { %3920 = dma.done.wait (%p4904_p12), [#allocation9], 896   ;;  %p4905_p13 = pmov %p4904_p12 }
 0x7a2   : > { %3922 = vsyncadd (%p4905_p13), [#allocation9], 4294966400 }
 0x7a3 PF: > { %p3540_p1 = scmp.ge.s32.totalorder %s3941_s0, 2  ;;  %s2604_s8 = sand.u32 1, %s3929_s27  }
 0x7a4   : > { %p4906_p3 = scmp.ne.s32.totalorder %s4875_s1, 0  ;;  %s2605_s4 = scalar_lea.sflag [#allocation23], %s2604_s8 }
 0x7a6   : > { %p3520_p2 = pnand %p3540_p1, %p4906_p3 }
 0x7a8   : > { %p3521_p4 = pneg %p3520_p2 }
 0x7aa   : > { %3924 = dma.done.wait (%p3521_p4), %s2605_s4, 2048  }
 0x7ab   : > { %3926 = vsyncadd (%p3521_p4), %s2605_s4, 4294965248  ;;  %s4907_s21 = sld [smem:[#allocation33_spill]]  ;;  %p40_p9 = scmp.ge.s32.totalorder %s4189_s24, 5  }
 0x7ac   : > { %s4908_s29 = sld [smem:[#allocation34_spill]]  ;;  %s4909_s27 = smov %s3933_s28 }
 0x7ad   : > { %s4911_s0 = smov %s4189_s24  ;;  %42 = sbr.rel (!%p40_p9) target bundleno = 35 (0x23), region = 302 }
 0x7b1   : > { %s4910_s28 = smov %s4907_s21 }
 0x7b2   :  { %2610 = vsyncpa [#allocation8], 1 }
 0x7b3   :  { %2612 = vsyncpa [#allocation8 + $0x1], 1 }
 0x7b4   :  { %2613 = vsyncpa [#allocation11], 1 }
 0x7b5   :  { %2615 = vsyncpa [#allocation11 + $0x1], 1 }
 0x7b6   :  { %2616 = vsyncpa [#allocation14], 1 }
 0x7b7   :  { %2617 = vsyncpa [#allocation17], 1 }
 0x7b8   :  { %2618 = vsyncpa [#allocation20], 1 }
 0x7b9   :  { %2619 = vsyncpa [#allocation9], 1 }
 0x7ba   :  { %2621 = vsyncpa [#allocation9 + $0x1], 1 }
 0x7bb   :  { %2622 = vsyncpa [#allocation23], 1 }
 0x7bc   :  { %2624 = vsyncpa [#allocation23 + $0x1], 1 }

</bundles_post_ra>
